<compile_context>
chip_gen: v6e
topology: v6e:2x2x1
jax: 0.10.0
libtpu: 0.0.40
codegen_flags: <defaults>
</compile_context>

<pallas_src>
import math
import numpy as np
import jax
import jax.numpy as jnp
from jax.experimental import pallas as pl
from jax.experimental.pallas import tpu as pltpu

H, W = 3, 2
HW = H * W                       # 6 spatial positions
EPS = 1e-5                       # nn.BatchNorm2d default eps
SLOPE = 0.01                     # nn.LeakyReLU default negative_slope
GROWTH = 32
BN_SIZE = 2
INIT_FEAT = 2
BOTTLENECK = BN_SIZE * GROWTH    # 64
NUM_BLOCKS = 5
BLOCK_W = INIT_FEAT + GROWTH     # 34 channels appended to nowOut per block
SLAB_W = 256                     # lane-padded slab width (>= 5*34 = 170)


# ---------------- shared math (usable inside and outside kernels) -----------

def _bn_train(x, g, b):
    # BatchNorm2d (training mode): per-channel batch stats over (N,H,W),
    # biased variance.  x: (HW, C);  g, b: (1, C)
    m = jnp.mean(x, axis=0, keepdims=True)
    d = x - m
    v = jnp.mean(d * d, axis=0, keepdims=True)
    return d * jax.lax.rsqrt(v + EPS) * g + b


def _lrelu(x):
    return jnp.where(x >= 0, x, SLOPE * x)


# ---------------- single fused Pallas kernel ---------------------------------

def densenet_kernel(*refs):
    # ---- unpack: inputs, then output, then scratch ----
    idx = 0
    x_ref = refs[idx]; idx += 1
    dense = [refs[idx + 6 * i: idx + 6 * (i + 1)] for i in range(NUM_BLOCKS)]
    idx += 6 * NUM_BLOCKS
    tran = [refs[idx + 3 * i: idx + 3 * (i + 1)] for i in range(NUM_BLOCKS)]
    idx += 3 * NUM_BLOCKS
    gh_ref, bh_ref, wh_ref, biash_ref = refs[idx: idx + 4]; idx += 4
    out_ref = refs[idx]; idx += 1
    slab_ref = refs[idx]; idx += 1      # (HW, SLAB_W)   running nowOut
    zf_ref = refs[idx]                  # (1, HW*64)     conv2 flatten buffer

    # ---- input glue: min/max normalization + subtract of first element ----
    xr = x_ref[...].astype(jnp.float32)                          # (HW, 2)
    mn = jnp.min(jnp.min(xr, axis=1, keepdims=True), axis=0, keepdims=True)
    mx = jnp.max(jnp.max(xr, axis=1, keepdims=True), axis=0, keepdims=True)
    tx = (xr - mn) / (mx - mn)          # (matches torch: no all-equal guard)
    nxt = tx - tx[0:1, 0:1]             # first flat element == (p=0, c=0)

    for i in range(NUM_BLOCKS):
        g1, b1, w1, g2, b2, wfold = dense[i]
        # norm1 -> relu1 -> conv1 (1x1, Cin=2): two VPU broadcast-FMAs (no MXU)
        y = _lrelu(_bn_train(nxt, g1[...], b1[...]))             # (HW, 2)
        w1v = w1[...]                                            # (2, 64)
        z = y[:, 0:1] * w1v[0:1, :] + y[:, 1:2] * w1v[1:2, :]    # (HW, 64)
        # norm2 -> relu2
        zz = _lrelu(_bn_train(z, g2[...], b2[...]))              # (HW, 64)
        # conv2 (3x3, pad=1): spatial shift matrices folded into the weight at
        # init time -> a single (1, HW*64) @ (HW*64, HW*32) MXU matmul.  The
        # flatten of zz goes through a tiny VMEM scratch row (static slices),
        # avoiding a layout-crossing in-kernel reshape.
        for q in range(HW):
            zf_ref[0:1, q * BOTTLENECK:(q + 1) * BOTTLENECK] = zz[q:q + 1, :]
        new_flat = jnp.dot(zf_ref[...], wfold[...],
                           preferred_element_type=jnp.float32)   # (1, HW*32)
        # torch.cat growth: write [nxt, new] into this block's slab columns.
        # new rows go straight from the matmul output into the slab (no
        # intermediate staging scratch).
        off = BLOCK_W * i
        slab_ref[:, off:off + INIT_FEAT] = nxt
        for p in range(HW):
            slab_ref[p:p + 1, off + INIT_FEAT:off + BLOCK_W] = \
                new_flat[0:1, p * GROWTH:(p + 1) * GROWTH]
        # transition: norm -> relu -> conv 1x1 (34*(i+1) -> 2)
        gt, bt, wt = tran[i]
        width = BLOCK_W * (i + 1)
        now_out = slab_ref[:, 0:width]                           # (HW, width)
        yt = _lrelu(_bn_train(now_out, gt[...], bt[...]))
        nxt = jnp.dot(yt, wt[...], preferred_element_type=jnp.float32)  # (HW,2)

    # ResNet head: norm -> relu -> view(1, 12) -> Linear(12, 1)
    yh = _lrelu(_bn_train(nxt, gh_ref[...], bh_ref[...]))        # (HW, 2)
    s = jnp.sum(yh * wh_ref[...], axis=1, keepdims=True)         # (HW, 1)
    s = jnp.sum(s, axis=0, keepdims=True)                        # (1, 1)
    out_ref[...] = s + biash_ref[...]


_VMEM = pl.BlockSpec(memory_space=pltpu.MemorySpace.VMEM)


def densenet_forward(x12, params):
    # torch: x.view(1, 2, 3, 2)  ->  (HW, C) tile with x_tile[p, c] = x12[c*6+p]
    # (pure layout glue; the normalization itself happens inside the kernel).
    x_tile = x12.reshape(2, HW).T.astype(jnp.float32)            # (6, 2)

    flat_in = [x_tile]
    for p in params['dense']:
        flat_in += [p['g1'], p['b1'], p['w1'], p['g2'], p['b2'], p['wfold']]
    for t in params['tran']:
        flat_in += [t['g'], t['b'], t['w']]
    r = params['res']
    flat_in += [r['g'], r['b'], r['w'], r['bias']]

    out = pl.pallas_call(
        densenet_kernel,
        out_shape=jax.ShapeDtypeStruct((1, 1), jnp.float32),
        in_specs=[_VMEM] * len(flat_in),
        out_specs=_VMEM,
        scratch_shapes=[
            pltpu.VMEM((HW, SLAB_W), jnp.float32),          # nowOut slab
            pltpu.VMEM((1, HW * BOTTLENECK), jnp.float32),  # zz flatten buffer
        ],
    )(*flat_in)
    # TODO(synk): for repeated scoring, batch inputs along the row axis and add
    #   a "parallel" grid axis to use both TensorCores on v7x.
    return out[0]        # matches `return nextInput[0]` -> shape (1,)


# ---------------- parameters & constants -------------------------------------

def build_shift_mats():
    # S[k, p, q] = 1 iff spatial position q is the (kh, kw) neighbour of p
    # (zero padding), with k = kh*3 + kw.
    s = np.zeros((9, HW, HW), np.float32)
    for kh in range(3):
        for kw in range(3):
            k = kh * 3 + kw
            for h in range(H):
                for w in range(W):
                    hh, ww = h + kh - 1, w + kw - 1
                    if 0 <= hh < H and 0 <= ww < W:
                        s[k, h * W + w, hh * W + ww] = 1.0
    return s


def init_params(key):
    # Deterministic synthetic init mirroring the module's __init__:
    #   Conv2d -> kaiming_normal_ (std = sqrt(2 / fan_in)); BN weight=1, bias=0;
    #   Linear default weight init, bias forced to 0.
    # TODO(synk): checkpoint loading (torch.load of model_data.pth) has no
    #   equivalent here; parameters stay at their deterministic init.
    keys = iter(jax.random.split(key, 16))
    s_np = build_shift_mats()
    s_mat = jnp.asarray(s_np)

    def kaiming(k, shape, fan_in):
        return math.sqrt(2.0 / fan_in) * jax.random.normal(k, shape, jnp.float32)

    dense = []
    for _ in range(NUM_BLOCKS):
        w1 = kaiming(next(keys), (INIT_FEAT, BOTTLENECK), INIT_FEAT * 1 * 1)
        w2 = kaiming(next(keys), (9, BOTTLENECK, GROWTH), BOTTLENECK * 3 * 3)
        # Fold the 9 spatial shift matrices into the 3x3 conv weight (host-side):
        #   Wfold[q*Cin + ci, p*Cout + co] = sum_k S[k, p, q] * w2[k, ci, co]
        wfold = jnp.einsum('kpq,kio->qipo', s_mat, w2)
        wfold = wfold.reshape(HW * BOTTLENECK, HW * GROWTH)
        dense.append(dict(
            g1=jnp.ones((1, INIT_FEAT), jnp.float32),
            b1=jnp.zeros((1, INIT_FEAT), jnp.float32),
            w1=w1, w2=w2, wfold=wfold,
            g2=jnp.ones((1, BOTTLENECK), jnp.float32),
            b2=jnp.zeros((1, BOTTLENECK), jnp.float32)))

    tran = []
    for i in range(NUM_BLOCKS):
        cin = BLOCK_W * (i + 1)
        tran.append(dict(
            g=jnp.ones((1, cin), jnp.float32),
            b=jnp.zeros((1, cin), jnp.float32),
            w=kaiming(next(keys), (cin, INIT_FEAT), cin * 1 * 1)))

    k_lin = 1.0 / math.sqrt(12.0)
    w_lin = jax.random.uniform(next(keys), (1, 12), jnp.float32, -k_lin, k_lin)
    w_lin_r = w_lin.reshape(2, HW).T     # (6, 2): W_r[p, c] = W[0, c*6 + p]
    res = dict(g=jnp.ones((1, 2), jnp.float32),
               b=jnp.zeros((1, 2), jnp.float32),
               w=w_lin_r,
               bias=jnp.zeros((1, 1), jnp.float32))
    return dict(dense=dense, tran=tran, res=res), s_mat


# ---------------- pure-JAX reference (correctness check) ---------------------

def ref_forward(x12, params, s_mat):
    tx = (x12 - jnp.min(x12)) / (jnp.max(x12) - jnp.min(x12))
    v = tx - tx[0]
    x = v.reshape(2, HW).T.astype(jnp.float32)
    now_out = None
    nxt = x
    for i in range(NUM_BLOCKS):
        p = params['dense'][i]
        y = _lrelu(_bn_train(nxt, p['g1'], p['b1']))
        z = _lrelu(_bn_train(y @ p['w1'], p['g2'], p['b2']))
        new_feat = sum((s_mat[k] @ z) @ p['w2'][k] for k in range(9))
        out = jnp.concatenate([nxt, new_feat], axis=1)
        now_out = out if now_out is None else jnp.concatenate([now_out, out], axis=1)
        t = params['tran'][i]
        nxt = _lrelu(_bn_train(now_out, t['g'], t['b'])) @ t['w']
    r = params['res']
    y = _lrelu(_bn_train(nxt, r['g'], r['b']))
    res = jnp.sum(y * r['w']).reshape(1, 1) + r['bias']
    return res[0]


if __name__ == "__main__":
    key = jax.random.PRNGKey(0)
    k_in, k_par = jax.random.split(key)
    # 12 raw scalar measurements (what x.view(1, 2, 3, 2) actually requires).
    x12 = jax.random.uniform(k_in, (12,), jnp.float32, 0.0, 10.0)
    params, s_mat = init_params(k_par)

    fwd = jax.jit(lambda x: densenet_forward(x, params))
    out = jax.block_until_ready(fwd(x12))

    ref = jax.block_until_ready(ref_forward(x12, params, s_mat))
    assert out.shape == (1,)
    np.testing.assert_allclose(np.asarray(out), np.asarray(ref),
                               rtol=1e-3, atol=1e-4)
    print("KERNEL_OK")
</pallas_src>

<mosaic_0001>
module attributes {stable_mosaic.version = 11 : i64} {
  func.func @densenet_kernel(%arg0: memref<6x2xf32, #tpu.memory_space<vmem>>, %arg1: memref<1x2xf32, #tpu.memory_space<vmem>>, %arg2: memref<1x2xf32, #tpu.memory_space<vmem>>, %arg3: memref<2x64xf32, #tpu.memory_space<vmem>>, %arg4: memref<1x64xf32, #tpu.memory_space<vmem>>, %arg5: memref<1x64xf32, #tpu.memory_space<vmem>>, %arg6: memref<384x192xf32, #tpu.memory_space<vmem>>, %arg7: memref<1x2xf32, #tpu.memory_space<vmem>>, %arg8: memref<1x2xf32, #tpu.memory_space<vmem>>, %arg9: memref<2x64xf32, #tpu.memory_space<vmem>>, %arg10: memref<1x64xf32, #tpu.memory_space<vmem>>, %arg11: memref<1x64xf32, #tpu.memory_space<vmem>>, %arg12: memref<384x192xf32, #tpu.memory_space<vmem>>, %arg13: memref<1x2xf32, #tpu.memory_space<vmem>>, %arg14: memref<1x2xf32, #tpu.memory_space<vmem>>, %arg15: memref<2x64xf32, #tpu.memory_space<vmem>>, %arg16: memref<1x64xf32, #tpu.memory_space<vmem>>, %arg17: memref<1x64xf32, #tpu.memory_space<vmem>>, %arg18: memref<384x192xf32, #tpu.memory_space<vmem>>, %arg19: memref<1x2xf32, #tpu.memory_space<vmem>>, %arg20: memref<1x2xf32, #tpu.memory_space<vmem>>, %arg21: memref<2x64xf32, #tpu.memory_space<vmem>>, %arg22: memref<1x64xf32, #tpu.memory_space<vmem>>, %arg23: memref<1x64xf32, #tpu.memory_space<vmem>>, %arg24: memref<384x192xf32, #tpu.memory_space<vmem>>, %arg25: memref<1x2xf32, #tpu.memory_space<vmem>>, %arg26: memref<1x2xf32, #tpu.memory_space<vmem>>, %arg27: memref<2x64xf32, #tpu.memory_space<vmem>>, %arg28: memref<1x64xf32, #tpu.memory_space<vmem>>, %arg29: memref<1x64xf32, #tpu.memory_space<vmem>>, %arg30: memref<384x192xf32, #tpu.memory_space<vmem>>, %arg31: memref<1x34xf32, #tpu.memory_space<vmem>>, %arg32: memref<1x34xf32, #tpu.memory_space<vmem>>, %arg33: memref<34x2xf32, #tpu.memory_space<vmem>>, %arg34: memref<1x68xf32, #tpu.memory_space<vmem>>, %arg35: memref<1x68xf32, #tpu.memory_space<vmem>>, %arg36: memref<68x2xf32, #tpu.memory_space<vmem>>, %arg37: memref<1x102xf32, #tpu.memory_space<vmem>>, %arg38: memref<1x102xf32, #tpu.memory_space<vmem>>, %arg39: memref<102x2xf32, #tpu.memory_space<vmem>>, %arg40: memref<1x136xf32, #tpu.memory_space<vmem>>, %arg41: memref<1x136xf32, #tpu.memory_space<vmem>>, %arg42: memref<136x2xf32, #tpu.memory_space<vmem>>, %arg43: memref<1x170xf32, #tpu.memory_space<vmem>>, %arg44: memref<1x170xf32, #tpu.memory_space<vmem>>, %arg45: memref<170x2xf32, #tpu.memory_space<vmem>>, %arg46: memref<1x2xf32, #tpu.memory_space<vmem>>, %arg47: memref<1x2xf32, #tpu.memory_space<vmem>>, %arg48: memref<6x2xf32, #tpu.memory_space<vmem>>, %arg49: memref<1x1xf32, #tpu.memory_space<vmem>>, %arg50: memref<1x1xf32, #tpu.memory_space<vmem>>, %arg51: memref<6x256xf32, #tpu.memory_space<vmem>>, %arg52: memref<1x384xf32, #tpu.memory_space<vmem>>) attributes {dimension_semantics = [], scalar_prefetch = 0 : i64, scratch_operands = 2 : i64, tpu.core_type = #tpu.core_type<tc>} {
    %c0 = arith.constant 0 : index
    %c0_0 = arith.constant 0 : index
    %0 = vector.load %arg0[%c0, %c0_0] : memref<6x2xf32, #tpu.memory_space<vmem>>, vector<6x2xf32>
    %cst = arith.constant dense<0x7F800000> : vector<6xf32>
    %1 = vector.multi_reduction <minimumf>, %0, %cst [1] : vector<6x2xf32> to vector<6xf32>
    %2 = vector.shape_cast %1 : vector<6xf32> to vector<6x1xf32>
    %cst_1 = arith.constant dense<0x7F800000> : vector<1xf32>
    %3 = vector.multi_reduction <minimumf>, %2, %cst_1 [0] : vector<6x1xf32> to vector<1xf32>
    %4 = vector.shape_cast %3 : vector<1xf32> to vector<1x1xf32>
    %cst_2 = arith.constant dense<0xFF800000> : vector<6xf32>
    %5 = vector.multi_reduction <maximumf>, %0, %cst_2 [1] : vector<6x2xf32> to vector<6xf32>
    %6 = vector.shape_cast %5 : vector<6xf32> to vector<6x1xf32>
    %cst_3 = arith.constant dense<0xFF800000> : vector<1xf32>
    %7 = vector.multi_reduction <maximumf>, %6, %cst_3 [0] : vector<6x1xf32> to vector<1xf32>
    %8 = vector.shape_cast %7 : vector<1xf32> to vector<1x1xf32>
    %9 = vector.broadcast %4 : vector<1x1xf32> to vector<6x2xf32>
    %10 = arith.subf %0, %9 : vector<6x2xf32>
    %11 = arith.subf %8, %4 : vector<1x1xf32>
    %12 = vector.broadcast %11 : vector<1x1xf32> to vector<6x2xf32>
    %13 = arith.divf %10, %12 : vector<6x2xf32>
    %14 = vector.extract_strided_slice %13 {offsets = [0, 0], sizes = [1, 1], strides = [1, 1]} : vector<6x2xf32> to vector<1x1xf32>
    %15 = vector.broadcast %14 : vector<1x1xf32> to vector<6x2xf32>
    %16 = arith.subf %13, %15 : vector<6x2xf32>
    %c0_4 = arith.constant 0 : index
    %c0_5 = arith.constant 0 : index
    %17 = vector.load %arg1[%c0_4, %c0_5] : memref<1x2xf32, #tpu.memory_space<vmem>>, vector<1x2xf32>
    %c0_6 = arith.constant 0 : index
    %c0_7 = arith.constant 0 : index
    %18 = vector.load %arg2[%c0_6, %c0_7] : memref<1x2xf32, #tpu.memory_space<vmem>>, vector<1x2xf32>
    %cst_8 = arith.constant dense<0.000000e+00> : vector<2xf32>
    %19 = vector.multi_reduction <add>, %16, %cst_8 [0] : vector<6x2xf32> to vector<2xf32>
    %20 = vector.shape_cast %19 : vector<2xf32> to vector<1x2xf32>
    %cst_9 = arith.constant 6.000000e+00 : f32
    %21 = vector.broadcast %cst_9 : f32 to vector<1x2xf32>
    %22 = arith.divf %20, %21 : vector<1x2xf32>
    %23 = vector.broadcast %22 : vector<1x2xf32> to vector<6x2xf32>
    %24 = arith.subf %16, %23 : vector<6x2xf32>
    %25 = arith.mulf %24, %24 : vector<6x2xf32>
    %cst_10 = arith.constant dense<0.000000e+00> : vector<2xf32>
    %26 = vector.multi_reduction <add>, %25, %cst_10 [0] : vector<6x2xf32> to vector<2xf32>
    %27 = vector.shape_cast %26 : vector<2xf32> to vector<1x2xf32>
    %cst_11 = arith.constant 6.000000e+00 : f32
    %28 = vector.broadcast %cst_11 : f32 to vector<1x2xf32>
    %29 = arith.divf %27, %28 : vector<1x2xf32>
    %cst_12 = arith.constant 9.99999974E-6 : f32
    %30 = vector.broadcast %cst_12 : f32 to vector<1x2xf32>
    %31 = arith.addf %29, %30 : vector<1x2xf32>
    %32 = math.rsqrt %31 : vector<1x2xf32>
    %33 = vector.broadcast %32 : vector<1x2xf32> to vector<6x2xf32>
    %34 = arith.mulf %24, %33 : vector<6x2xf32>
    %35 = vector.broadcast %17 : vector<1x2xf32> to vector<6x2xf32>
    %36 = arith.mulf %34, %35 : vector<6x2xf32>
    %37 = vector.broadcast %18 : vector<1x2xf32> to vector<6x2xf32>
    %38 = arith.addf %36, %37 : vector<6x2xf32>
    %cst_13 = arith.constant 0.000000e+00 : f32
    %39 = vector.broadcast %cst_13 : f32 to vector<6x2xf32>
    %40 = arith.cmpf oge, %38, %39 : vector<6x2xf32>
    %cst_14 = arith.constant 0.00999999977 : f32
    %41 = vector.broadcast %cst_14 : f32 to vector<6x2xf32>
    %42 = arith.mulf %41, %38 : vector<6x2xf32>
    %43 = arith.select %40, %38, %42 : vector<6x2xi1>, vector<6x2xf32>
    %c0_15 = arith.constant 0 : index
    %c0_16 = arith.constant 0 : index
    %44 = vector.load %arg3[%c0_15, %c0_16] : memref<2x64xf32, #tpu.memory_space<vmem>>, vector<2x64xf32>
    %45 = vector.extract_strided_slice %43 {offsets = [0, 0], sizes = [6, 1], strides = [1, 1]} : vector<6x2xf32> to vector<6x1xf32>
    %46 = vector.extract_strided_slice %44 {offsets = [0, 0], sizes = [1, 64], strides = [1, 1]} : vector<2x64xf32> to vector<1x64xf32>
    %47 = vector.broadcast %45 : vector<6x1xf32> to vector<6x64xf32>
    %48 = vector.broadcast %46 : vector<1x64xf32> to vector<6x64xf32>
    %49 = arith.mulf %47, %48 : vector<6x64xf32>
    %50 = vector.extract_strided_slice %43 {offsets = [0, 1], sizes = [6, 1], strides = [1, 1]} : vector<6x2xf32> to vector<6x1xf32>
    %51 = vector.extract_strided_slice %44 {offsets = [1, 0], sizes = [1, 64], strides = [1, 1]} : vector<2x64xf32> to vector<1x64xf32>
    %52 = vector.broadcast %50 : vector<6x1xf32> to vector<6x64xf32>
    %53 = vector.broadcast %51 : vector<1x64xf32> to vector<6x64xf32>
    %54 = arith.mulf %52, %53 : vector<6x64xf32>
    %55 = arith.addf %49, %54 : vector<6x64xf32>
    %c0_17 = arith.constant 0 : index
    %c0_18 = arith.constant 0 : index
    %56 = vector.load %arg4[%c0_17, %c0_18] : memref<1x64xf32, #tpu.memory_space<vmem>>, vector<1x64xf32>
    %c0_19 = arith.constant 0 : index
    %c0_20 = arith.constant 0 : index
    %57 = vector.load %arg5[%c0_19, %c0_20] : memref<1x64xf32, #tpu.memory_space<vmem>>, vector<1x64xf32>
    %cst_21 = arith.constant dense<0.000000e+00> : vector<64xf32>
    %58 = vector.multi_reduction <add>, %55, %cst_21 [0] : vector<6x64xf32> to vector<64xf32>
    %59 = vector.shape_cast %58 : vector<64xf32> to vector<1x64xf32>
    %cst_22 = arith.constant 6.000000e+00 : f32
    %60 = vector.broadcast %cst_22 : f32 to vector<1x64xf32>
    %61 = arith.divf %59, %60 : vector<1x64xf32>
    %62 = vector.broadcast %61 : vector<1x64xf32> to vector<6x64xf32>
    %63 = arith.subf %55, %62 : vector<6x64xf32>
    %64 = arith.mulf %63, %63 : vector<6x64xf32>
    %cst_23 = arith.constant dense<0.000000e+00> : vector<64xf32>
    %65 = vector.multi_reduction <add>, %64, %cst_23 [0] : vector<6x64xf32> to vector<64xf32>
    %66 = vector.shape_cast %65 : vector<64xf32> to vector<1x64xf32>
    %cst_24 = arith.constant 6.000000e+00 : f32
    %67 = vector.broadcast %cst_24 : f32 to vector<1x64xf32>
    %68 = arith.divf %66, %67 : vector<1x64xf32>
    %cst_25 = arith.constant 9.99999974E-6 : f32
    %69 = vector.broadcast %cst_25 : f32 to vector<1x64xf32>
    %70 = arith.addf %68, %69 : vector<1x64xf32>
    %71 = math.rsqrt %70 : vector<1x64xf32>
    %72 = vector.broadcast %71 : vector<1x64xf32> to vector<6x64xf32>
    %73 = arith.mulf %63, %72 : vector<6x64xf32>
    %74 = vector.broadcast %56 : vector<1x64xf32> to vector<6x64xf32>
    %75 = arith.mulf %73, %74 : vector<6x64xf32>
    %76 = vector.broadcast %57 : vector<1x64xf32> to vector<6x64xf32>
    %77 = arith.addf %75, %76 : vector<6x64xf32>
    %cst_26 = arith.constant 0.000000e+00 : f32
    %78 = vector.broadcast %cst_26 : f32 to vector<6x64xf32>
    %79 = arith.cmpf oge, %77, %78 : vector<6x64xf32>
    %cst_27 = arith.constant 0.00999999977 : f32
    %80 = vector.broadcast %cst_27 : f32 to vector<6x64xf32>
    %81 = arith.mulf %80, %77 : vector<6x64xf32>
    %82 = arith.select %79, %77, %81 : vector<6x64xi1>, vector<6x64xf32>
    %83 = vector.extract_strided_slice %82 {offsets = [0, 0], sizes = [1, 64], strides = [1, 1]} : vector<6x64xf32> to vector<1x64xf32>
    %c0_28 = arith.constant 0 : index
    %c0_29 = arith.constant 0 : index
    %84 = vector.load %arg52[%c0_28, %c0_29] : memref<1x384xf32, #tpu.memory_space<vmem>>, vector<1x64xf32>
    tpu.vector_store %arg52[%c0_28, %c0_29], %83 {strides = array<i32>} : memref<1x384xf32, #tpu.memory_space<vmem>>, vector<1x64xf32>,
    %85 = vector.extract_strided_slice %82 {offsets = [1, 0], sizes = [1, 64], strides = [1, 1]} : vector<6x64xf32> to vector<1x64xf32>
    %c0_30 = arith.constant 0 : index
    %c64 = arith.constant 64 : index
    %86 = vector.load %arg52[%c0_30, %c64] : memref<1x384xf32, #tpu.memory_space<vmem>>, vector<1x64xf32>
    tpu.vector_store %arg52[%c0_30, %c64], %85 {strides = array<i32>} : memref<1x384xf32, #tpu.memory_space<vmem>>, vector<1x64xf32>,
    %87 = vector.extract_strided_slice %82 {offsets = [2, 0], sizes = [1, 64], strides = [1, 1]} : vector<6x64xf32> to vector<1x64xf32>
    %c0_31 = arith.constant 0 : index
    %c128 = arith.constant 128 : index
    %88 = vector.load %arg52[%c0_31, %c128] : memref<1x384xf32, #tpu.memory_space<vmem>>, vector<1x64xf32>
    tpu.vector_store %arg52[%c0_31, %c128], %87 {strides = array<i32>} : memref<1x384xf32, #tpu.memory_space<vmem>>, vector<1x64xf32>,
    %89 = vector.extract_strided_slice %82 {offsets = [3, 0], sizes = [1, 64], strides = [1, 1]} : vector<6x64xf32> to vector<1x64xf32>
    %c0_32 = arith.constant 0 : index
    %c192 = arith.constant 192 : index
    %90 = vector.load %arg52[%c0_32, %c192] : memref<1x384xf32, #tpu.memory_space<vmem>>, vector<1x64xf32>
    tpu.vector_store %arg52[%c0_32, %c192], %89 {strides = array<i32>} : memref<1x384xf32, #tpu.memory_space<vmem>>, vector<1x64xf32>,
    %91 = vector.extract_strided_slice %82 {offsets = [4, 0], sizes = [1, 64], strides = [1, 1]} : vector<6x64xf32> to vector<1x64xf32>
    %c0_33 = arith.constant 0 : index
    %c256 = arith.constant 256 : index
    %92 = vector.load %arg52[%c0_33, %c256] : memref<1x384xf32, #tpu.memory_space<vmem>>, vector<1x64xf32>
    tpu.vector_store %arg52[%c0_33, %c256], %91 {strides = array<i32>} : memref<1x384xf32, #tpu.memory_space<vmem>>, vector<1x64xf32>,
    %93 = vector.extract_strided_slice %82 {offsets = [5, 0], sizes = [1, 64], strides = [1, 1]} : vector<6x64xf32> to vector<1x64xf32>
    %c0_34 = arith.constant 0 : index
    %c320 = arith.constant 320 : index
    %94 = vector.load %arg52[%c0_34, %c320] : memref<1x384xf32, #tpu.memory_space<vmem>>, vector<1x64xf32>
    tpu.vector_store %arg52[%c0_34, %c320], %93 {strides = array<i32>} : memref<1x384xf32, #tpu.memory_space<vmem>>, vector<1x64xf32>,
    %c0_35 = arith.constant 0 : index
    %c0_36 = arith.constant 0 : index
    %95 = vector.load %arg52[%c0_35, %c0_36] : memref<1x384xf32, #tpu.memory_space<vmem>>, vector<1x384xf32>
    %c0_37 = arith.constant 0 : index
    %c0_38 = arith.constant 0 : index
    %96 = vector.load %arg6[%c0_37, %c0_38] : memref<384x192xf32, #tpu.memory_space<vmem>>, vector<384x192xf32>
    %cst_39 = arith.constant dense<0.000000e+00> : vector<1x192xf32>
    %97 = tpu.matmul %95, %96, %cst_39 {dimension_numbers = #tpu.dot_dimension_numbers<[1], [0], [0], [1], [0, 0, 1, 1], [], []>} : vector<1x384xf32>, vector<384x192xf32>, vector<1x192xf32> -> vector<1x192xf32>
    %c0_40 = arith.constant 0 : index
    %c0_41 = arith.constant 0 : index
    %98 = vector.load %arg51[%c0_40, %c0_41] : memref<6x256xf32, #tpu.memory_space<vmem>>, vector<6x2xf32>
    tpu.vector_store %arg51[%c0_40, %c0_41], %16 {strides = array<i32>} : memref<6x256xf32, #tpu.memory_space<vmem>>, vector<6x2xf32>,
    %99 = vector.extract_strided_slice %97 {offsets = [0, 0], sizes = [1, 32], strides = [1, 1]} : vector<1x192xf32> to vector<1x32xf32>
    %c0_42 = arith.constant 0 : index
    %c2 = arith.constant 2 : index
    %100 = vector.load %arg51[%c0_42, %c2] : memref<6x256xf32, #tpu.memory_space<vmem>>, vector<1x32xf32>
    tpu.vector_store %arg51[%c0_42, %c2], %99 {strides = array<i32>} : memref<6x256xf32, #tpu.memory_space<vmem>>, vector<1x32xf32>,
    %101 = vector.extract_strided_slice %97 {offsets = [0, 32], sizes = [1, 32], strides = [1, 1]} : vector<1x192xf32> to vector<1x32xf32>
    %c1 = arith.constant 1 : index
    %c2_43 = arith.constant 2 : index
    %102 = vector.load %arg51[%c1, %c2_43] : memref<6x256xf32, #tpu.memory_space<vmem>>, vector<1x32xf32>
    tpu.vector_store %arg51[%c1, %c2_43], %101 {strides = array<i32>} : memref<6x256xf32, #tpu.memory_space<vmem>>, vector<1x32xf32>,
    %103 = vector.extract_strided_slice %97 {offsets = [0, 64], sizes = [1, 32], strides = [1, 1]} : vector<1x192xf32> to vector<1x32xf32>
    %c2_44 = arith.constant 2 : index
    %c2_45 = arith.constant 2 : index
    %104 = vector.load %arg51[%c2_44, %c2_45] : memref<6x256xf32, #tpu.memory_space<vmem>>, vector<1x32xf32>
    tpu.vector_store %arg51[%c2_44, %c2_45], %103 {strides = array<i32>} : memref<6x256xf32, #tpu.memory_space<vmem>>, vector<1x32xf32>,
    %105 = vector.extract_strided_slice %97 {offsets = [0, 96], sizes = [1, 32], strides = [1, 1]} : vector<1x192xf32> to vector<1x32xf32>
    %c3 = arith.constant 3 : index
    %c2_46 = arith.constant 2 : index
    %106 = vector.load %arg51[%c3, %c2_46] : memref<6x256xf32, #tpu.memory_space<vmem>>, vector<1x32xf32>
    tpu.vector_store %arg51[%c3, %c2_46], %105 {strides = array<i32>} : memref<6x256xf32, #tpu.memory_space<vmem>>, vector<1x32xf32>,
    %107 = vector.extract_strided_slice %97 {offsets = [0, 128], sizes = [1, 32], strides = [1, 1]} : vector<1x192xf32> to vector<1x32xf32>
    %c4 = arith.constant 4 : index
    %c2_47 = arith.constant 2 : index
    %108 = vector.load %arg51[%c4, %c2_47] : memref<6x256xf32, #tpu.memory_space<vmem>>, vector<1x32xf32>
    tpu.vector_store %arg51[%c4, %c2_47], %107 {strides = array<i32>} : memref<6x256xf32, #tpu.memory_space<vmem>>, vector<1x32xf32>,
    %109 = vector.extract_strided_slice %97 {offsets = [0, 160], sizes = [1, 32], strides = [1, 1]} : vector<1x192xf32> to vector<1x32xf32>
    %c5 = arith.constant 5 : index
    %c2_48 = arith.constant 2 : index
    %110 = vector.load %arg51[%c5, %c2_48] : memref<6x256xf32, #tpu.memory_space<vmem>>, vector<1x32xf32>
    tpu.vector_store %arg51[%c5, %c2_48], %109 {strides = array<i32>} : memref<6x256xf32, #tpu.memory_space<vmem>>, vector<1x32xf32>,
    %c0_49 = arith.constant 0 : index
    %c0_50 = arith.constant 0 : index
    %111 = vector.load %arg51[%c0_49, %c0_50] : memref<6x256xf32, #tpu.memory_space<vmem>>, vector<6x34xf32>
    %c0_51 = arith.constant 0 : index
    %c0_52 = arith.constant 0 : index
    %112 = vector.load %arg31[%c0_51, %c0_52] : memref<1x34xf32, #tpu.memory_space<vmem>>, vector<1x34xf32>
    %c0_53 = arith.constant 0 : index
    %c0_54 = arith.constant 0 : index
    %113 = vector.load %arg32[%c0_53, %c0_54] : memref<1x34xf32, #tpu.memory_space<vmem>>, vector<1x34xf32>
    %cst_55 = arith.constant dense<0.000000e+00> : vector<34xf32>
    %114 = vector.multi_reduction <add>, %111, %cst_55 [0] : vector<6x34xf32> to vector<34xf32>
    %115 = vector.shape_cast %114 : vector<34xf32> to vector<1x34xf32>
    %cst_56 = arith.constant 6.000000e+00 : f32
    %116 = vector.broadcast %cst_56 : f32 to vector<1x34xf32>
    %117 = arith.divf %115, %116 : vector<1x34xf32>
    %118 = vector.broadcast %117 : vector<1x34xf32> to vector<6x34xf32>
    %119 = arith.subf %111, %118 : vector<6x34xf32>
    %120 = arith.mulf %119, %119 : vector<6x34xf32>
    %cst_57 = arith.constant dense<0.000000e+00> : vector<34xf32>
    %121 = vector.multi_reduction <add>, %120, %cst_57 [0] : vector<6x34xf32> to vector<34xf32>
    %122 = vector.shape_cast %121 : vector<34xf32> to vector<1x34xf32>
    %cst_58 = arith.constant 6.000000e+00 : f32
    %123 = vector.broadcast %cst_58 : f32 to vector<1x34xf32>
    %124 = arith.divf %122, %123 : vector<1x34xf32>
    %cst_59 = arith.constant 9.99999974E-6 : f32
    %125 = vector.broadcast %cst_59 : f32 to vector<1x34xf32>
    %126 = arith.addf %124, %125 : vector<1x34xf32>
    %127 = math.rsqrt %126 : vector<1x34xf32>
    %128 = vector.broadcast %127 : vector<1x34xf32> to vector<6x34xf32>
    %129 = arith.mulf %119, %128 : vector<6x34xf32>
    %130 = vector.broadcast %112 : vector<1x34xf32> to vector<6x34xf32>
    %131 = arith.mulf %129, %130 : vector<6x34xf32>
    %132 = vector.broadcast %113 : vector<1x34xf32> to vector<6x34xf32>
    %133 = arith.addf %131, %132 : vector<6x34xf32>
    %cst_60 = arith.constant 0.000000e+00 : f32
    %134 = vector.broadcast %cst_60 : f32 to vector<6x34xf32>
    %135 = arith.cmpf oge, %133, %134 : vector<6x34xf32>
    %cst_61 = arith.constant 0.00999999977 : f32
    %136 = vector.broadcast %cst_61 : f32 to vector<6x34xf32>
    %137 = arith.mulf %136, %133 : vector<6x34xf32>
    %138 = arith.select %135, %133, %137 : vector<6x34xi1>, vector<6x34xf32>
    %c0_62 = arith.constant 0 : index
    %c0_63 = arith.constant 0 : index
    %139 = vector.load %arg33[%c0_62, %c0_63] : memref<34x2xf32, #tpu.memory_space<vmem>>, vector<34x2xf32>
    %cst_64 = arith.constant dense<0.000000e+00> : vector<6x2xf32>
    %140 = tpu.matmul %138, %139, %cst_64 {dimension_numbers = #tpu.dot_dimension_numbers<[1], [0], [0], [1], [0, 0, 1, 1], [], []>} : vector<6x34xf32>, vector<34x2xf32>, vector<6x2xf32> -> vector<6x2xf32>
    %c0_65 = arith.constant 0 : index
    %c0_66 = arith.constant 0 : index
    %141 = vector.load %arg7[%c0_65, %c0_66] : memref<1x2xf32, #tpu.memory_space<vmem>>, vector<1x2xf32>
    %c0_67 = arith.constant 0 : index
    %c0_68 = arith.constant 0 : index
    %142 = vector.load %arg8[%c0_67, %c0_68] : memref<1x2xf32, #tpu.memory_space<vmem>>, vector<1x2xf32>
    %cst_69 = arith.constant dense<0.000000e+00> : vector<2xf32>
    %143 = vector.multi_reduction <add>, %140, %cst_69 [0] : vector<6x2xf32> to vector<2xf32>
    %144 = vector.shape_cast %143 : vector<2xf32> to vector<1x2xf32>
    %cst_70 = arith.constant 6.000000e+00 : f32
    %145 = vector.broadcast %cst_70 : f32 to vector<1x2xf32>
    %146 = arith.divf %144, %145 : vector<1x2xf32>
    %147 = vector.broadcast %146 : vector<1x2xf32> to vector<6x2xf32>
    %148 = arith.subf %140, %147 : vector<6x2xf32>
    %149 = arith.mulf %148, %148 : vector<6x2xf32>
    %cst_71 = arith.constant dense<0.000000e+00> : vector<2xf32>
    %150 = vector.multi_reduction <add>, %149, %cst_71 [0] : vector<6x2xf32> to vector<2xf32>
    %151 = vector.shape_cast %150 : vector<2xf32> to vector<1x2xf32>
    %cst_72 = arith.constant 6.000000e+00 : f32
    %152 = vector.broadcast %cst_72 : f32 to vector<1x2xf32>
    %153 = arith.divf %151, %152 : vector<1x2xf32>
    %cst_73 = arith.constant 9.99999974E-6 : f32
    %154 = vector.broadcast %cst_73 : f32 to vector<1x2xf32>
    %155 = arith.addf %153, %154 : vector<1x2xf32>
    %156 = math.rsqrt %155 : vector<1x2xf32>
    %157 = vector.broadcast %156 : vector<1x2xf32> to vector<6x2xf32>
    %158 = arith.mulf %148, %157 : vector<6x2xf32>
    %159 = vector.broadcast %141 : vector<1x2xf32> to vector<6x2xf32>
    %160 = arith.mulf %158, %159 : vector<6x2xf32>
    %161 = vector.broadcast %142 : vector<1x2xf32> to vector<6x2xf32>
    %162 = arith.addf %160, %161 : vector<6x2xf32>
    %cst_74 = arith.constant 0.000000e+00 : f32
    %163 = vector.broadcast %cst_74 : f32 to vector<6x2xf32>
    %164 = arith.cmpf oge, %162, %163 : vector<6x2xf32>
    %cst_75 = arith.constant 0.00999999977 : f32
    %165 = vector.broadcast %cst_75 : f32 to vector<6x2xf32>
    %166 = arith.mulf %165, %162 : vector<6x2xf32>
    %167 = arith.select %164, %162, %166 : vector<6x2xi1>, vector<6x2xf32>
    %c0_76 = arith.constant 0 : index
    %c0_77 = arith.constant 0 : index
    %168 = vector.load %arg9[%c0_76, %c0_77] : memref<2x64xf32, #tpu.memory_space<vmem>>, vector<2x64xf32>
    %169 = vector.extract_strided_slice %167 {offsets = [0, 0], sizes = [6, 1], strides = [1, 1]} : vector<6x2xf32> to vector<6x1xf32>
    %170 = vector.extract_strided_slice %168 {offsets = [0, 0], sizes = [1, 64], strides = [1, 1]} : vector<2x64xf32> to vector<1x64xf32>
    %171 = vector.broadcast %169 : vector<6x1xf32> to vector<6x64xf32>
    %172 = vector.broadcast %170 : vector<1x64xf32> to vector<6x64xf32>
    %173 = arith.mulf %171, %172 : vector<6x64xf32>
    %174 = vector.extract_strided_slice %167 {offsets = [0, 1], sizes = [6, 1], strides = [1, 1]} : vector<6x2xf32> to vector<6x1xf32>
    %175 = vector.extract_strided_slice %168 {offsets = [1, 0], sizes = [1, 64], strides = [1, 1]} : vector<2x64xf32> to vector<1x64xf32>
    %176 = vector.broadcast %174 : vector<6x1xf32> to vector<6x64xf32>
    %177 = vector.broadcast %175 : vector<1x64xf32> to vector<6x64xf32>
    %178 = arith.mulf %176, %177 : vector<6x64xf32>
    %179 = arith.addf %173, %178 : vector<6x64xf32>
    %c0_78 = arith.constant 0 : index
    %c0_79 = arith.constant 0 : index
    %180 = vector.load %arg10[%c0_78, %c0_79] : memref<1x64xf32, #tpu.memory_space<vmem>>, vector<1x64xf32>
    %c0_80 = arith.constant 0 : index
    %c0_81 = arith.constant 0 : index
    %181 = vector.load %arg11[%c0_80, %c0_81] : memref<1x64xf32, #tpu.memory_space<vmem>>, vector<1x64xf32>
    %cst_82 = arith.constant dense<0.000000e+00> : vector<64xf32>
    %182 = vector.multi_reduction <add>, %179, %cst_82 [0] : vector<6x64xf32> to vector<64xf32>
    %183 = vector.shape_cast %182 : vector<64xf32> to vector<1x64xf32>
    %cst_83 = arith.constant 6.000000e+00 : f32
    %184 = vector.broadcast %cst_83 : f32 to vector<1x64xf32>
    %185 = arith.divf %183, %184 : vector<1x64xf32>
    %186 = vector.broadcast %185 : vector<1x64xf32> to vector<6x64xf32>
    %187 = arith.subf %179, %186 : vector<6x64xf32>
    %188 = arith.mulf %187, %187 : vector<6x64xf32>
    %cst_84 = arith.constant dense<0.000000e+00> : vector<64xf32>
    %189 = vector.multi_reduction <add>, %188, %cst_84 [0] : vector<6x64xf32> to vector<64xf32>
    %190 = vector.shape_cast %189 : vector<64xf32> to vector<1x64xf32>
    %cst_85 = arith.constant 6.000000e+00 : f32
    %191 = vector.broadcast %cst_85 : f32 to vector<1x64xf32>
    %192 = arith.divf %190, %191 : vector<1x64xf32>
    %cst_86 = arith.constant 9.99999974E-6 : f32
    %193 = vector.broadcast %cst_86 : f32 to vector<1x64xf32>
    %194 = arith.addf %192, %193 : vector<1x64xf32>
    %195 = math.rsqrt %194 : vector<1x64xf32>
    %196 = vector.broadcast %195 : vector<1x64xf32> to vector<6x64xf32>
    %197 = arith.mulf %187, %196 : vector<6x64xf32>
    %198 = vector.broadcast %180 : vector<1x64xf32> to vector<6x64xf32>
    %199 = arith.mulf %197, %198 : vector<6x64xf32>
    %200 = vector.broadcast %181 : vector<1x64xf32> to vector<6x64xf32>
    %201 = arith.addf %199, %200 : vector<6x64xf32>
    %cst_87 = arith.constant 0.000000e+00 : f32
    %202 = vector.broadcast %cst_87 : f32 to vector<6x64xf32>
    %203 = arith.cmpf oge, %201, %202 : vector<6x64xf32>
    %cst_88 = arith.constant 0.00999999977 : f32
    %204 = vector.broadcast %cst_88 : f32 to vector<6x64xf32>
    %205 = arith.mulf %204, %201 : vector<6x64xf32>
    %206 = arith.select %203, %201, %205 : vector<6x64xi1>, vector<6x64xf32>
    %207 = vector.extract_strided_slice %206 {offsets = [0, 0], sizes = [1, 64], strides = [1, 1]} : vector<6x64xf32> to vector<1x64xf32>
    %c0_89 = arith.constant 0 : index
    %c0_90 = arith.constant 0 : index
    %208 = vector.load %arg52[%c0_89, %c0_90] : memref<1x384xf32, #tpu.memory_space<vmem>>, vector<1x64xf32>
    tpu.vector_store %arg52[%c0_89, %c0_90], %207 {strides = array<i32>} : memref<1x384xf32, #tpu.memory_space<vmem>>, vector<1x64xf32>,
    %209 = vector.extract_strided_slice %206 {offsets = [1, 0], sizes = [1, 64], strides = [1, 1]} : vector<6x64xf32> to vector<1x64xf32>
    %c0_91 = arith.constant 0 : index
    %c64_92 = arith.constant 64 : index
    %210 = vector.load %arg52[%c0_91, %c64_92] : memref<1x384xf32, #tpu.memory_space<vmem>>, vector<1x64xf32>
    tpu.vector_store %arg52[%c0_91, %c64_92], %209 {strides = array<i32>} : memref<1x384xf32, #tpu.memory_space<vmem>>, vector<1x64xf32>,
    %211 = vector.extract_strided_slice %206 {offsets = [2, 0], sizes = [1, 64], strides = [1, 1]} : vector<6x64xf32> to vector<1x64xf32>
    %c0_93 = arith.constant 0 : index
    %c128_94 = arith.constant 128 : index
    %212 = vector.load %arg52[%c0_93, %c128_94] : memref<1x384xf32, #tpu.memory_space<vmem>>, vector<1x64xf32>
    tpu.vector_store %arg52[%c0_93, %c128_94], %211 {strides = array<i32>} : memref<1x384xf32, #tpu.memory_space<vmem>>, vector<1x64xf32>,
    %213 = vector.extract_strided_slice %206 {offsets = [3, 0], sizes = [1, 64], strides = [1, 1]} : vector<6x64xf32> to vector<1x64xf32>
    %c0_95 = arith.constant 0 : index
    %c192_96 = arith.constant 192 : index
    %214 = vector.load %arg52[%c0_95, %c192_96] : memref<1x384xf32, #tpu.memory_space<vmem>>, vector<1x64xf32>
    tpu.vector_store %arg52[%c0_95, %c192_96], %213 {strides = array<i32>} : memref<1x384xf32, #tpu.memory_space<vmem>>, vector<1x64xf32>,
    %215 = vector.extract_strided_slice %206 {offsets = [4, 0], sizes = [1, 64], strides = [1, 1]} : vector<6x64xf32> to vector<1x64xf32>
    %c0_97 = arith.constant 0 : index
    %c256_98 = arith.constant 256 : index
    %216 = vector.load %arg52[%c0_97, %c256_98] : memref<1x384xf32, #tpu.memory_space<vmem>>, vector<1x64xf32>
    tpu.vector_store %arg52[%c0_97, %c256_98], %215 {strides = array<i32>} : memref<1x384xf32, #tpu.memory_space<vmem>>, vector<1x64xf32>,
    %217 = vector.extract_strided_slice %206 {offsets = [5, 0], sizes = [1, 64], strides = [1, 1]} : vector<6x64xf32> to vector<1x64xf32>
    %c0_99 = arith.constant 0 : index
    %c320_100 = arith.constant 320 : index
    %218 = vector.load %arg52[%c0_99, %c320_100] : memref<1x384xf32, #tpu.memory_space<vmem>>, vector<1x64xf32>
    tpu.vector_store %arg52[%c0_99, %c320_100], %217 {strides = array<i32>} : memref<1x384xf32, #tpu.memory_space<vmem>>, vector<1x64xf32>,
    %c0_101 = arith.constant 0 : index
    %c0_102 = arith.constant 0 : index
    %219 = vector.load %arg52[%c0_101, %c0_102] : memref<1x384xf32, #tpu.memory_space<vmem>>, vector<1x384xf32>
    %c0_103 = arith.constant 0 : index
    %c0_104 = arith.constant 0 : index
    %220 = vector.load %arg12[%c0_103, %c0_104] : memref<384x192xf32, #tpu.memory_space<vmem>>, vector<384x192xf32>
    %cst_105 = arith.constant dense<0.000000e+00> : vector<1x192xf32>
    %221 = tpu.matmul %219, %220, %cst_105 {dimension_numbers = #tpu.dot_dimension_numbers<[1], [0], [0], [1], [0, 0, 1, 1], [], []>} : vector<1x384xf32>, vector<384x192xf32>, vector<1x192xf32> -> vector<1x192xf32>
    %c0_106 = arith.constant 0 : index
    %c34 = arith.constant 34 : index
    %222 = vector.load %arg51[%c0_106, %c34] : memref<6x256xf32, #tpu.memory_space<vmem>>, vector<6x2xf32>
    tpu.vector_store %arg51[%c0_106, %c34], %140 {strides = array<i32>} : memref<6x256xf32, #tpu.memory_space<vmem>>, vector<6x2xf32>,
    %223 = vector.extract_strided_slice %221 {offsets = [0, 0], sizes = [1, 32], strides = [1, 1]} : vector<1x192xf32> to vector<1x32xf32>
    %c0_107 = arith.constant 0 : index
    %c36 = arith.constant 36 : index
    %224 = vector.load %arg51[%c0_107, %c36] : memref<6x256xf32, #tpu.memory_space<vmem>>, vector<1x32xf32>
    tpu.vector_store %arg51[%c0_107, %c36], %223 {strides = array<i32>} : memref<6x256xf32, #tpu.memory_space<vmem>>, vector<1x32xf32>,
    %225 = vector.extract_strided_slice %221 {offsets = [0, 32], sizes = [1, 32], strides = [1, 1]} : vector<1x192xf32> to vector<1x32xf32>
    %c1_108 = arith.constant 1 : index
    %c36_109 = arith.constant 36 : index
    %226 = vector.load %arg51[%c1_108, %c36_109] : memref<6x256xf32, #tpu.memory_space<vmem>>, vector<1x32xf32>
    tpu.vector_store %arg51[%c1_108, %c36_109], %225 {strides = array<i32>} : memref<6x256xf32, #tpu.memory_space<vmem>>, vector<1x32xf32>,
    %227 = vector.extract_strided_slice %221 {offsets = [0, 64], sizes = [1, 32], strides = [1, 1]} : vector<1x192xf32> to vector<1x32xf32>
    %c2_110 = arith.constant 2 : index
    %c36_111 = arith.constant 36 : index
    %228 = vector.load %arg51[%c2_110, %c36_111] : memref<6x256xf32, #tpu.memory_space<vmem>>, vector<1x32xf32>
    tpu.vector_store %arg51[%c2_110, %c36_111], %227 {strides = array<i32>} : memref<6x256xf32, #tpu.memory_space<vmem>>, vector<1x32xf32>,
    %229 = vector.extract_strided_slice %221 {offsets = [0, 96], sizes = [1, 32], strides = [1, 1]} : vector<1x192xf32> to vector<1x32xf32>
    %c3_112 = arith.constant 3 : index
    %c36_113 = arith.constant 36 : index
    %230 = vector.load %arg51[%c3_112, %c36_113] : memref<6x256xf32, #tpu.memory_space<vmem>>, vector<1x32xf32>
    tpu.vector_store %arg51[%c3_112, %c36_113], %229 {strides = array<i32>} : memref<6x256xf32, #tpu.memory_space<vmem>>, vector<1x32xf32>,
    %231 = vector.extract_strided_slice %221 {offsets = [0, 128], sizes = [1, 32], strides = [1, 1]} : vector<1x192xf32> to vector<1x32xf32>
    %c4_114 = arith.constant 4 : index
    %c36_115 = arith.constant 36 : index
    %232 = vector.load %arg51[%c4_114, %c36_115] : memref<6x256xf32, #tpu.memory_space<vmem>>, vector<1x32xf32>
    tpu.vector_store %arg51[%c4_114, %c36_115], %231 {strides = array<i32>} : memref<6x256xf32, #tpu.memory_space<vmem>>, vector<1x32xf32>,
    %233 = vector.extract_strided_slice %221 {offsets = [0, 160], sizes = [1, 32], strides = [1, 1]} : vector<1x192xf32> to vector<1x32xf32>
    %c5_116 = arith.constant 5 : index
    %c36_117 = arith.constant 36 : index
    %234 = vector.load %arg51[%c5_116, %c36_117] : memref<6x256xf32, #tpu.memory_space<vmem>>, vector<1x32xf32>
    tpu.vector_store %arg51[%c5_116, %c36_117], %233 {strides = array<i32>} : memref<6x256xf32, #tpu.memory_space<vmem>>, vector<1x32xf32>,
    %c0_118 = arith.constant 0 : index
    %c0_119 = arith.constant 0 : index
    %235 = vector.load %arg51[%c0_118, %c0_119] : memref<6x256xf32, #tpu.memory_space<vmem>>, vector<6x68xf32>
    %c0_120 = arith.constant 0 : index
    %c0_121 = arith.constant 0 : index
    %236 = vector.load %arg34[%c0_120, %c0_121] : memref<1x68xf32, #tpu.memory_space<vmem>>, vector<1x68xf32>
    %c0_122 = arith.constant 0 : index
    %c0_123 = arith.constant 0 : index
    %237 = vector.load %arg35[%c0_122, %c0_123] : memref<1x68xf32, #tpu.memory_space<vmem>>, vector<1x68xf32>
    %cst_124 = arith.constant dense<0.000000e+00> : vector<68xf32>
    %238 = vector.multi_reduction <add>, %235, %cst_124 [0] : vector<6x68xf32> to vector<68xf32>
    %239 = vector.shape_cast %238 : vector<68xf32> to vector<1x68xf32>
    %cst_125 = arith.constant 6.000000e+00 : f32
    %240 = vector.broadcast %cst_125 : f32 to vector<1x68xf32>
    %241 = arith.divf %239, %240 : vector<1x68xf32>
    %242 = vector.broadcast %241 : vector<1x68xf32> to vector<6x68xf32>
    %243 = arith.subf %235, %242 : vector<6x68xf32>
    %244 = arith.mulf %243, %243 : vector<6x68xf32>
    %cst_126 = arith.constant dense<0.000000e+00> : vector<68xf32>
    %245 = vector.multi_reduction <add>, %244, %cst_126 [0] : vector<6x68xf32> to vector<68xf32>
    %246 = vector.shape_cast %245 : vector<68xf32> to vector<1x68xf32>
    %cst_127 = arith.constant 6.000000e+00 : f32
    %247 = vector.broadcast %cst_127 : f32 to vector<1x68xf32>
    %248 = arith.divf %246, %247 : vector<1x68xf32>
    %cst_128 = arith.constant 9.99999974E-6 : f32
    %249 = vector.broadcast %cst_128 : f32 to vector<1x68xf32>
    %250 = arith.addf %248, %249 : vector<1x68xf32>
    %251 = math.rsqrt %250 : vector<1x68xf32>
    %252 = vector.broadcast %251 : vector<1x68xf32> to vector<6x68xf32>
    %253 = arith.mulf %243, %252 : vector<6x68xf32>
    %254 = vector.broadcast %236 : vector<1x68xf32> to vector<6x68xf32>
    %255 = arith.mulf %253, %254 : vector<6x68xf32>
    %256 = vector.broadcast %237 : vector<1x68xf32> to vector<6x68xf32>
    %257 = arith.addf %255, %256 : vector<6x68xf32>
    %cst_129 = arith.constant 0.000000e+00 : f32
    %258 = vector.broadcast %cst_129 : f32 to vector<6x68xf32>
    %259 = arith.cmpf oge, %257, %258 : vector<6x68xf32>
    %cst_130 = arith.constant 0.00999999977 : f32
    %260 = vector.broadcast %cst_130 : f32 to vector<6x68xf32>
    %261 = arith.mulf %260, %257 : vector<6x68xf32>
    %262 = arith.select %259, %257, %261 : vector<6x68xi1>, vector<6x68xf32>
    %c0_131 = arith.constant 0 : index
    %c0_132 = arith.constant 0 : index
    %263 = vector.load %arg36[%c0_131, %c0_132] : memref<68x2xf32, #tpu.memory_space<vmem>>, vector<68x2xf32>
    %cst_133 = arith.constant dense<0.000000e+00> : vector<6x2xf32>
    %264 = tpu.matmul %262, %263, %cst_133 {dimension_numbers = #tpu.dot_dimension_numbers<[1], [0], [0], [1], [0, 0, 1, 1], [], []>} : vector<6x68xf32>, vector<68x2xf32>, vector<6x2xf32> -> vector<6x2xf32>
    %c0_134 = arith.constant 0 : index
    %c0_135 = arith.constant 0 : index
    %265 = vector.load %arg13[%c0_134, %c0_135] : memref<1x2xf32, #tpu.memory_space<vmem>>, vector<1x2xf32>
    %c0_136 = arith.constant 0 : index
    %c0_137 = arith.constant 0 : index
    %266 = vector.load %arg14[%c0_136, %c0_137] : memref<1x2xf32, #tpu.memory_space<vmem>>, vector<1x2xf32>
    %cst_138 = arith.constant dense<0.000000e+00> : vector<2xf32>
    %267 = vector.multi_reduction <add>, %264, %cst_138 [0] : vector<6x2xf32> to vector<2xf32>
    %268 = vector.shape_cast %267 : vector<2xf32> to vector<1x2xf32>
    %cst_139 = arith.constant 6.000000e+00 : f32
    %269 = vector.broadcast %cst_139 : f32 to vector<1x2xf32>
    %270 = arith.divf %268, %269 : vector<1x2xf32>
    %271 = vector.broadcast %270 : vector<1x2xf32> to vector<6x2xf32>
    %272 = arith.subf %264, %271 : vector<6x2xf32>
    %273 = arith.mulf %272, %272 : vector<6x2xf32>
    %cst_140 = arith.constant dense<0.000000e+00> : vector<2xf32>
    %274 = vector.multi_reduction <add>, %273, %cst_140 [0] : vector<6x2xf32> to vector<2xf32>
    %275 = vector.shape_cast %274 : vector<2xf32> to vector<1x2xf32>
    %cst_141 = arith.constant 6.000000e+00 : f32
    %276 = vector.broadcast %cst_141 : f32 to vector<1x2xf32>
    %277 = arith.divf %275, %276 : vector<1x2xf32>
    %cst_142 = arith.constant 9.99999974E-6 : f32
    %278 = vector.broadcast %cst_142 : f32 to vector<1x2xf32>
    %279 = arith.addf %277, %278 : vector<1x2xf32>
    %280 = math.rsqrt %279 : vector<1x2xf32>
    %281 = vector.broadcast %280 : vector<1x2xf32> to vector<6x2xf32>
    %282 = arith.mulf %272, %281 : vector<6x2xf32>
    %283 = vector.broadcast %265 : vector<1x2xf32> to vector<6x2xf32>
    %284 = arith.mulf %282, %283 : vector<6x2xf32>
    %285 = vector.broadcast %266 : vector<1x2xf32> to vector<6x2xf32>
    %286 = arith.addf %284, %285 : vector<6x2xf32>
    %cst_143 = arith.constant 0.000000e+00 : f32
    %287 = vector.broadcast %cst_143 : f32 to vector<6x2xf32>
    %288 = arith.cmpf oge, %286, %287 : vector<6x2xf32>
    %cst_144 = arith.constant 0.00999999977 : f32
    %289 = vector.broadcast %cst_144 : f32 to vector<6x2xf32>
    %290 = arith.mulf %289, %286 : vector<6x2xf32>
    %291 = arith.select %288, %286, %290 : vector<6x2xi1>, vector<6x2xf32>
    %c0_145 = arith.constant 0 : index
    %c0_146 = arith.constant 0 : index
    %292 = vector.load %arg15[%c0_145, %c0_146] : memref<2x64xf32, #tpu.memory_space<vmem>>, vector<2x64xf32>
    %293 = vector.extract_strided_slice %291 {offsets = [0, 0], sizes = [6, 1], strides = [1, 1]} : vector<6x2xf32> to vector<6x1xf32>
    %294 = vector.extract_strided_slice %292 {offsets = [0, 0], sizes = [1, 64], strides = [1, 1]} : vector<2x64xf32> to vector<1x64xf32>
    %295 = vector.broadcast %293 : vector<6x1xf32> to vector<6x64xf32>
    %296 = vector.broadcast %294 : vector<1x64xf32> to vector<6x64xf32>
    %297 = arith.mulf %295, %296 : vector<6x64xf32>
    %298 = vector.extract_strided_slice %291 {offsets = [0, 1], sizes = [6, 1], strides = [1, 1]} : vector<6x2xf32> to vector<6x1xf32>
    %299 = vector.extract_strided_slice %292 {offsets = [1, 0], sizes = [1, 64], strides = [1, 1]} : vector<2x64xf32> to vector<1x64xf32>
    %300 = vector.broadcast %298 : vector<6x1xf32> to vector<6x64xf32>
    %301 = vector.broadcast %299 : vector<1x64xf32> to vector<6x64xf32>
    %302 = arith.mulf %300, %301 : vector<6x64xf32>
    %303 = arith.addf %297, %302 : vector<6x64xf32>
    %c0_147 = arith.constant 0 : index
    %c0_148 = arith.constant 0 : index
    %304 = vector.load %arg16[%c0_147, %c0_148] : memref<1x64xf32, #tpu.memory_space<vmem>>, vector<1x64xf32>
    %c0_149 = arith.constant 0 : index
    %c0_150 = arith.constant 0 : index
    %305 = vector.load %arg17[%c0_149, %c0_150] : memref<1x64xf32, #tpu.memory_space<vmem>>, vector<1x64xf32>
    %cst_151 = arith.constant dense<0.000000e+00> : vector<64xf32>
    %306 = vector.multi_reduction <add>, %303, %cst_151 [0] : vector<6x64xf32> to vector<64xf32>
    %307 = vector.shape_cast %306 : vector<64xf32> to vector<1x64xf32>
    %cst_152 = arith.constant 6.000000e+00 : f32
    %308 = vector.broadcast %cst_152 : f32 to vector<1x64xf32>
    %309 = arith.divf %307, %308 : vector<1x64xf32>
    %310 = vector.broadcast %309 : vector<1x64xf32> to vector<6x64xf32>
    %311 = arith.subf %303, %310 : vector<6x64xf32>
    %312 = arith.mulf %311, %311 : vector<6x64xf32>
    %cst_153 = arith.constant dense<0.000000e+00> : vector<64xf32>
    %313 = vector.multi_reduction <add>, %312, %cst_153 [0] : vector<6x64xf32> to vector<64xf32>
    %314 = vector.shape_cast %313 : vector<64xf32> to vector<1x64xf32>
    %cst_154 = arith.constant 6.000000e+00 : f32
    %315 = vector.broadcast %cst_154 : f32 to vector<1x64xf32>
    %316 = arith.divf %314, %315 : vector<1x64xf32>
    %cst_155 = arith.constant 9.99999974E-6 : f32
    %317 = vector.broadcast %cst_155 : f32 to vector<1x64xf32>
    %318 = arith.addf %316, %317 : vector<1x64xf32>
    %319 = math.rsqrt %318 : vector<1x64xf32>
    %320 = vector.broadcast %319 : vector<1x64xf32> to vector<6x64xf32>
    %321 = arith.mulf %311, %320 : vector<6x64xf32>
    %322 = vector.broadcast %304 : vector<1x64xf32> to vector<6x64xf32>
    %323 = arith.mulf %321, %322 : vector<6x64xf32>
    %324 = vector.broadcast %305 : vector<1x64xf32> to vector<6x64xf32>
    %325 = arith.addf %323, %324 : vector<6x64xf32>
    %cst_156 = arith.constant 0.000000e+00 : f32
    %326 = vector.broadcast %cst_156 : f32 to vector<6x64xf32>
    %327 = arith.cmpf oge, %325, %326 : vector<6x64xf32>
    %cst_157 = arith.constant 0.00999999977 : f32
    %328 = vector.broadcast %cst_157 : f32 to vector<6x64xf32>
    %329 = arith.mulf %328, %325 : vector<6x64xf32>
    %330 = arith.select %327, %325, %329 : vector<6x64xi1>, vector<6x64xf32>
    %331 = vector.extract_strided_slice %330 {offsets = [0, 0], sizes = [1, 64], strides = [1, 1]} : vector<6x64xf32> to vector<1x64xf32>
    %c0_158 = arith.constant 0 : index
    %c0_159 = arith.constant 0 : index
    %332 = vector.load %arg52[%c0_158, %c0_159] : memref<1x384xf32, #tpu.memory_space<vmem>>, vector<1x64xf32>
    tpu.vector_store %arg52[%c0_158, %c0_159], %331 {strides = array<i32>} : memref<1x384xf32, #tpu.memory_space<vmem>>, vector<1x64xf32>,
    %333 = vector.extract_strided_slice %330 {offsets = [1, 0], sizes = [1, 64], strides = [1, 1]} : vector<6x64xf32> to vector<1x64xf32>
    %c0_160 = arith.constant 0 : index
    %c64_161 = arith.constant 64 : index
    %334 = vector.load %arg52[%c0_160, %c64_161] : memref<1x384xf32, #tpu.memory_space<vmem>>, vector<1x64xf32>
    tpu.vector_store %arg52[%c0_160, %c64_161], %333 {strides = array<i32>} : memref<1x384xf32, #tpu.memory_space<vmem>>, vector<1x64xf32>,
    %335 = vector.extract_strided_slice %330 {offsets = [2, 0], sizes = [1, 64], strides = [1, 1]} : vector<6x64xf32> to vector<1x64xf32>
    %c0_162 = arith.constant 0 : index
    %c128_163 = arith.constant 128 : index
    %336 = vector.load %arg52[%c0_162, %c128_163] : memref<1x384xf32, #tpu.memory_space<vmem>>, vector<1x64xf32>
    tpu.vector_store %arg52[%c0_162, %c128_163], %335 {strides = array<i32>} : memref<1x384xf32, #tpu.memory_space<vmem>>, vector<1x64xf32>,
    %337 = vector.extract_strided_slice %330 {offsets = [3, 0], sizes = [1, 64], strides = [1, 1]} : vector<6x64xf32> to vector<1x64xf32>
    %c0_164 = arith.constant 0 : index
    %c192_165 = arith.constant 192 : index
    %338 = vector.load %arg52[%c0_164, %c192_165] : memref<1x384xf32, #tpu.memory_space<vmem>>, vector<1x64xf32>
    tpu.vector_store %arg52[%c0_164, %c192_165], %337 {strides = array<i32>} : memref<1x384xf32, #tpu.memory_space<vmem>>, vector<1x64xf32>,
    %339 = vector.extract_strided_slice %330 {offsets = [4, 0], sizes = [1, 64], strides = [1, 1]} : vector<6x64xf32> to vector<1x64xf32>
    %c0_166 = arith.constant 0 : index
    %c256_167 = arith.constant 256 : index
    %340 = vector.load %arg52[%c0_166, %c256_167] : memref<1x384xf32, #tpu.memory_space<vmem>>, vector<1x64xf32>
    tpu.vector_store %arg52[%c0_166, %c256_167], %339 {strides = array<i32>} : memref<1x384xf32, #tpu.memory_space<vmem>>, vector<1x64xf32>,
    %341 = vector.extract_strided_slice %330 {offsets = [5, 0], sizes = [1, 64], strides = [1, 1]} : vector<6x64xf32> to vector<1x64xf32>
    %c0_168 = arith.constant 0 : index
    %c320_169 = arith.constant 320 : index
    %342 = vector.load %arg52[%c0_168, %c320_169] : memref<1x384xf32, #tpu.memory_space<vmem>>, vector<1x64xf32>
    tpu.vector_store %arg52[%c0_168, %c320_169], %341 {strides = array<i32>} : memref<1x384xf32, #tpu.memory_space<vmem>>, vector<1x64xf32>,
    %c0_170 = arith.constant 0 : index
    %c0_171 = arith.constant 0 : index
    %343 = vector.load %arg52[%c0_170, %c0_171] : memref<1x384xf32, #tpu.memory_space<vmem>>, vector<1x384xf32>
    %c0_172 = arith.constant 0 : index
    %c0_173 = arith.constant 0 : index
    %344 = vector.load %arg18[%c0_172, %c0_173] : memref<384x192xf32, #tpu.memory_space<vmem>>, vector<384x192xf32>
    %cst_174 = arith.constant dense<0.000000e+00> : vector<1x192xf32>
    %345 = tpu.matmul %343, %344, %cst_174 {dimension_numbers = #tpu.dot_dimension_numbers<[1], [0], [0], [1], [0, 0, 1, 1], [], []>} : vector<1x384xf32>, vector<384x192xf32>, vector<1x192xf32> -> vector<1x192xf32>
    %c0_175 = arith.constant 0 : index
    %c68 = arith.constant 68 : index
    %346 = vector.load %arg51[%c0_175, %c68] : memref<6x256xf32, #tpu.memory_space<vmem>>, vector<6x2xf32>
    tpu.vector_store %arg51[%c0_175, %c68], %264 {strides = array<i32>} : memref<6x256xf32, #tpu.memory_space<vmem>>, vector<6x2xf32>,
    %347 = vector.extract_strided_slice %345 {offsets = [0, 0], sizes = [1, 32], strides = [1, 1]} : vector<1x192xf32> to vector<1x32xf32>
    %c0_176 = arith.constant 0 : index
    %c70 = arith.constant 70 : index
    %348 = vector.load %arg51[%c0_176, %c70] : memref<6x256xf32, #tpu.memory_space<vmem>>, vector<1x32xf32>
    tpu.vector_store %arg51[%c0_176, %c70], %347 {strides = array<i32>} : memref<6x256xf32, #tpu.memory_space<vmem>>, vector<1x32xf32>,
    %349 = vector.extract_strided_slice %345 {offsets = [0, 32], sizes = [1, 32], strides = [1, 1]} : vector<1x192xf32> to vector<1x32xf32>
    %c1_177 = arith.constant 1 : index
    %c70_178 = arith.constant 70 : index
    %350 = vector.load %arg51[%c1_177, %c70_178] : memref<6x256xf32, #tpu.memory_space<vmem>>, vector<1x32xf32>
    tpu.vector_store %arg51[%c1_177, %c70_178], %349 {strides = array<i32>} : memref<6x256xf32, #tpu.memory_space<vmem>>, vector<1x32xf32>,
    %351 = vector.extract_strided_slice %345 {offsets = [0, 64], sizes = [1, 32], strides = [1, 1]} : vector<1x192xf32> to vector<1x32xf32>
    %c2_179 = arith.constant 2 : index
    %c70_180 = arith.constant 70 : index
    %352 = vector.load %arg51[%c2_179, %c70_180] : memref<6x256xf32, #tpu.memory_space<vmem>>, vector<1x32xf32>
    tpu.vector_store %arg51[%c2_179, %c70_180], %351 {strides = array<i32>} : memref<6x256xf32, #tpu.memory_space<vmem>>, vector<1x32xf32>,
    %353 = vector.extract_strided_slice %345 {offsets = [0, 96], sizes = [1, 32], strides = [1, 1]} : vector<1x192xf32> to vector<1x32xf32>
    %c3_181 = arith.constant 3 : index
    %c70_182 = arith.constant 70 : index
    %354 = vector.load %arg51[%c3_181, %c70_182] : memref<6x256xf32, #tpu.memory_space<vmem>>, vector<1x32xf32>
    tpu.vector_store %arg51[%c3_181, %c70_182], %353 {strides = array<i32>} : memref<6x256xf32, #tpu.memory_space<vmem>>, vector<1x32xf32>,
    %355 = vector.extract_strided_slice %345 {offsets = [0, 128], sizes = [1, 32], strides = [1, 1]} : vector<1x192xf32> to vector<1x32xf32>
    %c4_183 = arith.constant 4 : index
    %c70_184 = arith.constant 70 : index
    %356 = vector.load %arg51[%c4_183, %c70_184] : memref<6x256xf32, #tpu.memory_space<vmem>>, vector<1x32xf32>
    tpu.vector_store %arg51[%c4_183, %c70_184], %355 {strides = array<i32>} : memref<6x256xf32, #tpu.memory_space<vmem>>, vector<1x32xf32>,
    %357 = vector.extract_strided_slice %345 {offsets = [0, 160], sizes = [1, 32], strides = [1, 1]} : vector<1x192xf32> to vector<1x32xf32>
    %c5_185 = arith.constant 5 : index
    %c70_186 = arith.constant 70 : index
    %358 = vector.load %arg51[%c5_185, %c70_186] : memref<6x256xf32, #tpu.memory_space<vmem>>, vector<1x32xf32>
    tpu.vector_store %arg51[%c5_185, %c70_186], %357 {strides = array<i32>} : memref<6x256xf32, #tpu.memory_space<vmem>>, vector<1x32xf32>,
    %c0_187 = arith.constant 0 : index
    %c0_188 = arith.constant 0 : index
    %359 = vector.load %arg51[%c0_187, %c0_188] : memref<6x256xf32, #tpu.memory_space<vmem>>, vector<6x102xf32>
    %c0_189 = arith.constant 0 : index
    %c0_190 = arith.constant 0 : index
    %360 = vector.load %arg37[%c0_189, %c0_190] : memref<1x102xf32, #tpu.memory_space<vmem>>, vector<1x102xf32>
    %c0_191 = arith.constant 0 : index
    %c0_192 = arith.constant 0 : index
    %361 = vector.load %arg38[%c0_191, %c0_192] : memref<1x102xf32, #tpu.memory_space<vmem>>, vector<1x102xf32>
    %cst_193 = arith.constant dense<0.000000e+00> : vector<102xf32>
    %362 = vector.multi_reduction <add>, %359, %cst_193 [0] : vector<6x102xf32> to vector<102xf32>
    %363 = vector.shape_cast %362 : vector<102xf32> to vector<1x102xf32>
    %cst_194 = arith.constant 6.000000e+00 : f32
    %364 = vector.broadcast %cst_194 : f32 to vector<1x102xf32>
    %365 = arith.divf %363, %364 : vector<1x102xf32>
    %366 = vector.broadcast %365 : vector<1x102xf32> to vector<6x102xf32>
    %367 = arith.subf %359, %366 : vector<6x102xf32>
    %368 = arith.mulf %367, %367 : vector<6x102xf32>
    %cst_195 = arith.constant dense<0.000000e+00> : vector<102xf32>
    %369 = vector.multi_reduction <add>, %368, %cst_195 [0] : vector<6x102xf32> to vector<102xf32>
    %370 = vector.shape_cast %369 : vector<102xf32> to vector<1x102xf32>
    %cst_196 = arith.constant 6.000000e+00 : f32
    %371 = vector.broadcast %cst_196 : f32 to vector<1x102xf32>
    %372 = arith.divf %370, %371 : vector<1x102xf32>
    %cst_197 = arith.constant 9.99999974E-6 : f32
    %373 = vector.broadcast %cst_197 : f32 to vector<1x102xf32>
    %374 = arith.addf %372, %373 : vector<1x102xf32>
    %375 = math.rsqrt %374 : vector<1x102xf32>
    %376 = vector.broadcast %375 : vector<1x102xf32> to vector<6x102xf32>
    %377 = arith.mulf %367, %376 : vector<6x102xf32>
    %378 = vector.broadcast %360 : vector<1x102xf32> to vector<6x102xf32>
    %379 = arith.mulf %377, %378 : vector<6x102xf32>
    %380 = vector.broadcast %361 : vector<1x102xf32> to vector<6x102xf32>
    %381 = arith.addf %379, %380 : vector<6x102xf32>
    %cst_198 = arith.constant 0.000000e+00 : f32
    %382 = vector.broadcast %cst_198 : f32 to vector<6x102xf32>
    %383 = arith.cmpf oge, %381, %382 : vector<6x102xf32>
    %cst_199 = arith.constant 0.00999999977 : f32
    %384 = vector.broadcast %cst_199 : f32 to vector<6x102xf32>
    %385 = arith.mulf %384, %381 : vector<6x102xf32>
    %386 = arith.select %383, %381, %385 : vector<6x102xi1>, vector<6x102xf32>
    %c0_200 = arith.constant 0 : index
    %c0_201 = arith.constant 0 : index
    %387 = vector.load %arg39[%c0_200, %c0_201] : memref<102x2xf32, #tpu.memory_space<vmem>>, vector<102x2xf32>
    %cst_202 = arith.constant dense<0.000000e+00> : vector<6x2xf32>
    %388 = tpu.matmul %386, %387, %cst_202 {dimension_numbers = #tpu.dot_dimension_numbers<[1], [0], [0], [1], [0, 0, 1, 1], [], []>} : vector<6x102xf32>, vector<102x2xf32>, vector<6x2xf32> -> vector<6x2xf32>
    %c0_203 = arith.constant 0 : index
    %c0_204 = arith.constant 0 : index
    %389 = vector.load %arg19[%c0_203, %c0_204] : memref<1x2xf32, #tpu.memory_space<vmem>>, vector<1x2xf32>
    %c0_205 = arith.constant 0 : index
    %c0_206 = arith.constant 0 : index
    %390 = vector.load %arg20[%c0_205, %c0_206] : memref<1x2xf32, #tpu.memory_space<vmem>>, vector<1x2xf32>
    %cst_207 = arith.constant dense<0.000000e+00> : vector<2xf32>
    %391 = vector.multi_reduction <add>, %388, %cst_207 [0] : vector<6x2xf32> to vector<2xf32>
    %392 = vector.shape_cast %391 : vector<2xf32> to vector<1x2xf32>
    %cst_208 = arith.constant 6.000000e+00 : f32
    %393 = vector.broadcast %cst_208 : f32 to vector<1x2xf32>
    %394 = arith.divf %392, %393 : vector<1x2xf32>
    %395 = vector.broadcast %394 : vector<1x2xf32> to vector<6x2xf32>
    %396 = arith.subf %388, %395 : vector<6x2xf32>
    %397 = arith.mulf %396, %396 : vector<6x2xf32>
    %cst_209 = arith.constant dense<0.000000e+00> : vector<2xf32>
    %398 = vector.multi_reduction <add>, %397, %cst_209 [0] : vector<6x2xf32> to vector<2xf32>
    %399 = vector.shape_cast %398 : vector<2xf32> to vector<1x2xf32>
    %cst_210 = arith.constant 6.000000e+00 : f32
    %400 = vector.broadcast %cst_210 : f32 to vector<1x2xf32>
    %401 = arith.divf %399, %400 : vector<1x2xf32>
    %cst_211 = arith.constant 9.99999974E-6 : f32
    %402 = vector.broadcast %cst_211 : f32 to vector<1x2xf32>
    %403 = arith.addf %401, %402 : vector<1x2xf32>
    %404 = math.rsqrt %403 : vector<1x2xf32>
    %405 = vector.broadcast %404 : vector<1x2xf32> to vector<6x2xf32>
    %406 = arith.mulf %396, %405 : vector<6x2xf32>
    %407 = vector.broadcast %389 : vector<1x2xf32> to vector<6x2xf32>
    %408 = arith.mulf %406, %407 : vector<6x2xf32>
    %409 = vector.broadcast %390 : vector<1x2xf32> to vector<6x2xf32>
    %410 = arith.addf %408, %409 : vector<6x2xf32>
    %cst_212 = arith.constant 0.000000e+00 : f32
    %411 = vector.broadcast %cst_212 : f32 to vector<6x2xf32>
    %412 = arith.cmpf oge, %410, %411 : vector<6x2xf32>
    %cst_213 = arith.constant 0.00999999977 : f32
    %413 = vector.broadcast %cst_213 : f32 to vector<6x2xf32>
    %414 = arith.mulf %413, %410 : vector<6x2xf32>
    %415 = arith.select %412, %410, %414 : vector<6x2xi1>, vector<6x2xf32>
    %c0_214 = arith.constant 0 : index
    %c0_215 = arith.constant 0 : index
    %416 = vector.load %arg21[%c0_214, %c0_215] : memref<2x64xf32, #tpu.memory_space<vmem>>, vector<2x64xf32>
    %417 = vector.extract_strided_slice %415 {offsets = [0, 0], sizes = [6, 1], strides = [1, 1]} : vector<6x2xf32> to vector<6x1xf32>
    %418 = vector.extract_strided_slice %416 {offsets = [0, 0], sizes = [1, 64], strides = [1, 1]} : vector<2x64xf32> to vector<1x64xf32>
    %419 = vector.broadcast %417 : vector<6x1xf32> to vector<6x64xf32>
    %420 = vector.broadcast %418 : vector<1x64xf32> to vector<6x64xf32>
    %421 = arith.mulf %419, %420 : vector<6x64xf32>
    %422 = vector.extract_strided_slice %415 {offsets = [0, 1], sizes = [6, 1], strides = [1, 1]} : vector<6x2xf32> to vector<6x1xf32>
    %423 = vector.extract_strided_slice %416 {offsets = [1, 0], sizes = [1, 64], strides = [1, 1]} : vector<2x64xf32> to vector<1x64xf32>
    %424 = vector.broadcast %422 : vector<6x1xf32> to vector<6x64xf32>
    %425 = vector.broadcast %423 : vector<1x64xf32> to vector<6x64xf32>
    %426 = arith.mulf %424, %425 : vector<6x64xf32>
    %427 = arith.addf %421, %426 : vector<6x64xf32>
    %c0_216 = arith.constant 0 : index
    %c0_217 = arith.constant 0 : index
    %428 = vector.load %arg22[%c0_216, %c0_217] : memref<1x64xf32, #tpu.memory_space<vmem>>, vector<1x64xf32>
    %c0_218 = arith.constant 0 : index
    %c0_219 = arith.constant 0 : index
    %429 = vector.load %arg23[%c0_218, %c0_219] : memref<1x64xf32, #tpu.memory_space<vmem>>, vector<1x64xf32>
    %cst_220 = arith.constant dense<0.000000e+00> : vector<64xf32>
    %430 = vector.multi_reduction <add>, %427, %cst_220 [0] : vector<6x64xf32> to vector<64xf32>
    %431 = vector.shape_cast %430 : vector<64xf32> to vector<1x64xf32>
    %cst_221 = arith.constant 6.000000e+00 : f32
    %432 = vector.broadcast %cst_221 : f32 to vector<1x64xf32>
    %433 = arith.divf %431, %432 : vector<1x64xf32>
    %434 = vector.broadcast %433 : vector<1x64xf32> to vector<6x64xf32>
    %435 = arith.subf %427, %434 : vector<6x64xf32>
    %436 = arith.mulf %435, %435 : vector<6x64xf32>
    %cst_222 = arith.constant dense<0.000000e+00> : vector<64xf32>
    %437 = vector.multi_reduction <add>, %436, %cst_222 [0] : vector<6x64xf32> to vector<64xf32>
    %438 = vector.shape_cast %437 : vector<64xf32> to vector<1x64xf32>
    %cst_223 = arith.constant 6.000000e+00 : f32
    %439 = vector.broadcast %cst_223 : f32 to vector<1x64xf32>
    %440 = arith.divf %438, %439 : vector<1x64xf32>
    %cst_224 = arith.constant 9.99999974E-6 : f32
    %441 = vector.broadcast %cst_224 : f32 to vector<1x64xf32>
    %442 = arith.addf %440, %441 : vector<1x64xf32>
    %443 = math.rsqrt %442 : vector<1x64xf32>
    %444 = vector.broadcast %443 : vector<1x64xf32> to vector<6x64xf32>
    %445 = arith.mulf %435, %444 : vector<6x64xf32>
    %446 = vector.broadcast %428 : vector<1x64xf32> to vector<6x64xf32>
    %447 = arith.mulf %445, %446 : vector<6x64xf32>
    %448 = vector.broadcast %429 : vector<1x64xf32> to vector<6x64xf32>
    %449 = arith.addf %447, %448 : vector<6x64xf32>
    %cst_225 = arith.constant 0.000000e+00 : f32
    %450 = vector.broadcast %cst_225 : f32 to vector<6x64xf32>
    %451 = arith.cmpf oge, %449, %450 : vector<6x64xf32>
    %cst_226 = arith.constant 0.00999999977 : f32
    %452 = vector.broadcast %cst_226 : f32 to vector<6x64xf32>
    %453 = arith.mulf %452, %449 : vector<6x64xf32>
    %454 = arith.select %451, %449, %453 : vector<6x64xi1>, vector<6x64xf32>
    %455 = vector.extract_strided_slice %454 {offsets = [0, 0], sizes = [1, 64], strides = [1, 1]} : vector<6x64xf32> to vector<1x64xf32>
    %c0_227 = arith.constant 0 : index
    %c0_228 = arith.constant 0 : index
    %456 = vector.load %arg52[%c0_227, %c0_228] : memref<1x384xf32, #tpu.memory_space<vmem>>, vector<1x64xf32>
    tpu.vector_store %arg52[%c0_227, %c0_228], %455 {strides = array<i32>} : memref<1x384xf32, #tpu.memory_space<vmem>>, vector<1x64xf32>,
    %457 = vector.extract_strided_slice %454 {offsets = [1, 0], sizes = [1, 64], strides = [1, 1]} : vector<6x64xf32> to vector<1x64xf32>
    %c0_229 = arith.constant 0 : index
    %c64_230 = arith.constant 64 : index
    %458 = vector.load %arg52[%c0_229, %c64_230] : memref<1x384xf32, #tpu.memory_space<vmem>>, vector<1x64xf32>
    tpu.vector_store %arg52[%c0_229, %c64_230], %457 {strides = array<i32>} : memref<1x384xf32, #tpu.memory_space<vmem>>, vector<1x64xf32>,
    %459 = vector.extract_strided_slice %454 {offsets = [2, 0], sizes = [1, 64], strides = [1, 1]} : vector<6x64xf32> to vector<1x64xf32>
    %c0_231 = arith.constant 0 : index
    %c128_232 = arith.constant 128 : index
    %460 = vector.load %arg52[%c0_231, %c128_232] : memref<1x384xf32, #tpu.memory_space<vmem>>, vector<1x64xf32>
    tpu.vector_store %arg52[%c0_231, %c128_232], %459 {strides = array<i32>} : memref<1x384xf32, #tpu.memory_space<vmem>>, vector<1x64xf32>,
    %461 = vector.extract_strided_slice %454 {offsets = [3, 0], sizes = [1, 64], strides = [1, 1]} : vector<6x64xf32> to vector<1x64xf32>
    %c0_233 = arith.constant 0 : index
    %c192_234 = arith.constant 192 : index
    %462 = vector.load %arg52[%c0_233, %c192_234] : memref<1x384xf32, #tpu.memory_space<vmem>>, vector<1x64xf32>
    tpu.vector_store %arg52[%c0_233, %c192_234], %461 {strides = array<i32>} : memref<1x384xf32, #tpu.memory_space<vmem>>, vector<1x64xf32>,
    %463 = vector.extract_strided_slice %454 {offsets = [4, 0], sizes = [1, 64], strides = [1, 1]} : vector<6x64xf32> to vector<1x64xf32>
    %c0_235 = arith.constant 0 : index
    %c256_236 = arith.constant 256 : index
    %464 = vector.load %arg52[%c0_235, %c256_236] : memref<1x384xf32, #tpu.memory_space<vmem>>, vector<1x64xf32>
    tpu.vector_store %arg52[%c0_235, %c256_236], %463 {strides = array<i32>} : memref<1x384xf32, #tpu.memory_space<vmem>>, vector<1x64xf32>,
    %465 = vector.extract_strided_slice %454 {offsets = [5, 0], sizes = [1, 64], strides = [1, 1]} : vector<6x64xf32> to vector<1x64xf32>
    %c0_237 = arith.constant 0 : index
    %c320_238 = arith.constant 320 : index
    %466 = vector.load %arg52[%c0_237, %c320_238] : memref<1x384xf32, #tpu.memory_space<vmem>>, vector<1x64xf32>
    tpu.vector_store %arg52[%c0_237, %c320_238], %465 {strides = array<i32>} : memref<1x384xf32, #tpu.memory_space<vmem>>, vector<1x64xf32>,
    %c0_239 = arith.constant 0 : index
    %c0_240 = arith.constant 0 : index
    %467 = vector.load %arg52[%c0_239, %c0_240] : memref<1x384xf32, #tpu.memory_space<vmem>>, vector<1x384xf32>
    %c0_241 = arith.constant 0 : index
    %c0_242 = arith.constant 0 : index
    %468 = vector.load %arg24[%c0_241, %c0_242] : memref<384x192xf32, #tpu.memory_space<vmem>>, vector<384x192xf32>
    %cst_243 = arith.constant dense<0.000000e+00> : vector<1x192xf32>
    %469 = tpu.matmul %467, %468, %cst_243 {dimension_numbers = #tpu.dot_dimension_numbers<[1], [0], [0], [1], [0, 0, 1, 1], [], []>} : vector<1x384xf32>, vector<384x192xf32>, vector<1x192xf32> -> vector<1x192xf32>
    %c0_244 = arith.constant 0 : index
    %c102 = arith.constant 102 : index
    %470 = vector.load %arg51[%c0_244, %c102] : memref<6x256xf32, #tpu.memory_space<vmem>>, vector<6x2xf32>
    tpu.vector_store %arg51[%c0_244, %c102], %388 {strides = array<i32>} : memref<6x256xf32, #tpu.memory_space<vmem>>, vector<6x2xf32>,
    %471 = vector.extract_strided_slice %469 {offsets = [0, 0], sizes = [1, 32], strides = [1, 1]} : vector<1x192xf32> to vector<1x32xf32>
    %c0_245 = arith.constant 0 : index
    %c104 = arith.constant 104 : index
    %472 = vector.load %arg51[%c0_245, %c104] : memref<6x256xf32, #tpu.memory_space<vmem>>, vector<1x32xf32>
    tpu.vector_store %arg51[%c0_245, %c104], %471 {strides = array<i32>} : memref<6x256xf32, #tpu.memory_space<vmem>>, vector<1x32xf32>,
    %473 = vector.extract_strided_slice %469 {offsets = [0, 32], sizes = [1, 32], strides = [1, 1]} : vector<1x192xf32> to vector<1x32xf32>
    %c1_246 = arith.constant 1 : index
    %c104_247 = arith.constant 104 : index
    %474 = vector.load %arg51[%c1_246, %c104_247] : memref<6x256xf32, #tpu.memory_space<vmem>>, vector<1x32xf32>
    tpu.vector_store %arg51[%c1_246, %c104_247], %473 {strides = array<i32>} : memref<6x256xf32, #tpu.memory_space<vmem>>, vector<1x32xf32>,
    %475 = vector.extract_strided_slice %469 {offsets = [0, 64], sizes = [1, 32], strides = [1, 1]} : vector<1x192xf32> to vector<1x32xf32>
    %c2_248 = arith.constant 2 : index
    %c104_249 = arith.constant 104 : index
    %476 = vector.load %arg51[%c2_248, %c104_249] : memref<6x256xf32, #tpu.memory_space<vmem>>, vector<1x32xf32>
    tpu.vector_store %arg51[%c2_248, %c104_249], %475 {strides = array<i32>} : memref<6x256xf32, #tpu.memory_space<vmem>>, vector<1x32xf32>,
    %477 = vector.extract_strided_slice %469 {offsets = [0, 96], sizes = [1, 32], strides = [1, 1]} : vector<1x192xf32> to vector<1x32xf32>
    %c3_250 = arith.constant 3 : index
    %c104_251 = arith.constant 104 : index
    %478 = vector.load %arg51[%c3_250, %c104_251] : memref<6x256xf32, #tpu.memory_space<vmem>>, vector<1x32xf32>
    tpu.vector_store %arg51[%c3_250, %c104_251], %477 {strides = array<i32>} : memref<6x256xf32, #tpu.memory_space<vmem>>, vector<1x32xf32>,
    %479 = vector.extract_strided_slice %469 {offsets = [0, 128], sizes = [1, 32], strides = [1, 1]} : vector<1x192xf32> to vector<1x32xf32>
    %c4_252 = arith.constant 4 : index
    %c104_253 = arith.constant 104 : index
    %480 = vector.load %arg51[%c4_252, %c104_253] : memref<6x256xf32, #tpu.memory_space<vmem>>, vector<1x32xf32>
    tpu.vector_store %arg51[%c4_252, %c104_253], %479 {strides = array<i32>} : memref<6x256xf32, #tpu.memory_space<vmem>>, vector<1x32xf32>,
    %481 = vector.extract_strided_slice %469 {offsets = [0, 160], sizes = [1, 32], strides = [1, 1]} : vector<1x192xf32> to vector<1x32xf32>
    %c5_254 = arith.constant 5 : index
    %c104_255 = arith.constant 104 : index
    %482 = vector.load %arg51[%c5_254, %c104_255] : memref<6x256xf32, #tpu.memory_space<vmem>>, vector<1x32xf32>
    tpu.vector_store %arg51[%c5_254, %c104_255], %481 {strides = array<i32>} : memref<6x256xf32, #tpu.memory_space<vmem>>, vector<1x32xf32>,
    %c0_256 = arith.constant 0 : index
    %c0_257 = arith.constant 0 : index
    %483 = vector.load %arg51[%c0_256, %c0_257] : memref<6x256xf32, #tpu.memory_space<vmem>>, vector<6x136xf32>
    %c0_258 = arith.constant 0 : index
    %c0_259 = arith.constant 0 : index
    %484 = vector.load %arg40[%c0_258, %c0_259] : memref<1x136xf32, #tpu.memory_space<vmem>>, vector<1x136xf32>
    %c0_260 = arith.constant 0 : index
    %c0_261 = arith.constant 0 : index
    %485 = vector.load %arg41[%c0_260, %c0_261] : memref<1x136xf32, #tpu.memory_space<vmem>>, vector<1x136xf32>
    %cst_262 = arith.constant dense<0.000000e+00> : vector<136xf32>
    %486 = vector.multi_reduction <add>, %483, %cst_262 [0] : vector<6x136xf32> to vector<136xf32>
    %487 = vector.shape_cast %486 : vector<136xf32> to vector<1x136xf32>
    %cst_263 = arith.constant 6.000000e+00 : f32
    %488 = vector.broadcast %cst_263 : f32 to vector<1x136xf32>
    %489 = arith.divf %487, %488 : vector<1x136xf32>
    %490 = vector.broadcast %489 : vector<1x136xf32> to vector<6x136xf32>
    %491 = arith.subf %483, %490 : vector<6x136xf32>
    %492 = arith.mulf %491, %491 : vector<6x136xf32>
    %cst_264 = arith.constant dense<0.000000e+00> : vector<136xf32>
    %493 = vector.multi_reduction <add>, %492, %cst_264 [0] : vector<6x136xf32> to vector<136xf32>
    %494 = vector.shape_cast %493 : vector<136xf32> to vector<1x136xf32>
    %cst_265 = arith.constant 6.000000e+00 : f32
    %495 = vector.broadcast %cst_265 : f32 to vector<1x136xf32>
    %496 = arith.divf %494, %495 : vector<1x136xf32>
    %cst_266 = arith.constant 9.99999974E-6 : f32
    %497 = vector.broadcast %cst_266 : f32 to vector<1x136xf32>
    %498 = arith.addf %496, %497 : vector<1x136xf32>
    %499 = math.rsqrt %498 : vector<1x136xf32>
    %500 = vector.broadcast %499 : vector<1x136xf32> to vector<6x136xf32>
    %501 = arith.mulf %491, %500 : vector<6x136xf32>
    %502 = vector.broadcast %484 : vector<1x136xf32> to vector<6x136xf32>
    %503 = arith.mulf %501, %502 : vector<6x136xf32>
    %504 = vector.broadcast %485 : vector<1x136xf32> to vector<6x136xf32>
    %505 = arith.addf %503, %504 : vector<6x136xf32>
    %cst_267 = arith.constant 0.000000e+00 : f32
    %506 = vector.broadcast %cst_267 : f32 to vector<6x136xf32>
    %507 = arith.cmpf oge, %505, %506 : vector<6x136xf32>
    %cst_268 = arith.constant 0.00999999977 : f32
    %508 = vector.broadcast %cst_268 : f32 to vector<6x136xf32>
    %509 = arith.mulf %508, %505 : vector<6x136xf32>
    %510 = arith.select %507, %505, %509 : vector<6x136xi1>, vector<6x136xf32>
    %c0_269 = arith.constant 0 : index
    %c0_270 = arith.constant 0 : index
    %511 = vector.load %arg42[%c0_269, %c0_270] : memref<136x2xf32, #tpu.memory_space<vmem>>, vector<136x2xf32>
    %cst_271 = arith.constant dense<0.000000e+00> : vector<6x2xf32>
    %512 = tpu.matmul %510, %511, %cst_271 {dimension_numbers = #tpu.dot_dimension_numbers<[1], [0], [0], [1], [0, 0, 1, 1], [], []>} : vector<6x136xf32>, vector<136x2xf32>, vector<6x2xf32> -> vector<6x2xf32>
    %c0_272 = arith.constant 0 : index
    %c0_273 = arith.constant 0 : index
    %513 = vector.load %arg25[%c0_272, %c0_273] : memref<1x2xf32, #tpu.memory_space<vmem>>, vector<1x2xf32>
    %c0_274 = arith.constant 0 : index
    %c0_275 = arith.constant 0 : index
    %514 = vector.load %arg26[%c0_274, %c0_275] : memref<1x2xf32, #tpu.memory_space<vmem>>, vector<1x2xf32>
    %cst_276 = arith.constant dense<0.000000e+00> : vector<2xf32>
    %515 = vector.multi_reduction <add>, %512, %cst_276 [0] : vector<6x2xf32> to vector<2xf32>
    %516 = vector.shape_cast %515 : vector<2xf32> to vector<1x2xf32>
    %cst_277 = arith.constant 6.000000e+00 : f32
    %517 = vector.broadcast %cst_277 : f32 to vector<1x2xf32>
    %518 = arith.divf %516, %517 : vector<1x2xf32>
    %519 = vector.broadcast %518 : vector<1x2xf32> to vector<6x2xf32>
    %520 = arith.subf %512, %519 : vector<6x2xf32>
    %521 = arith.mulf %520, %520 : vector<6x2xf32>
    %cst_278 = arith.constant dense<0.000000e+00> : vector<2xf32>
    %522 = vector.multi_reduction <add>, %521, %cst_278 [0] : vector<6x2xf32> to vector<2xf32>
    %523 = vector.shape_cast %522 : vector<2xf32> to vector<1x2xf32>
    %cst_279 = arith.constant 6.000000e+00 : f32
    %524 = vector.broadcast %cst_279 : f32 to vector<1x2xf32>
    %525 = arith.divf %523, %524 : vector<1x2xf32>
    %cst_280 = arith.constant 9.99999974E-6 : f32
    %526 = vector.broadcast %cst_280 : f32 to vector<1x2xf32>
    %527 = arith.addf %525, %526 : vector<1x2xf32>
    %528 = math.rsqrt %527 : vector<1x2xf32>
    %529 = vector.broadcast %528 : vector<1x2xf32> to vector<6x2xf32>
    %530 = arith.mulf %520, %529 : vector<6x2xf32>
    %531 = vector.broadcast %513 : vector<1x2xf32> to vector<6x2xf32>
    %532 = arith.mulf %530, %531 : vector<6x2xf32>
    %533 = vector.broadcast %514 : vector<1x2xf32> to vector<6x2xf32>
    %534 = arith.addf %532, %533 : vector<6x2xf32>
    %cst_281 = arith.constant 0.000000e+00 : f32
    %535 = vector.broadcast %cst_281 : f32 to vector<6x2xf32>
    %536 = arith.cmpf oge, %534, %535 : vector<6x2xf32>
    %cst_282 = arith.constant 0.00999999977 : f32
    %537 = vector.broadcast %cst_282 : f32 to vector<6x2xf32>
    %538 = arith.mulf %537, %534 : vector<6x2xf32>
    %539 = arith.select %536, %534, %538 : vector<6x2xi1>, vector<6x2xf32>
    %c0_283 = arith.constant 0 : index
    %c0_284 = arith.constant 0 : index
    %540 = vector.load %arg27[%c0_283, %c0_284] : memref<2x64xf32, #tpu.memory_space<vmem>>, vector<2x64xf32>
    %541 = vector.extract_strided_slice %539 {offsets = [0, 0], sizes = [6, 1], strides = [1, 1]} : vector<6x2xf32> to vector<6x1xf32>
    %542 = vector.extract_strided_slice %540 {offsets = [0, 0], sizes = [1, 64], strides = [1, 1]} : vector<2x64xf32> to vector<1x64xf32>
    %543 = vector.broadcast %541 : vector<6x1xf32> to vector<6x64xf32>
    %544 = vector.broadcast %542 : vector<1x64xf32> to vector<6x64xf32>
    %545 = arith.mulf %543, %544 : vector<6x64xf32>
    %546 = vector.extract_strided_slice %539 {offsets = [0, 1], sizes = [6, 1], strides = [1, 1]} : vector<6x2xf32> to vector<6x1xf32>
    %547 = vector.extract_strided_slice %540 {offsets = [1, 0], sizes = [1, 64], strides = [1, 1]} : vector<2x64xf32> to vector<1x64xf32>
    %548 = vector.broadcast %546 : vector<6x1xf32> to vector<6x64xf32>
    %549 = vector.broadcast %547 : vector<1x64xf32> to vector<6x64xf32>
    %550 = arith.mulf %548, %549 : vector<6x64xf32>
    %551 = arith.addf %545, %550 : vector<6x64xf32>
    %c0_285 = arith.constant 0 : index
    %c0_286 = arith.constant 0 : index
    %552 = vector.load %arg28[%c0_285, %c0_286] : memref<1x64xf32, #tpu.memory_space<vmem>>, vector<1x64xf32>
    %c0_287 = arith.constant 0 : index
    %c0_288 = arith.constant 0 : index
    %553 = vector.load %arg29[%c0_287, %c0_288] : memref<1x64xf32, #tpu.memory_space<vmem>>, vector<1x64xf32>
    %cst_289 = arith.constant dense<0.000000e+00> : vector<64xf32>
    %554 = vector.multi_reduction <add>, %551, %cst_289 [0] : vector<6x64xf32> to vector<64xf32>
    %555 = vector.shape_cast %554 : vector<64xf32> to vector<1x64xf32>
    %cst_290 = arith.constant 6.000000e+00 : f32
    %556 = vector.broadcast %cst_290 : f32 to vector<1x64xf32>
    %557 = arith.divf %555, %556 : vector<1x64xf32>
    %558 = vector.broadcast %557 : vector<1x64xf32> to vector<6x64xf32>
    %559 = arith.subf %551, %558 : vector<6x64xf32>
    %560 = arith.mulf %559, %559 : vector<6x64xf32>
    %cst_291 = arith.constant dense<0.000000e+00> : vector<64xf32>
    %561 = vector.multi_reduction <add>, %560, %cst_291 [0] : vector<6x64xf32> to vector<64xf32>
    %562 = vector.shape_cast %561 : vector<64xf32> to vector<1x64xf32>
    %cst_292 = arith.constant 6.000000e+00 : f32
    %563 = vector.broadcast %cst_292 : f32 to vector<1x64xf32>
    %564 = arith.divf %562, %563 : vector<1x64xf32>
    %cst_293 = arith.constant 9.99999974E-6 : f32
    %565 = vector.broadcast %cst_293 : f32 to vector<1x64xf32>
    %566 = arith.addf %564, %565 : vector<1x64xf32>
    %567 = math.rsqrt %566 : vector<1x64xf32>
    %568 = vector.broadcast %567 : vector<1x64xf32> to vector<6x64xf32>
    %569 = arith.mulf %559, %568 : vector<6x64xf32>
    %570 = vector.broadcast %552 : vector<1x64xf32> to vector<6x64xf32>
    %571 = arith.mulf %569, %570 : vector<6x64xf32>
    %572 = vector.broadcast %553 : vector<1x64xf32> to vector<6x64xf32>
    %573 = arith.addf %571, %572 : vector<6x64xf32>
    %cst_294 = arith.constant 0.000000e+00 : f32
    %574 = vector.broadcast %cst_294 : f32 to vector<6x64xf32>
    %575 = arith.cmpf oge, %573, %574 : vector<6x64xf32>
    %cst_295 = arith.constant 0.00999999977 : f32
    %576 = vector.broadcast %cst_295 : f32 to vector<6x64xf32>
    %577 = arith.mulf %576, %573 : vector<6x64xf32>
    %578 = arith.select %575, %573, %577 : vector<6x64xi1>, vector<6x64xf32>
    %579 = vector.extract_strided_slice %578 {offsets = [0, 0], sizes = [1, 64], strides = [1, 1]} : vector<6x64xf32> to vector<1x64xf32>
    %c0_296 = arith.constant 0 : index
    %c0_297 = arith.constant 0 : index
    %580 = vector.load %arg52[%c0_296, %c0_297] : memref<1x384xf32, #tpu.memory_space<vmem>>, vector<1x64xf32>
    tpu.vector_store %arg52[%c0_296, %c0_297], %579 {strides = array<i32>} : memref<1x384xf32, #tpu.memory_space<vmem>>, vector<1x64xf32>,
    %581 = vector.extract_strided_slice %578 {offsets = [1, 0], sizes = [1, 64], strides = [1, 1]} : vector<6x64xf32> to vector<1x64xf32>
    %c0_298 = arith.constant 0 : index
    %c64_299 = arith.constant 64 : index
    %582 = vector.load %arg52[%c0_298, %c64_299] : memref<1x384xf32, #tpu.memory_space<vmem>>, vector<1x64xf32>
    tpu.vector_store %arg52[%c0_298, %c64_299], %581 {strides = array<i32>} : memref<1x384xf32, #tpu.memory_space<vmem>>, vector<1x64xf32>,
    %583 = vector.extract_strided_slice %578 {offsets = [2, 0], sizes = [1, 64], strides = [1, 1]} : vector<6x64xf32> to vector<1x64xf32>
    %c0_300 = arith.constant 0 : index
    %c128_301 = arith.constant 128 : index
    %584 = vector.load %arg52[%c0_300, %c128_301] : memref<1x384xf32, #tpu.memory_space<vmem>>, vector<1x64xf32>
    tpu.vector_store %arg52[%c0_300, %c128_301], %583 {strides = array<i32>} : memref<1x384xf32, #tpu.memory_space<vmem>>, vector<1x64xf32>,
    %585 = vector.extract_strided_slice %578 {offsets = [3, 0], sizes = [1, 64], strides = [1, 1]} : vector<6x64xf32> to vector<1x64xf32>
    %c0_302 = arith.constant 0 : index
    %c192_303 = arith.constant 192 : index
    %586 = vector.load %arg52[%c0_302, %c192_303] : memref<1x384xf32, #tpu.memory_space<vmem>>, vector<1x64xf32>
    tpu.vector_store %arg52[%c0_302, %c192_303], %585 {strides = array<i32>} : memref<1x384xf32, #tpu.memory_space<vmem>>, vector<1x64xf32>,
    %587 = vector.extract_strided_slice %578 {offsets = [4, 0], sizes = [1, 64], strides = [1, 1]} : vector<6x64xf32> to vector<1x64xf32>
    %c0_304 = arith.constant 0 : index
    %c256_305 = arith.constant 256 : index
    %588 = vector.load %arg52[%c0_304, %c256_305] : memref<1x384xf32, #tpu.memory_space<vmem>>, vector<1x64xf32>
    tpu.vector_store %arg52[%c0_304, %c256_305], %587 {strides = array<i32>} : memref<1x384xf32, #tpu.memory_space<vmem>>, vector<1x64xf32>,
    %589 = vector.extract_strided_slice %578 {offsets = [5, 0], sizes = [1, 64], strides = [1, 1]} : vector<6x64xf32> to vector<1x64xf32>
    %c0_306 = arith.constant 0 : index
    %c320_307 = arith.constant 320 : index
    %590 = vector.load %arg52[%c0_306, %c320_307] : memref<1x384xf32, #tpu.memory_space<vmem>>, vector<1x64xf32>
    tpu.vector_store %arg52[%c0_306, %c320_307], %589 {strides = array<i32>} : memref<1x384xf32, #tpu.memory_space<vmem>>, vector<1x64xf32>,
    %c0_308 = arith.constant 0 : index
    %c0_309 = arith.constant 0 : index
    %591 = vector.load %arg52[%c0_308, %c0_309] : memref<1x384xf32, #tpu.memory_space<vmem>>, vector<1x384xf32>
    %c0_310 = arith.constant 0 : index
    %c0_311 = arith.constant 0 : index
    %592 = vector.load %arg30[%c0_310, %c0_311] : memref<384x192xf32, #tpu.memory_space<vmem>>, vector<384x192xf32>
    %cst_312 = arith.constant dense<0.000000e+00> : vector<1x192xf32>
    %593 = tpu.matmul %591, %592, %cst_312 {dimension_numbers = #tpu.dot_dimension_numbers<[1], [0], [0], [1], [0, 0, 1, 1], [], []>} : vector<1x384xf32>, vector<384x192xf32>, vector<1x192xf32> -> vector<1x192xf32>
    %c0_313 = arith.constant 0 : index
    %c136 = arith.constant 136 : index
    %594 = vector.load %arg51[%c0_313, %c136] : memref<6x256xf32, #tpu.memory_space<vmem>>, vector<6x2xf32>
    tpu.vector_store %arg51[%c0_313, %c136], %512 {strides = array<i32>} : memref<6x256xf32, #tpu.memory_space<vmem>>, vector<6x2xf32>,
    %595 = vector.extract_strided_slice %593 {offsets = [0, 0], sizes = [1, 32], strides = [1, 1]} : vector<1x192xf32> to vector<1x32xf32>
    %c0_314 = arith.constant 0 : index
    %c138 = arith.constant 138 : index
    %596 = vector.load %arg51[%c0_314, %c138] : memref<6x256xf32, #tpu.memory_space<vmem>>, vector<1x32xf32>
    tpu.vector_store %arg51[%c0_314, %c138], %595 {strides = array<i32>} : memref<6x256xf32, #tpu.memory_space<vmem>>, vector<1x32xf32>,
    %597 = vector.extract_strided_slice %593 {offsets = [0, 32], sizes = [1, 32], strides = [1, 1]} : vector<1x192xf32> to vector<1x32xf32>
    %c1_315 = arith.constant 1 : index
    %c138_316 = arith.constant 138 : index
    %598 = vector.load %arg51[%c1_315, %c138_316] : memref<6x256xf32, #tpu.memory_space<vmem>>, vector<1x32xf32>
    tpu.vector_store %arg51[%c1_315, %c138_316], %597 {strides = array<i32>} : memref<6x256xf32, #tpu.memory_space<vmem>>, vector<1x32xf32>,
    %599 = vector.extract_strided_slice %593 {offsets = [0, 64], sizes = [1, 32], strides = [1, 1]} : vector<1x192xf32> to vector<1x32xf32>
    %c2_317 = arith.constant 2 : index
    %c138_318 = arith.constant 138 : index
    %600 = vector.load %arg51[%c2_317, %c138_318] : memref<6x256xf32, #tpu.memory_space<vmem>>, vector<1x32xf32>
    tpu.vector_store %arg51[%c2_317, %c138_318], %599 {strides = array<i32>} : memref<6x256xf32, #tpu.memory_space<vmem>>, vector<1x32xf32>,
    %601 = vector.extract_strided_slice %593 {offsets = [0, 96], sizes = [1, 32], strides = [1, 1]} : vector<1x192xf32> to vector<1x32xf32>
    %c3_319 = arith.constant 3 : index
    %c138_320 = arith.constant 138 : index
    %602 = vector.load %arg51[%c3_319, %c138_320] : memref<6x256xf32, #tpu.memory_space<vmem>>, vector<1x32xf32>
    tpu.vector_store %arg51[%c3_319, %c138_320], %601 {strides = array<i32>} : memref<6x256xf32, #tpu.memory_space<vmem>>, vector<1x32xf32>,
    %603 = vector.extract_strided_slice %593 {offsets = [0, 128], sizes = [1, 32], strides = [1, 1]} : vector<1x192xf32> to vector<1x32xf32>
    %c4_321 = arith.constant 4 : index
    %c138_322 = arith.constant 138 : index
    %604 = vector.load %arg51[%c4_321, %c138_322] : memref<6x256xf32, #tpu.memory_space<vmem>>, vector<1x32xf32>
    tpu.vector_store %arg51[%c4_321, %c138_322], %603 {strides = array<i32>} : memref<6x256xf32, #tpu.memory_space<vmem>>, vector<1x32xf32>,
    %605 = vector.extract_strided_slice %593 {offsets = [0, 160], sizes = [1, 32], strides = [1, 1]} : vector<1x192xf32> to vector<1x32xf32>
    %c5_323 = arith.constant 5 : index
    %c138_324 = arith.constant 138 : index
    %606 = vector.load %arg51[%c5_323, %c138_324] : memref<6x256xf32, #tpu.memory_space<vmem>>, vector<1x32xf32>
    tpu.vector_store %arg51[%c5_323, %c138_324], %605 {strides = array<i32>} : memref<6x256xf32, #tpu.memory_space<vmem>>, vector<1x32xf32>,
    %c0_325 = arith.constant 0 : index
    %c0_326 = arith.constant 0 : index
    %607 = vector.load %arg51[%c0_325, %c0_326] : memref<6x256xf32, #tpu.memory_space<vmem>>, vector<6x170xf32>
    %c0_327 = arith.constant 0 : index
    %c0_328 = arith.constant 0 : index
    %608 = vector.load %arg43[%c0_327, %c0_328] : memref<1x170xf32, #tpu.memory_space<vmem>>, vector<1x170xf32>
    %c0_329 = arith.constant 0 : index
    %c0_330 = arith.constant 0 : index
    %609 = vector.load %arg44[%c0_329, %c0_330] : memref<1x170xf32, #tpu.memory_space<vmem>>, vector<1x170xf32>
    %cst_331 = arith.constant dense<0.000000e+00> : vector<170xf32>
    %610 = vector.multi_reduction <add>, %607, %cst_331 [0] : vector<6x170xf32> to vector<170xf32>
    %611 = vector.shape_cast %610 : vector<170xf32> to vector<1x170xf32>
    %cst_332 = arith.constant 6.000000e+00 : f32
    %612 = vector.broadcast %cst_332 : f32 to vector<1x170xf32>
    %613 = arith.divf %611, %612 : vector<1x170xf32>
    %614 = vector.broadcast %613 : vector<1x170xf32> to vector<6x170xf32>
    %615 = arith.subf %607, %614 : vector<6x170xf32>
    %616 = arith.mulf %615, %615 : vector<6x170xf32>
    %cst_333 = arith.constant dense<0.000000e+00> : vector<170xf32>
    %617 = vector.multi_reduction <add>, %616, %cst_333 [0] : vector<6x170xf32> to vector<170xf32>
    %618 = vector.shape_cast %617 : vector<170xf32> to vector<1x170xf32>
    %cst_334 = arith.constant 6.000000e+00 : f32
    %619 = vector.broadcast %cst_334 : f32 to vector<1x170xf32>
    %620 = arith.divf %618, %619 : vector<1x170xf32>
    %cst_335 = arith.constant 9.99999974E-6 : f32
    %621 = vector.broadcast %cst_335 : f32 to vector<1x170xf32>
    %622 = arith.addf %620, %621 : vector<1x170xf32>
    %623 = math.rsqrt %622 : vector<1x170xf32>
    %624 = vector.broadcast %623 : vector<1x170xf32> to vector<6x170xf32>
    %625 = arith.mulf %615, %624 : vector<6x170xf32>
    %626 = vector.broadcast %608 : vector<1x170xf32> to vector<6x170xf32>
    %627 = arith.mulf %625, %626 : vector<6x170xf32>
    %628 = vector.broadcast %609 : vector<1x170xf32> to vector<6x170xf32>
    %629 = arith.addf %627, %628 : vector<6x170xf32>
    %cst_336 = arith.constant 0.000000e+00 : f32
    %630 = vector.broadcast %cst_336 : f32 to vector<6x170xf32>
    %631 = arith.cmpf oge, %629, %630 : vector<6x170xf32>
    %cst_337 = arith.constant 0.00999999977 : f32
    %632 = vector.broadcast %cst_337 : f32 to vector<6x170xf32>
    %633 = arith.mulf %632, %629 : vector<6x170xf32>
    %634 = arith.select %631, %629, %633 : vector<6x170xi1>, vector<6x170xf32>
    %c0_338 = arith.constant 0 : index
    %c0_339 = arith.constant 0 : index
    %635 = vector.load %arg45[%c0_338, %c0_339] : memref<170x2xf32, #tpu.memory_space<vmem>>, vector<170x2xf32>
    %cst_340 = arith.constant dense<0.000000e+00> : vector<6x2xf32>
    %636 = tpu.matmul %634, %635, %cst_340 {dimension_numbers = #tpu.dot_dimension_numbers<[1], [0], [0], [1], [0, 0, 1, 1], [], []>} : vector<6x170xf32>, vector<170x2xf32>, vector<6x2xf32> -> vector<6x2xf32>
    %c0_341 = arith.constant 0 : index
    %c0_342 = arith.constant 0 : index
    %637 = vector.load %arg46[%c0_341, %c0_342] : memref<1x2xf32, #tpu.memory_space<vmem>>, vector<1x2xf32>
    %c0_343 = arith.constant 0 : index
    %c0_344 = arith.constant 0 : index
    %638 = vector.load %arg47[%c0_343, %c0_344] : memref<1x2xf32, #tpu.memory_space<vmem>>, vector<1x2xf32>
    %cst_345 = arith.constant dense<0.000000e+00> : vector<2xf32>
    %639 = vector.multi_reduction <add>, %636, %cst_345 [0] : vector<6x2xf32> to vector<2xf32>
    %640 = vector.shape_cast %639 : vector<2xf32> to vector<1x2xf32>
    %cst_346 = arith.constant 6.000000e+00 : f32
    %641 = vector.broadcast %cst_346 : f32 to vector<1x2xf32>
    %642 = arith.divf %640, %641 : vector<1x2xf32>
    %643 = vector.broadcast %642 : vector<1x2xf32> to vector<6x2xf32>
    %644 = arith.subf %636, %643 : vector<6x2xf32>
    %645 = arith.mulf %644, %644 : vector<6x2xf32>
    %cst_347 = arith.constant dense<0.000000e+00> : vector<2xf32>
    %646 = vector.multi_reduction <add>, %645, %cst_347 [0] : vector<6x2xf32> to vector<2xf32>
    %647 = vector.shape_cast %646 : vector<2xf32> to vector<1x2xf32>
    %cst_348 = arith.constant 6.000000e+00 : f32
    %648 = vector.broadcast %cst_348 : f32 to vector<1x2xf32>
    %649 = arith.divf %647, %648 : vector<1x2xf32>
    %cst_349 = arith.constant 9.99999974E-6 : f32
    %650 = vector.broadcast %cst_349 : f32 to vector<1x2xf32>
    %651 = arith.addf %649, %650 : vector<1x2xf32>
    %652 = math.rsqrt %651 : vector<1x2xf32>
    %653 = vector.broadcast %652 : vector<1x2xf32> to vector<6x2xf32>
    %654 = arith.mulf %644, %653 : vector<6x2xf32>
    %655 = vector.broadcast %637 : vector<1x2xf32> to vector<6x2xf32>
    %656 = arith.mulf %654, %655 : vector<6x2xf32>
    %657 = vector.broadcast %638 : vector<1x2xf32> to vector<6x2xf32>
    %658 = arith.addf %656, %657 : vector<6x2xf32>
    %cst_350 = arith.constant 0.000000e+00 : f32
    %659 = vector.broadcast %cst_350 : f32 to vector<6x2xf32>
    %660 = arith.cmpf oge, %658, %659 : vector<6x2xf32>
    %cst_351 = arith.constant 0.00999999977 : f32
    %661 = vector.broadcast %cst_351 : f32 to vector<6x2xf32>
    %662 = arith.mulf %661, %658 : vector<6x2xf32>
    %663 = arith.select %660, %658, %662 : vector<6x2xi1>, vector<6x2xf32>
    %c0_352 = arith.constant 0 : index
    %c0_353 = arith.constant 0 : index
    %664 = vector.load %arg48[%c0_352, %c0_353] : memref<6x2xf32, #tpu.memory_space<vmem>>, vector<6x2xf32>
    %665 = arith.mulf %663, %664 : vector<6x2xf32>
    %cst_354 = arith.constant dense<0.000000e+00> : vector<6xf32>
    %666 = vector.multi_reduction <add>, %665, %cst_354 [1] : vector<6x2xf32> to vector<6xf32>
    %667 = vector.shape_cast %666 : vector<6xf32> to vector<6x1xf32>
    %cst_355 = arith.constant dense<0.000000e+00> : vector<1xf32>
    %668 = vector.multi_reduction <add>, %667, %cst_355 [0] : vector<6x1xf32> to vector<1xf32>
    %669 = vector.shape_cast %668 : vector<1xf32> to vector<1x1xf32>
    %c0_356 = arith.constant 0 : index
    %c0_357 = arith.constant 0 : index
    %670 = vector.load %arg49[%c0_356, %c0_357] : memref<1x1xf32, #tpu.memory_space<vmem>>, vector<1x1xf32>
    %671 = arith.addf %669, %670 : vector<1x1xf32>
    %c0_358 = arith.constant 0 : index
    %c0_359 = arith.constant 0 : index
    %672 = vector.load %arg50[%c0_358, %c0_359] : memref<1x1xf32, #tpu.memory_space<vmem>>, vector<1x1xf32>
    tpu.vector_store %arg50[%c0_358, %c0_359], %671 {strides = array<i32>} : memref<1x1xf32, #tpu.memory_space<vmem>>, vector<1x1xf32>,
    return
  }
}

</mosaic_0001>

<bundles_post_ra>
// kernel: _lambda_.1
= control target key start
LH: loop header
LB: loop body
LE: loop exit
PB: predicated region body
PF: predicated region fallthrough
CT: control target
= control target key end

     0   :  { %s3983_s6 = smov 1   ;;  %s3984_s10 = smov 2   ;;  %s4741_s0 = inlined_call_operand.smem [shape: u32[51], index: -1, kind: input, shape index: {}] }
   0x1   :  { %s4080_s5 = sld [smem:[%s4741_s0]]   ;;  %s3985_s14 = smov 3  }
   0x2   :  { %s4085_s9 = sld [smem:[%s4741_s0 + %s3983_s6]]   ;;  %s3986_s18 = smov 4  }
   0x3   :  { %s4090_s13 = sld [smem:[%s4741_s0 + %s3984_s10]]   ;;  %s3987_s22 = smov 5  }
   0x4   :  { %s4095_s17 = sld [smem:[%s4741_s0 + %s3985_s14]]   ;;  %s3988_s26 = smov 6  }
   0x5   :  { %s4100_s21 = sld [smem:[%s4741_s0 + %s3986_s18]]   ;;  %s3989_s30 = smov 7  }
   0x6   :  { %s4105_s25 = sld [smem:[%s4741_s0 + %s3987_s22]]   ;;  %s3990_s4 = smov 8  }
   0x7   :  { %s4110_s29 = sld [smem:[%s4741_s0 + %s3988_s26]]   ;;  %s3991_s10 = smov 9  }
   0x8   :  { %s4115_s3 = sld [smem:[%s4741_s0 + %s3989_s30]]   ;;  %s3992_s15 = smov 10  }
   0x9   :  { %s4120_s8 = sld [smem:[%s4741_s0 + %s3990_s4]]   ;;  %s3993_s20 = smov 11  }
   0xa   :  { %s4125_s14 = sld [smem:[%s4741_s0 + %s3991_s10]]   ;;  %s3994_s26 = smov 12  }
   0xb   :  { %s4130_s19 = sld [smem:[%s4741_s0 + %s3992_s15]]   ;;  %s3995_s1 = smov 13  }
   0xc   :  { %4743 = sst [smem:[#allocation27_spill]] %s4105_s25  ;;  %s3996_s7 = smov 14  }
   0xd   :  { %s4135_s24 = sld [smem:[%s4741_s0 + %s3993_s20]]   ;;  %s3997_s15 = smov 15  }
   0xe   :  { %4744 = sst [smem:[#allocation28_spill]] %s4115_s3  ;;  %s3998_s22 = smov 16  }
   0xf   :  { %4745 = sst [smem:[#allocation29_spill]] %s4120_s8  ;;  %s3999_s28 = smov 17  }
  0x10   :  { %4746 = sst [smem:[#allocation30_spill]] %s4125_s14  ;;  %s4032_s10 = smov 50  }
  0x11   :  { %4747 = sst [smem:[#allocation31_spill]] %s4130_s19 }
  0x12   :  { %s4140_s30 = sld [smem:[%s4741_s0 + %s3994_s26]]  }
  0x13   :  { %4748 = sst [smem:[#allocation32_spill]] %s4135_s24 }
  0x14   :  { %s4145_s6 = sld [smem:[%s4741_s0 + %s3995_s1]]  }
  0x15   :  { %s4150_s12 = sld [smem:[%s4741_s0 + %s3996_s7]]   ;;  %s4000_s7 = smov 18  }
  0x16   :  { %s4155_s20 = sld [smem:[%s4741_s0 + %s3997_s15]]   ;;  %s4001_s15 = smov 19  }
  0x17   :  { %s4160_s27 = sld [smem:[%s4741_s0 + %s3998_s22]]   ;;  %s4002_s22 = smov 20  }
  0x18   :  { %s4165_s4 = sld [smem:[%s4741_s0 + %s3999_s28]]   ;;  %s4003_s28 = smov 21  }
  0x1a   :  { %4749 = sst [smem:[#allocation33_spill]] %s4145_s6 }
  0x1b   :  { %4750 = sst [smem:[#allocation34_spill]] %s4150_s12 }
  0x1c   :  { %4751 = sst [smem:[#allocation35_spill]] %s4155_s20 }
  0x1d   :  { %4752 = sst [smem:[#allocation36_spill]] %s4160_s27 }
  0x1e   :  { %4753 = sst [smem:[#allocation37_spill]] %s4165_s4 }
  0x1f   :  { %s4170_s12 = sld [smem:[%s4741_s0 + %s4000_s7]]   ;;  %s4004_s7 = smov 22  }
  0x20   :  { %s4175_s20 = sld [smem:[%s4741_s0 + %s4001_s15]]   ;;  %s4005_s15 = smov 23  }
  0x21   :  { %s4180_s27 = sld [smem:[%s4741_s0 + %s4002_s22]]   ;;  %s4006_s22 = smov 24  }
  0x22   :  { %s4185_s4 = sld [smem:[%s4741_s0 + %s4003_s28]]   ;;  %s4007_s28 = smov 25  }
  0x23   :  { %s4190_s6 = sld [smem:[%s4741_s0 + %s4004_s7]]   ;;  %s4008_s7 = smov 26  }
  0x26   :  { %4754 = sst [smem:[#allocation38_spill]] %s4175_s20 }
  0x27   :  { %4755 = sst [smem:[#allocation39_spill]] %s4180_s27 }
  0x28   :  { %4756 = sst [smem:[#allocation40_spill]] %s4185_s4 }
  0x29   :  { %4757 = sst [smem:[#allocation41_spill]] %s4190_s6 }
  0x2a   :  { %s4195_s20 = sld [smem:[%s4741_s0 + %s4005_s15]]   ;;  %s4009_s15 = smov 27  }
  0x2b   :  { %s4200_s27 = sld [smem:[%s4741_s0 + %s4006_s22]]   ;;  %s4010_s22 = smov 28  }
  0x2c   :  { %s4205_s4 = sld [smem:[%s4741_s0 + %s4007_s28]]   ;;  %s4011_s28 = smov 29  }
  0x2d   :  { %s4210_s6 = sld [smem:[%s4741_s0 + %s4008_s7]]   ;;  %s4012_s7 = smov 30  }
  0x2e   :  { %s4220_s24 = sld [smem:[%s4741_s0 + %s4010_s22]]   ;;  %s4014_s22 = smov 32  }
  0x30   :  { %4758 = sst [smem:[#allocation42_spill]] %s4195_s20 }
  0x31   :  { %s4215_s20 = sld [smem:[%s4741_s0 + %s4009_s15]]   ;;  %s4013_s15 = smov 31  }
  0x32   :  { %4759 = sst [smem:[#allocation43_spill]] %s4205_s4 }
  0x33   :  { %4760 = sst [smem:[#allocation44_spill]] %s4210_s6 }
  0x34   :  { %4762 = sst [smem:[#allocation46_spill]] %s4220_s24 }
  0x35   :  { %s4225_s4 = sld [smem:[%s4741_s0 + %s4011_s28]]   ;;  %s4015_s28 = smov 33  }
  0x36   :  { %s4230_s6 = sld [smem:[%s4741_s0 + %s4012_s7]]   ;;  %s4016_s7 = smov 34  }
  0x37   :  { %4761 = sst [smem:[#allocation45_spill]] %s4215_s20 }
  0x38   :  { %s4235_s20 = sld [smem:[%s4741_s0 + %s4013_s15]]   ;;  %s4017_s15 = smov 35  }
  0x39   :  { %s4240_s24 = sld [smem:[%s4741_s0 + %s4014_s22]]   ;;  %s4018_s22 = smov 36  }
  0x3a   :  { %s4250_s19 = sld [smem:[%s4741_s0 + %s4016_s7]]   ;;  %s4020_s7 = smov 38  }
  0x3b   :  { %4763 = sst [smem:[#allocation47_spill]] %s4225_s4 }
  0x3c   :  { %s4245_s4 = sld [smem:[%s4741_s0 + %s4015_s28]]   ;;  %s4019_s28 = smov 37  }
  0x3d   :  { %s4255_s14 = sld [smem:[%s4741_s0 + %s4017_s15]]   ;;  %s4021_s15 = smov 39  }
  0x3e   :  { %4764 = sst [smem:[#allocation48_spill]] %s4235_s20 }
  0x3f   :  { %4765 = sst [smem:[#allocation49_spill]] %s4240_s24 }
  0x40   :  { %4767 = sst [smem:[#allocation51_spill]] %s4250_s19 }
  0x41   :  { %s4260_s8 = sld [smem:[%s4741_s0 + %s4018_s22]]   ;;  %s4022_s22 = smov 40  }
  0x42   :  { %4766 = sst [smem:[#allocation50_spill]] %s4245_s4 }
  0x43   :  { %4768 = sst [smem:[#allocation52_spill]] %s4255_s14 }
  0x44   :  { %s4265_s3 = sld [smem:[%s4741_s0 + %s4019_s28]]   ;;  %s4023_s28 = smov 41  }
  0x45   :  { %s4270_s19 = sld [smem:[%s4741_s0 + %s4020_s7]]   ;;  %s4024_s7 = smov 42  }
  0x46   :  { %s4275_s14 = sld [smem:[%s4741_s0 + %s4021_s15]]   ;;  %s4025_s15 = smov 43  }
  0x47   :  { %s4280_s24 = sld [smem:[%s4741_s0 + %s4022_s22]]   ;;  %s4026_s22 = smov 44  }
  0x48   :  { %s4295_s20 = sld [smem:[%s4741_s0 + %s4025_s15]]   ;;  %s4029_s15 = smov 47  }
  0x4a   :  { %4769 = sst [smem:[#allocation53_spill]] %s4265_s3 }
  0x4b   :  { %4770 = sst [smem:[#allocation54_spill]] %s4270_s19 }
  0x4c   :  { %s4285_s3 = sld [smem:[%s4741_s0 + %s4023_s28]]   ;;  %s4027_s28 = smov 45  }
  0x4d   :  { %4771 = sst [smem:[#allocation55_spill]] %s4280_s24 }
  0x4e   :  { %s4290_s19 = sld [smem:[%s4741_s0 + %s4024_s7]]   ;;  %s4028_s7 = smov 46  }
  0x4f   :  { %4773 = sst [smem:[#allocation57_spill]] %s4295_s20 }
  0x50   :  { %s4300_s24 = sld [smem:[%s4741_s0 + %s4026_s22]]   ;;  %s4030_s22 = smov 48  }
  0x51   :  { %s4310_s4 = sld [smem:[%s4741_s0 + %s4028_s7]]  }
  0x52   :  { %4772 = sst [smem:[#allocation56_spill]] %s4285_s3 }
  0x53   :  { %s4305_s3 = sld [smem:[%s4741_s0 + %s4027_s28]]   ;;  %s4031_s28 = smov 49  }
  0x54   :  { %s4315_s20 = sld [smem:[%s4741_s0 + %s4029_s15]]  }
  0x55   :  { %s3501_s25 = sld [smem:[%s4741_s0 + %s4031_s28]]  }
  0x56   :  { %4774 = sst [smem:[#allocation58_spill]] %s4300_s24 }
  0x57   :  { %4775 = sst [smem:[#allocation59_spill]] %s4310_s4 }
  0x58   :  { %s4320_s24 = sld [smem:[%s4741_s0 + %s4030_s22]]  }
  0x59   :  { %s4328_s4 = sld [smem:[%s4741_s0 + %s4032_s10]]  }
  0x5b   :  { %v106_v0 = vstv %s3501_s25 }
  0x5c   :  { %107 = vst [vmem:[#allocation4] sm:$0x1] %v106_v0 }
  0x5d   :  { %108 = vsyncpa [#allocation6], 0 }
  0x5e   :  { %109 = vsyncpa [#allocation9], 0 }
  0x5f   :  { %110 = vsyncpa [#allocation12], 0 }
  0x60   :  { %111 = vsyncpa [#allocation15], 0 }
  0x61   :  { %112 = vsyncpa [#allocation18], 0 }
  0x62   :  { %113 = vsyncpa [#allocation7], 0  ;;  %s4033_s15 = smov [#allocation8]   ;;  %s4034_s18 = smov [#allocation11]  }
  0x63   :  { %s153_s16 = sshll.u32 %s4033_s15, 4  ;;  %s197_s22 = sshll.u32 %s4034_s18, 4  ;;  %s154_s16 = int_to_ptr.vmem [resolvable:$true] %s153_s16  ;;  %s198_s22 = int_to_ptr.vmem [resolvable:$true] %s197_s22 }
  0x64   :  { %s3779_s23 = scalar_lea.vmem %s154_s16, 12288  ;;  %p3784_p1 = scmp.lt.s32.totalorder %s154_s16, %s154_s16 }
  0x65   :  { %p3780_p0 = scmp.ne.s32.totalorder %s154_s16, %s3779_s23  ;;  %p3785_p2 = scmp.lt.s32.totalorder %s3779_s23, %s3779_s23 }
  0x67   :  { %p3786_p3 = por %p3785_p2, %p3784_p1 }
  0x69   :  { %p3787_p4 = pnand %p3786_p3, %p3780_p0 }
  0x6b   :  { %3790 = shalt.err (!%p3787_p4)
}
  0x6c   :  { %s4035_s0 = smov 256   ;;  %s4036_s25 = smov 16  }
  0x6d   :  { %159 = dma.hbm_to_vmem [thread:$0]  %s4140_s30, 12288, %s154_s16, [#allocation9], %s4035_s0, %s4035_s0, %s4036_s25  }
  0x6e   :  { %s3799_s26 = scalar_lea.vmem %s198_s22, 12288  ;;  %p3804_p6 = scmp.lt.s32.totalorder %s198_s22, %s198_s22 }
  0x6f   :  { %p3800_p5 = scmp.ne.s32.totalorder %s198_s22, %s3799_s26  ;;  %p3805_p7 = scmp.lt.s32.totalorder %s3799_s26, %s3799_s26 }
  0x71   :  { %p3806_p8 = por %p3805_p7, %p3804_p6 }
  0x73   :  { %p3807_p9 = pnand %p3806_p8, %p3800_p5 }
  0x75   :  { %3810 = shalt.err (!%p3807_p9)
}
  0x76   :  { %203 = dma.hbm_to_vmem [thread:$0]  %s4200_s27, 12288, %s198_s22, [#allocation12], %s4035_s0, %s4035_s0, %s4036_s25  }
  0x77   :  { %s4037_s28 = smov [#allocation14]  }
  0x78   :  { %s241_s1 = sshll.u32 %s4037_s28, 4  ;;  %s242_s1 = int_to_ptr.vmem [resolvable:$true] %s241_s1 }
  0x79   :  { %s3819_s2 = scalar_lea.vmem %s242_s1, 1152  ;;  %p3824_p11 = scmp.lt.s32.totalorder %s242_s1, %s242_s1 }
  0x7a   :  { %p3820_p10 = scmp.ne.s32.totalorder %s242_s1, %s3819_s2  ;;  %p3825_p12 = scmp.lt.s32.totalorder %s3819_s2, %s3819_s2 }
  0x7c   :  { %p3826_p13 = por %p3825_p12, %p3824_p11 }
  0x7e   :  { %p3827_p0 = pnand %p3826_p13, %p3820_p10 }
  0x80   :  { %3830 = shalt.err (!%p3827_p0)
}
  0x81   :  { %s4038_s30 = smov 128   ;;  %s4039_s10 = smov 8  }
  0x82   :  { %247 = dma.hbm_to_vmem [thread:$0]  %s4260_s8, 1152, %s242_s1, [#allocation15], %s4038_s30, %s4038_s30, %s4039_s10  }
  0x83   :  { %s4040_s7 = smov [#allocation17]   ;;  %s4041_s27 = smov [#allocation5]  }
  0x84   :  { %s273_s11 = sshll.u32 %s4040_s7, 4  ;;  %s131_s15 = sshll.u32 %s4041_s27, 4  ;;  %s274_s11 = int_to_ptr.vmem [resolvable:$true] %s273_s11  ;;  %s132_s15 = int_to_ptr.vmem [resolvable:$true] %s131_s15 }
  0x85   :  { %s3839_s16 = scalar_lea.vmem %s274_s11, 2176  ;;  %p3844_p2 = scmp.lt.s32.totalorder %s274_s11, %s274_s11 }
  0x86   :  { %p3840_p1 = scmp.ne.s32.totalorder %s274_s11, %s3839_s16  ;;  %p3845_p3 = scmp.lt.s32.totalorder %s3839_s16, %s3839_s16 }
  0x88   :  { %p3846_p4 = por %p3845_p3, %p3844_p2 }
  0x8a   :  { %p3847_p5 = pnand %p3846_p4, %p3840_p1 }
  0x8c   :  { %3850 = shalt.err (!%p3847_p5)
}
  0x8d   :  { %279 = dma.hbm_to_vmem [thread:$0]  %s4290_s19, 2176, %s274_s11, [#allocation18], %s4038_s30, %s4038_s30, %s4039_s10  }
  0x8e   :  { %s3859_s18 = scalar_lea.vmem %s132_s15, 12288  ;;  %p3864_p7 = scmp.lt.s32.totalorder %s132_s15, %s132_s15 }
  0x8f   :  { %p3860_p6 = scmp.ne.s32.totalorder %s132_s15, %s3859_s18  ;;  %p3865_p8 = scmp.lt.s32.totalorder %s3859_s18, %s3859_s18 }
  0x91   :  { %p3866_p9 = por %p3865_p8, %p3864_p7 }
  0x93   :  { %p3867_p10 = pnand %p3866_p9, %p3860_p6 }
  0x95   :  { %3870 = shalt.err (!%p3867_p10)
}
  0x96   :  { %137 = dma.hbm_to_vmem [thread:$0]  %s4110_s29, 12288, %s132_s15, [#allocation6], %s4035_s0, %s4035_s0, %s4036_s25  }
  0x97   :  { %s4042_s8 = smov [#allocation10]   ;;  %s4043_s23 = smov [#allocation13]  }
  0x98   :  { %s175_s22 = sshll.u32 %s4042_s8, 4  ;;  %s219_s26 = sshll.u32 %s4043_s23, 4  ;;  %s176_s22 = int_to_ptr.vmem [resolvable:$true] %s175_s22  ;;  %s220_s26 = int_to_ptr.vmem [resolvable:$true] %s219_s26 }
  0x99   :  { %s3879_s28 = scalar_lea.vmem %s176_s22, 12288  ;;  %p3884_p12 = scmp.lt.s32.totalorder %s176_s22, %s176_s22 }
  0x9a   :  { %p3880_p11 = scmp.ne.s32.totalorder %s176_s22, %s3879_s28  ;;  %p3885_p13 = scmp.lt.s32.totalorder %s3879_s28, %s3879_s28 }
  0x9c   :  { %p3886_p0 = por %p3885_p13, %p3884_p12 }
  0x9e   :  { %p3887_p1 = pnand %p3886_p0, %p3880_p11 }
  0xa0   :  { %3890 = shalt.err (!%p3887_p1)
}
  0xa1   :  { %181 = dma.hbm_to_vmem [thread:$0]  %s4170_s12, 12288, %s176_s22, [#allocation9], %s4035_s0, %s4035_s0, %s4036_s25  }
  0xa2   :  { %s3899_s19 = scalar_lea.vmem %s220_s26, 12288  ;;  %p3904_p3 = scmp.lt.s32.totalorder %s220_s26, %s220_s26 }
  0xa3   :  { %p3900_p2 = scmp.ne.s32.totalorder %s220_s26, %s3899_s19  ;;  %p3905_p4 = scmp.lt.s32.totalorder %s3899_s19, %s3899_s19 }
  0xa5   :  { %p3906_p5 = por %p3905_p4, %p3904_p3 }
  0xa7   :  { %p3907_p6 = pnand %p3906_p5, %p3900_p2 }
  0xa9   :  { %3910 = shalt.err (!%p3907_p6)
}
  0xaa   :  { %225 = dma.hbm_to_vmem [thread:$0]  %s4230_s6, 12288, %s220_s26, [#allocation12], %s4035_s0, %s4035_s0, %s4036_s25  }
  0xab   :  { %s4044_s29 = smov [#allocation16]   ;;  %s4045_s2 = smov [#allocation19]  }
  0xac   :  { %s257_s1 = sshll.u32 %s4044_s29, 4  ;;  %s289_s7 = sshll.u32 %s4045_s2, 4  ;;  %s258_s1 = int_to_ptr.vmem [resolvable:$true] %s257_s1  ;;  %s290_s7 = int_to_ptr.vmem [resolvable:$true] %s289_s7 }
  0xad   :  { %s3919_s11 = scalar_lea.vmem %s258_s1, 1664  ;;  %p3924_p8 = scmp.lt.s32.totalorder %s258_s1, %s258_s1 }
  0xae   :  { %p3920_p7 = scmp.ne.s32.totalorder %s258_s1, %s3919_s11  ;;  %p3925_p9 = scmp.lt.s32.totalorder %s3919_s11, %s3919_s11 }
  0xb0   :  { %p3926_p10 = por %p3925_p9, %p3924_p8 }
  0xb2   :  { %p3927_p11 = pnand %p3926_p10, %p3920_p7 }
  0xb4   :  { %3930 = shalt.err (!%p3927_p11)
}
  0xb5   :  { %263 = dma.hbm_to_vmem [thread:$0]  %s4275_s14, 1664, %s258_s1, [#allocation15], %s4038_s30, %s4038_s30, %s4039_s10  }
  0xb6   :  { %s3939_s12 = scalar_lea.vmem %s290_s7, 2816  ;;  %p3944_p13 = scmp.lt.s32.totalorder %s290_s7, %s290_s7 }
  0xb7   :  { %p3940_p12 = scmp.ne.s32.totalorder %s290_s7, %s3939_s12  ;;  %p3945_p0 = scmp.lt.s32.totalorder %s3939_s12, %s3939_s12 }
  0xb9   :  { %p3946_p1 = por %p3945_p0, %p3944_p13 }
  0xbb   :  { %p3947_p2 = pnand %p3946_p1, %p3940_p12 }
  0xbd   :  { %3950 = shalt.err (!%p3947_p2)
}
  0xbe   :  { %295 = dma.hbm_to_vmem [thread:$0]  %s4305_s3, 2816, %s290_s7, [#allocation18], %s4038_s30, %s4038_s30, %s4039_s10  }
  0xbf   :  { %3971 = dma.done.wait [#allocation6], 12288  }
  0xc0   :  { %3972 = vsyncadd [#allocation6], 4294955008 }
  0xc1   :  { %3973 = dma.done.wait [#allocation9], 24576  }
  0xc2   :  { %3974 = vsyncadd [#allocation9], 4294942720 }
  0xc3   :  { %3975 = dma.done.wait [#allocation12], 24576  }
  0xc4   :  { %3976 = vsyncadd [#allocation12], 4294942720 }
  0xc5   :  { %3977 = dma.done.wait [#allocation15], 2816  }
  0xc6   :  { %3978 = vsyncadd [#allocation15], 4294964480 }
  0xc7   :  { %3979 = dma.done.wait [#allocation18], 4992  }
  0xc8   :  { %3980 = vsyncadd [#allocation18], 4294962304  ;;  %vm332_vm0 = vcmask 13312   ;;  %v331_v1 = vld [vmem:[%s4080_s5] sm:$0x3f]  ;;  %vm336_vm1 = vcmask 1045504  }
  0xc9   :  { %v333_v2 = vsel %vm332_vm0, %v331_v1, inf  ;;  %v344_v3 = vsel %vm332_vm0, %v331_v1, -inf  ;;  %v4046_v17 = vmov 0   ;;  %v3503_v47 = vld [vmem:[%s4085_s9] ss:$0 sm:$0xff]  ;;  %v4047_v54 = vmov 1  }
  0xca   :  { %334 = vmin.xlane.f32.xlu0 %v333_v2  ;;  %3724 = vset.pattern.permute.xlu1 %v4046_v17  ;;  %v3504_v49 = vld [vmem:[%s4090_s13] ss:$0 sm:$0xff]  ;;  %v570_v55 = vld [vmem:[#allocation5 + $0xf8] sm:$0xff]  ;;  %v569_v56 = vld [vmem:[#allocation5 + $0xf0] sm:$0xff]  ;;  %vm427_vm3 = vcmask 521216   ;;  %s4776_s9 = sld [smem:[#allocation27_spill]] }
  0xcb   :  { %3726 = vset.pattern.permute.xlu0 %v4046_v17  ;;  %v568_v57 = vld [vmem:[#allocation5 + $0xe8] sm:$0xff]  ;;  %651 = vmatprep.subr.mxu0 %v570_v55  ;;  %v567_v58 = vld [vmem:[#allocation5 + $0xe0] sm:$0xff]  ;;  %v566_v59 = vld [vmem:[#allocation5 + $0xd8] sm:$0xff]  ;;  %s4049_s13 = smov 64   ;;  %s4052_s3 = smov 98   ;;  %vm872_vm9 = vcmask 1041408  }
  0xcc   :  { %652 = vmatpush1.msra.mxu0 %v569_v56  ;;  %v565_v60 = vld [vmem:[#allocation5 + $0xd0] sm:$0xff]  ;;  %v564_v61 = vld [vmem:[#allocation5 + $0xc8] sm:$0xff]  ;;  %v563_v62 = vld [vmem:[#allocation5 + $0xc0] sm:$0xff]  ;;  %s4053_s14 = smov 66   ;;  %vm4054_vm10 = vmmov 0   ;;  %s4055_s6 = smov 34  }
  0xcd   :  { %653 = vmatprep.subr.mxu0 %v568_v57  ;;  %v562_v63 = vld [vmem:[#allocation5 + $0xb8] sm:$0xff]  ;;  %v561_v0 = vld [vmem:[#allocation5 + $0xb0] sm:$0xff]  ;;  %v559_v2 = vld [vmem:[#allocation5 + $0xa0] sm:$0xff]  ;;  %vm798_vm11 = vcmask 270352   ;;  %vm824_vm12 = vcmask 275456   ;;  %s4782_s0 = sld [smem:[#allocation48_spill]] }
  0xce   :  { %345 = vmax.xlane.f32.xlu0 %v344_v3  ;;  %654 = vmatpush1.msra.mxu0 %v567_v58  ;;  %v558_v3 = vld [vmem:[#allocation5 + $0x98] sm:$0xff]  ;;  %v589_v56 = vld [vmem:[#allocation5 + $0x190] sm:$0xff]  ;;  %v588_v57 = vld [vmem:[#allocation5 + $0x188] sm:$0xff]  ;;  %s4783_s25 = sld [smem:[#allocation49_spill]]  ;;  %vm868_vm14 = vcmask 277504   ;;  %s4056_s8 = smov 4  }
  0xcf   :  { %655 = vmatprep.subr.mxu0 %v566_v59  ;;  %v590_v55 = vld [vmem:[#allocation5 + $0x198] sm:$0xff]  ;;  %s4784_s30 = sld [smem:[#allocation28_spill]]  ;;  %s4057_s22 = smov 36  }
  0xd0   :  { %656 = vmatpush1.msra.mxu0 %v565_v60  ;;  %v404_v60 = vld [vmem:[%s4095_s17] sm:$0x3]  ;;  %s4781_s17 = sld [smem:[#allocation50_spill]]  ;;  %s4058_s23 = smov 68  }
  0xd1   :  { %657 = vmatprep.subr.mxu0 %v564_v61  ;;  %s4785_s27 = sld [smem:[#allocation29_spill]]  ;;  %s4059_s26 = smov 100  }
  0xd2   :  { %658 = vmatpush1.msra.mxu0 %v563_v62  ;;  %s4786_s15 = sld [smem:[#allocation30_spill]]  ;;  %s4060_s12 = smov 38  }
  0xd3   :  { %659 = vmatprep.subr.mxu0 %v562_v63  ;;  %s4787_s16 = sld [smem:[#allocation31_spill]] }
  0xd4   :  { %660 = vmatpush1.msra.mxu0 %v561_v0  ;;  %s4788_s18 = sld [smem:[#allocation32_spill]] }
  0xd5   :  { %s4789_s28 = sld [smem:[#allocation51_spill]] }
  0xd6   :  { %s4790_s19 = sld [smem:[#allocation52_spill]] }
  0xd7   :  { %s4791_s29 = sld [smem:[#allocation33_spill]] }
  0xd8   :  { %s4792_s1 = sld [smem:[#allocation34_spill]] }
  0xd9   :  { %s4793_s2 = sld [smem:[#allocation35_spill]] }
  0xda   :  { %s4794_s7 = sld [smem:[#allocation36_spill]] }
  0xdb   :  { %s4795_s11 = sld [smem:[#allocation37_spill]] }
 0x153   :  { %v335_v4 = vpop.xlane.xlu0 %334 }
 0x154   :  { %v337_v5 = vsel %vm336_vm1, %v335_v4, inf  ;;  %v634_v4 = vld [vmem:[#allocation5 + $0x2f8] sm:$0xff] }
 0x155   :  { %v338_v6 = vrot.slane %v337_v5, 4  ;;  %722 = vmatprep.subr.mxu1 %v634_v4 }
 0x157   :  { %v339_v7 = vmin.f32 %v337_v5, %v338_v6  ;;  %v346_v8 = vpop.xlane.xlu0 %345  ;;  %v557_v5 = vld [vmem:[#allocation5 + $0x90] sm:$0xff] }
 0x158   :  { %v347_v9 = vsel %vm336_vm1, %v346_v8, -inf  ;;  %v633_v6 = vld [vmem:[#allocation5 + $0x2f0] sm:$0xff]  ;;  %v632_v8 = vld [vmem:[#allocation5 + $0x2e8] sm:$0xff] }
 0x159   :  { %v340_v10 = vrot.slane %v339_v7, 2  ;;  %v348_v11 = vrot.slane %v347_v9, 4  ;;  %723 = vmatpush1.msra.mxu1 %v633_v6 }
 0x15a   :  { %724 = vmatprep.subr.mxu1 %v632_v8 }
 0x15b   :  { %v341_v12 = vmin.f32 %v339_v7, %v340_v10  ;;  %v349_v13 = vmax.f32 %v347_v9, %v348_v11  ;;  %v556_v7 = vld [vmem:[#allocation5 + $0x88] sm:$0xff]  ;;  %v631_v9 = vld [vmem:[#allocation5 + $0x2e0] sm:$0xff]  ;;  %v630_v11 = vld [vmem:[#allocation5 + $0x2d8] sm:$0xff] }
 0x15c   :  { %v555_v10 = vld [vmem:[#allocation5 + $0x80] sm:$0xff]  ;;  %725 = vmatpush1.msra.mxu1 %v631_v9 }
 0x15d   :  { %v350_v14 = vrot.slane %v349_v13, 2  ;;  %v342_v15 = vrot.slane %v341_v12, 1  ;;  %726 = vmatprep.subr.mxu1 %v630_v11 }
 0x15f   :  { %v351_v16 = vmax.f32 %v349_v13, %v350_v14  ;;  %v343_v20 = vmin.f32 %v341_v12, %v342_v15  ;;  %v554_v12 = vld [vmem:[#allocation5 + $0x78] sm:$0xff]  ;;  %v629_v13 = vld [vmem:[#allocation5 + $0x2d0] sm:$0xff]  ;;  %v628_v14 = vld [vmem:[#allocation5 + $0x2c8] sm:$0xff] }
 0x160   :  { %v553_v15 = vld [vmem:[#allocation5 + $0x70] sm:$0xff]  ;;  %727 = vmatpush1.msra.mxu1 %v629_v13 }
 0x161   :  { %v352_v18 = vrot.slane %v351_v16, 1  ;;  %v354_v22 = vsub.f32 %v331_v1, %v343_v20  ;;  %v560_v1 = vld [vmem:[#allocation5 + $0xa8] sm:$0xff]  ;;  %728 = vmatprep.subr.mxu1 %v628_v14 }
 0x162   :  { %661 = vmatprep.subr.mxu0 %v560_v1 }
 0x163   :  { %v353_v19 = vmax.f32 %v351_v16, %v352_v18  ;;  %662 = vmatpush1.msra.mxu0 %v559_v2  ;;  %v627_v16 = vld [vmem:[#allocation5 + $0x2c0] sm:$0xff]  ;;  %v552_v18 = vld [vmem:[#allocation5 + $0x68] sm:$0xff] }
 0x164   :  { %663 = vmatprep.subr.mxu0 %v558_v3  ;;  %729 = vmatpush1.msra.mxu1 %v627_v16 }
 0x165   :  { %v355_v21 = vsub.f32 %v353_v19, %v343_v20  ;;  %664 = vmatpush1.msra.mxu0 %v557_v5  ;;  %v626_v19 = vld [vmem:[#allocation5 + $0x2b8] sm:$0xff]  ;;  %v551_v20 = vld [vmem:[#allocation5 + $0x60] sm:$0xff] }
 0x166   :  { %665 = vmatprep.subr.mxu0 %v556_v7  ;;  %730 = vmatprep.subr.mxu1 %v626_v19 }
 0x167   :  { %3733 = vrcp.f32 %v355_v21  ;;  %666 = vmatpush1.msra.mxu0 %v555_v10  ;;  %v625_v21 = vld [vmem:[#allocation5 + $0x2b0] sm:$0xff] }
 0x168   :  { %667 = vmatprep.subr.mxu0 %v554_v12  ;;  %731 = vmatpush1.msra.mxu1 %v625_v21 }
 0x169   :  { %668 = vmatpush1.msra.mxu0 %v553_v15 }
 0x16a   :  { %669 = vmatprep.subr.mxu0 %v552_v18 }
 0x16b   :  { %670 = vmatpush1.msra.mxu0 %v551_v20 }
 0x174   :  { %v3734_v23 = vpop.eup %3733 }
 0x175   :  { %v357_v24 = vmul.f32 %v3734_v23, %v354_v22  ;;  %v550_v22 = vld [vmem:[#allocation5 + $0x58] sm:$0xff]  ;;  %v624_v23 = vld [vmem:[#allocation5 + $0x2a8] sm:$0xff] }
 0x176   :  { %671 = vmatprep.subr.mxu0 %v550_v22  ;;  %732 = vmatprep.subr.mxu1 %v624_v23 }
 0x177   :  { %3633 = vpush %v357_v24 }
 0x1a8   :  { %s3634_s5 = spop %3633 }
 0x1a9   :  { %v360_v25 = vstv %s3634_s5  ;;  %s4061_s5 = smov 70  }
 0x1aa   :  { %v362_v26 = vsub.f32 %v357_v24, %v360_v25  ;;  %v549_v24 = vld [vmem:[#allocation5 + $0x50] sm:$0xff]  ;;  %v623_v25 = vld [vmem:[#allocation5 + $0x2a0] sm:$0xff] }
 0x1ab   :  { %672 = vmatpush1.msra.mxu0 %v549_v24  ;;  %733 = vmatpush1.msra.mxu1 %v623_v25  ;;  %v4048_v24 = vmov 1966171168  }
 0x1ac   :  { %v365_v27 = vsel %vm332_vm0, %v362_v26, 0.0  ;;  %793 = vst.msk [vmem:[#allocation2] sm:$0x3f] %vm332_vm0, %v362_v26  ;;  %v473_v25 = vunpack.c.l.s4 %v4048_v24 }
 0x1ad   :  { %v366_v28 = vrot.slane %v365_v27, 4 }
 0x1af   :  { %v367_v29 = vadd.f32 %v366_v28, %v365_v27  ;;  %v622_v27 = vld [vmem:[#allocation5 + $0x298] sm:$0xff]  ;;  %v547_v28 = vld [vmem:[#allocation5 + $0x40] sm:$0xff] }
 0x1b0   :  { %734 = vmatprep.subr.mxu1 %v622_v27  ;;  %v3505_v27 = vld [vmem:[%s4100_s21] ss:$0 sm:$0xff]  ;;  %s4051_s21 = smov 2  }
 0x1b1   :  { %v368_v30 = vrot.slane %v367_v29, 2 }
 0x1b3   :  { %v369_v31 = vadd.f32 %v368_v30, %v367_v29  ;;  %v621_v29 = vld [vmem:[#allocation5 + $0x290] sm:$0xff]  ;;  %v546_v30 = vld [vmem:[#allocation5 + $0x38] sm:$0xff] }
 0x1b4   :  { %735 = vmatpush1.msra.mxu1 %v621_v29  ;;  %v474_v29 = vunpack.c.0.s8 %v473_v25 }
 0x1b5   :  { %v370_v32 = vrot.slane %v369_v31, 1 }
 0x1b7   :  { %v371_v33 = vadd.f32 %v370_v32, %v369_v31  ;;  %v620_v31 = vld [vmem:[#allocation5 + $0x288] sm:$0xff]  ;;  %v545_v32 = vld [vmem:[#allocation5 + $0x30] sm:$0xff] }
 0x1b8   :  { %736 = vmatprep.subr.mxu1 %v620_v31  ;;  %v587_v31 = vld [vmem:[#allocation5 + $0x180] sm:$0xff] }
 0x1b9   :  { %v373_v34 = vmul.f32 0.16666667, %v371_v33  ;;  %v619_v33 = vld [vmem:[#allocation5 + $0x280] sm:$0xff] }
 0x1ba   :  { %737 = vmatpush1.msra.mxu1 %v619_v33 }
 0x1bb   :  { %v374_v35 = vsub.f32 %v362_v26, %v373_v34  ;;  %v548_v26 = vld [vmem:[#allocation5 + $0x48] sm:$0xff] }
 0x1bc   :  { %673 = vmatprep.subr.mxu0 %v548_v26  ;;  %v544_v34 = vld [vmem:[#allocation5 + $0x28] sm:$0xff] }
 0x1bd   :  { %v375_v36 = vmul.f32 %v374_v35, %v374_v35  ;;  %674 = vmatpush1.msra.mxu0 %v547_v28 }
 0x1be   :  { %675 = vmatprep.subr.mxu0 %v546_v30  ;;  %v3506_v30 = vld [vmem:[%s4776_s9] ss:$0 sm:$0xff]  ;;  %s4062_s9 = smov 102  }
 0x1bf   :  { %v376_v37 = vsel %vm332_vm0, %v375_v36, 0.0  ;;  %676 = vmatpush1.msra.mxu0 %v545_v32  ;;  %v542_v36 = vld [vmem:[#allocation5 + $0x18] sm:$0xff] }
 0x1c0   :  { %v377_v38 = vrot.slane %v376_v37, 4  ;;  %677 = vmatprep.subr.mxu0 %v544_v34  ;;  %v618_v32 = vld [vmem:[#allocation5 + $0x278] sm:$0xff] }
 0x1c1   :  { %738 = vmatprep.subr.mxu1 %v618_v32  ;;  %v586_v34 = vld [vmem:[#allocation5 + $0x178] sm:$0xff] }
 0x1c2   :  { %v378_v39 = vadd.f32 %v377_v38, %v376_v37  ;;  %v541_v37 = vld [vmem:[#allocation5 + $0x10] sm:$0xff]  ;;  %v540_v38 = vld [vmem:[#allocation5 + $0x8] sm:$0xff] }
 0x1c4   :  { %v379_v40 = vrot.slane %v378_v39, 2 }
 0x1c6   :  { %v380_v41 = vadd.f32 %v379_v40, %v378_v39  ;;  %v539_v39 = vld [vmem:[#allocation5] sm:$0xff]  ;;  %v602_v40 = vld [vmem:[#allocation5 + $0x1f8] sm:$0xff] }
 0x1c8   :  { %v381_v42 = vrot.slane %v380_v41, 1 }
 0x1ca   :  { %v382_v43 = vadd.f32 %v381_v42, %v380_v41  ;;  %v601_v41 = vld [vmem:[#allocation5 + $0x1f0] sm:$0xff]  ;;  %v600_v42 = vld [vmem:[#allocation5 + $0x1e8] sm:$0xff] }
 0x1cc   :  { %v383_v44 = vmul.f32 0.16666667, %v382_v43  ;;  %v599_v43 = vld [vmem:[#allocation5 + $0x1e0] sm:$0xff] }
 0x1ce   :  { %v384_v45 = vadd.f32 1e-05, %v383_v44  ;;  %v598_v44 = vld [vmem:[#allocation5 + $0x1d8] sm:$0xff] }
 0x1d0   :  { %3735 = vrsqrt.f32 %v384_v45  ;;  %v597_v45 = vld [vmem:[#allocation5 + $0x1d0] sm:$0xff] }
 0x1dd   :  { %v3736_v46 = vpop.eup %3735 }
 0x1de   :  { %v386_v48 = vmul.f32 %v3736_v46, %v374_v35  ;;  %v543_v35 = vld [vmem:[#allocation5 + $0x20] sm:$0xff]  ;;  %v596_v46 = vld [vmem:[#allocation5 + $0x1c8] sm:$0xff] }
 0x1df   :  { %678 = vmatpush1.msra.mxu0 %v543_v35  ;;  %v617_v35 = vld [vmem:[#allocation5 + $0x270] sm:$0xff] }
 0x1e0   :  { %v393_v50 = vmul.f32 %v3503_v47, %v386_v48  ;;  %679 = vmatprep.subr.mxu0 %v542_v36  ;;  %v410_v47 = vlaneseq  ;;  %v595_v48 = vld [vmem:[#allocation5 + $0x1c0] sm:$0xff]  ;;  %739 = vmatpush1.msra.mxu1 %v617_v35  ;;  %v585_v36 = vld [vmem:[#allocation5 + $0x170] sm:$0xff] }
 0x1e1   :  { %680 = vmatpush1.msra.mxu0 %v541_v37  ;;  %v616_v37 = vld [vmem:[#allocation5 + $0x268] sm:$0xff] }
 0x1e2   :  { %v400_v51 = vadd.f32 %v3504_v49, %v393_v50  ;;  %681 = vmatprep.subr.mxu0 %v540_v38  ;;  %v594_v49 = vld [vmem:[#allocation5 + $0x1b8] sm:$0xff]  ;;  %v593_v50 = vld [vmem:[#allocation5 + $0x1b0] sm:$0xff]  ;;  %740 = vmatprep.subr.mxu1 %v616_v37  ;;  %vm4399_vm5 = vcmp.lt.s32.totalorder %v410_v47, 64  ;;  %vm497_vm6 = vcmp.ge.s32.totalorder %v410_v47, 64  ;;  %vm498_vm7 = vcmp.lt.s32.totalorder %v410_v47, 128 }
 0x1e3   :  { %682 = vmatpush1.msra.mxu0 %v539_v39  ;;  %v584_v39 = vld [vmem:[#allocation5 + $0x168] sm:$0xff]  ;;  %vm4422_vm8 = vmand %vm497_vm6, %vm498_vm7  ;;  %vm1455_vm6 = vcmask 1043456   ;;  %vm1377_vm7 = vcmask 549152  }
 0x1e4   :  { %vm401_vm2 = vcmp.ge.f32.partialorder %v400_v51, 0.0  ;;  %v402_v52 = vmul.f32 0.01, %v400_v51  ;;  %683 = vmatprep.subr.mxu0 %v602_v40  ;;  %v615_v40 = vld [vmem:[#allocation5 + $0x260] sm:$0xff]  ;;  %v867_v37 = vld [vmem:[%s4781_s17 + $0x20] sm:$0x3] }
 0x1e5   :  { %684 = vmatpush2.msra.mxu0 %v601_v41  ;;  %v583_v41 = vld [vmem:[#allocation5 + $0x160] sm:$0xff]  ;;  %741 = vmatpush1.msra.mxu1 %v615_v40  ;;  %v864_v40 = vld [vmem:[%s4781_s17 + $0x8] sm:$0xff] }
 0x1e6   :  { %v403_v53 = vsel %vm401_vm2, %v400_v51, %v402_v52  ;;  %685 = vmatprep.subr.mxu0 %v600_v42  ;;  %v592_v51 = vld [vmem:[#allocation5 + $0x1a8] sm:$0xff]  ;;  %v4380_v52 = vshrl.u32 %v410_v47, 7 }
 0x1e7   :  { %407 = vperm.xlu1 %3724, %v403_v53   ;;  %686 = vmatpush2.msra.mxu0 %v599_v43  ;;  %v614_v43 = vld [vmem:[#allocation5 + $0x258] sm:$0xff] }
 0x1e8   :  { %687 = vmatprep.subr.mxu0 %v598_v44  ;;  %v4383_v58 = vsub.s32 0, %v4380_v52  ;;  %v4386_v59 = vsub.s32 1, %v4380_v52  ;;  %v4396_v42 = vsub.s32 %v474_v29, %v4380_v52  ;;  %v582_v44 = vld [vmem:[#allocation5 + $0x158] sm:$0xff]  ;;  %742 = vmatprep.subr.mxu1 %v614_v43 }
 0x1e9   :  { %688 = vmatpush2.msra.mxu0 %v597_v45  ;;  %v613_v45 = vld [vmem:[#allocation5 + $0x250] sm:$0xff] }
 0x1ea   :  { %689 = vmatprep.subr.mxu0 %v596_v46  ;;  %v413_v62 = vrot.slane %v404_v60, %v4383_v58  ;;  %v422_v63 = vrot.slane %v404_v60, %v4386_v59  ;;  %743 = vmatpush1.msra.mxu1 %v613_v45  ;;  %v579_v60 = vld [vmem:[#allocation5 + $0x140] sm:$0xff] }
 0x1eb   :  { %3725 = vset.pattern.permute.xlu1 %v4047_v54  ;;  %690 = vmatpush2.msra.mxu0 %v595_v48 }
 0x1ec   :  { %416 = vperm.xlu1 %3725, %v403_v53   ;;  %691 = vmatprep.subr.mxu0 %v594_v49  ;;  %v591_v53 = vld [vmem:[#allocation5 + $0x1a0] sm:$0xff]  ;;  %v581_v49 = vld [vmem:[#allocation5 + $0x150] sm:$0xff] }
 0x1ed   :  { %692 = vmatpush2.msra.mxu0 %v593_v50  ;;  %v612_v50 = vld [vmem:[#allocation5 + $0x248] sm:$0xff] }
 0x1ee   :  { %693 = vmatprep.subr.mxu0 %v592_v51  ;;  %744 = vmatprep.subr.mxu1 %v612_v50 }
 0x1ef   :  { %694 = vmatpush2.msra.mxu0 %v591_v53  ;;  %v580_v53 = vld [vmem:[#allocation5 + $0x148] sm:$0xff] }
 0x1f0   :  { %695 = vmatprep.subr.mxu0 %v590_v55  ;;  %v611_v55 = vld [vmem:[#allocation5 + $0x240] sm:$0xff] }
 0x1f1   :  { %696 = vmatpush2.msra.mxu0 %v589_v56  ;;  %745 = vmatpush1.msra.mxu1 %v611_v55 }
 0x1f2   :  { %697 = vmatprep.subr.mxu0 %v588_v57 }
 0x1f3   :  { %698 = vmatpush2.msra.mxu0 %v587_v31 }
 0x1f4   :  { %699 = vmatprep.subr.mxu0 %v586_v34 }
 0x1f5   :  { %700 = vmatpush2.msra.mxu0 %v585_v36 }
 0x1f6   :  { %701 = vmatprep.subr.mxu0 %v584_v39  ;;  %v865_v39 = vld [vmem:[%s4781_s17 + $0x10] sm:$0xff] }
 0x1f7   :  { %702 = vmatpush2.msra.mxu0 %v583_v41  ;;  %v863_v41 = vld [vmem:[%s4781_s17] sm:$0xff] }
 0x1f8   :  { %703 = vmatprep.subr.mxu0 %v582_v44 }
 0x1f9   :  { %704 = vmatpush2.msra.mxu0 %v581_v49 }
 0x1fa   :  { %705 = vmatprep.subr.mxu0 %v580_v53 }
 0x1fb   :  { %706 = vmatpush2.msra.mxu0 %v579_v60 }
 0x262   :  { %v408_v61 = vpop.permute.xlu1 %407 }
 0x263   :  { %v414_v1 = vmul.f32 %v413_v62, %v408_v61  ;;  %v610_v61 = vld [vmem:[#allocation5 + $0x238] sm:$0xff] }
 0x264   :  { %746 = vmatprep.subr.mxu1 %v610_v61  ;;  %v578_v62 = vld [vmem:[#allocation5 + $0x138] sm:$0xff] }
 0x265   :  { %707 = vmatprep.subr.mxu0 %v578_v62 }
 0x267   :  { %v417_v0 = vpop.permute.xlu1 %416 }
 0x268   :  { %v423_v2 = vmul.f32 %v422_v63, %v417_v0  ;;  %v609_v63 = vld [vmem:[#allocation5 + $0x230] sm:$0xff] }
 0x269   :  { %747 = vmatpush1.msra.mxu1 %v609_v63 }
 0x26a   :  { %v424_v3 = vadd.f32 %v423_v2, %v414_v1 }
 0x26c   :  { %v428_v4 = vsel %vm427_vm3, %v424_v3, 0.0 }
 0x26d   :  { %v429_v5 = vrot.slane %v428_v4, 4 }
 0x26f   :  { %v430_v6 = vadd.f32 %v429_v5, %v428_v4  ;;  %v608_v4 = vld [vmem:[#allocation5 + $0x228] sm:$0xff] }
 0x270   :  { %748 = vmatprep.subr.mxu1 %v608_v4  ;;  %v576_v5 = vld [vmem:[#allocation5 + $0x128] sm:$0xff] }
 0x271   :  { %v431_v7 = vrot.slane %v430_v6, 2 }
 0x273   :  { %v432_v8 = vadd.f32 %v431_v7, %v430_v6  ;;  %v607_v6 = vld [vmem:[#allocation5 + $0x220] sm:$0xff] }
 0x274   :  { %749 = vmatpush1.msra.mxu1 %v607_v6 }
 0x275   :  { %v433_v9 = vrot.slane %v432_v8, 1 }
 0x277   :  { %v434_v10 = vadd.f32 %v433_v9, %v432_v8 }
 0x279   :  { %v435_v11 = vmul.f32 0.16666667, %v434_v10  ;;  %v575_v10 = vld [vmem:[#allocation5 + $0x120] sm:$0xff] }
 0x27b   :  { %v436_v12 = vsub.f32 %v424_v3, %v435_v11  ;;  %v577_v3 = vld [vmem:[#allocation5 + $0x130] sm:$0xff]  ;;  %v606_v11 = vld [vmem:[#allocation5 + $0x218] sm:$0xff] }
 0x27c   :  { %708 = vmatpush2.msra.mxu0 %v577_v3  ;;  %750 = vmatprep.subr.mxu1 %v606_v11 }
 0x27d   :  { %v437_v13 = vmul.f32 %v436_v12, %v436_v12  ;;  %709 = vmatprep.subr.mxu0 %v576_v5 }
 0x27e   :  { %710 = vmatpush2.msra.mxu0 %v575_v10 }
 0x27f   :  { %v438_v14 = vsel %vm427_vm3, %v437_v13, 0.0  ;;  %v605_v13 = vld [vmem:[#allocation5 + $0x210] sm:$0xff] }
 0x280   :  { %v439_v15 = vrot.slane %v438_v14, 4  ;;  %751 = vmatpush1.msra.mxu1 %v605_v13 }
 0x282   :  { %v440_v16 = vadd.f32 %v439_v15, %v438_v14 }
 0x284   :  { %v441_v18 = vrot.slane %v440_v16, 2 }
 0x286   :  { %v442_v19 = vadd.f32 %v441_v18, %v440_v16  ;;  %v573_v16 = vld [vmem:[#allocation5 + $0x110] sm:$0xff]  ;;  %v604_v18 = vld [vmem:[#allocation5 + $0x208] sm:$0xff] }
 0x287   :  { %752 = vmatprep.subr.mxu1 %v604_v18 }
 0x288   :  { %v443_v20 = vrot.slane %v442_v19, 1 }
 0x28a   :  { %v444_v21 = vadd.f32 %v443_v20, %v442_v19  ;;  %v572_v19 = vld [vmem:[#allocation5 + $0x108] sm:$0xff]  ;;  %v603_v20 = vld [vmem:[#allocation5 + $0x200] sm:$0xff] }
 0x28b   :  { %753 = vmatpush1.msra.mxu1 %v603_v20 }
 0x28c   :  { %v445_v22 = vmul.f32 0.16666667, %v444_v21  ;;  %v571_v21 = vld [vmem:[#allocation5 + $0x100] sm:$0xff] }
 0x28e   :  { %v446_v23 = vadd.f32 1e-05, %v445_v22 }
 0x290   :  { %3737 = vrsqrt.f32 %v446_v23  ;;  %v4050_v23 = vmov 0.0  }
 0x291   :  { %786 = vmatprep.mubr.f32.mxu1 %v4050_v23  ;;  %3570 = vmatprep.subr.mxu1 %v4050_v23 }
 0x29d   :  { %v3738_v26 = vpop.eup %3737 }
 0x29e   :  { %v448_v28 = vmul.f32 %v3738_v26, %v436_v12  ;;  %v574_v12 = vld [vmem:[#allocation5 + $0x118] sm:$0xff] }
 0x29f   :  { %711 = vmatprep.subr.mxu0 %v574_v12  ;;  %v3507_v12 = vld [vmem:[%s4782_s0] ss:$0 sm:$0xff]  ;;  %s4800_s0 = sld [smem:[#allocation40_spill]] }
 0x2a0   :  { %v455_v33 = vmul.f32 %v3505_v27, %v448_v28  ;;  %712 = vmatpush2.msra.mxu0 %v573_v16  ;;  %v4433_v28 = vsub.s32 2, %v4380_v52 }
 0x2a1   :  { %713 = vmatprep.subr.mxu0 %v572_v19 }
 0x2a2   :  { %v462_v38 = vadd.f32 %v3506_v30, %v455_v33  ;;  %714 = vmatpush2.msra.mxu0 %v571_v21 }
 0x2a4   :  { %vm463_vm4 = vcmp.ge.f32.partialorder %v462_v38, 0.0  ;;  %v464_v46 = vmul.f32 0.01, %v462_v38 }
 0x2a6   :  { %v465_v51 = vsel %vm463_vm4, %v462_v38, %v464_v46  ;;  %v866_v38 = vld [vmem:[%s4781_s17 + $0x18] sm:$0xff]  ;;  %vm1371_vm4 = vcmask 292112   ;;  %s4063_s17 = smov 6  }
 0x2a7   :  { %v478_v56 = vrot.slane %v465_v51, %v4396_v42  ;;  %v509_v57 = vcombine.high %v465_v51, %v465_v51  ;;  %470 = vst.msk [vmem:[#allocation3] sm:$0x1] %vm4399_vm5, %v465_v51 }
 0x2a9   :  { %v479_v0 = vcombine.high %v478_v56, %v478_v56  ;;  %v486_v1 = vrot.slane %v478_v56, %v4396_v42  ;;  %v516_v2 = vrot.slane %v509_v57, %v4396_v42 }
 0x2ab   :  { %v493_v7 = vrot.slane %v479_v0, %v4396_v42  ;;  %v501_v8 = vcombine.high %v486_v1, %v486_v1  ;;  %v523_v9 = vrot.slane %v516_v2, %v4396_v42  ;;  %v526_v15 = vcombine.high %v516_v2, %v516_v2 }
 0x2ad   :  { %494 = vrot.lane.b32.xlu0 %v493_v7, %s4049_s13  ;;  %v504_v14 = vcombine.high %v493_v7, %v493_v7  ;;  %503 = vst.msk [vmem:[#allocation3 + $0x1] sm:$0x1] %vm4399_vm5, %v501_v8  ;;  %525 = vst.msk [vmem:[#allocation3 + $0x2] sm:$0x1] %vm4399_vm5, %v523_v9  ;;  %v533_v22 = vrot.slane %v526_v15, %v4396_v42 }
 0x2af   :  { %505 = vrot.lane.b32.xlu1 %v504_v14, %s4049_s13  ;;  %v3508_v14 = vld [vmem:[%s4783_s25] ss:$0 sm:$0xff]  ;;  %s4801_s25 = sld [smem:[#allocation41_spill]] }
 0x2b3   :  { %534 = vrot.lane.b32.xlu1 %v533_v22, %s4049_s13 }
 0x31f   :  { %v495_v25 = vpop.permute.xlu0 %494 }
 0x320   :  { %500 = vst.msk [vmem:[#allocation3] sm:$0x1] %vm4422_vm8, %v495_v25 }
 0x321   :  { %v506_v26 = vpop.permute.xlu1 %505 }
 0x322   :  { %508 = vst.msk [vmem:[#allocation3 + $0x1] sm:$0x1] %vm4422_vm8, %v506_v26 }
 0x325   :  { %v535_v27 = vpop.permute.xlu1 %534 }
 0x326   :  { %537 = vst.msk [vmem:[#allocation3 + $0x2] sm:$0x1] %vm4422_vm8, %v535_v27 }
 0x32d   :  { %v538_v47 = vld [vmem:[#allocation3] sm:$0x7] }
 0x32e   :  { %v643_v29 = vrot.slane %v538_v47, %v4386_v59  ;;  %v647_v30 = vrot.slane %v538_v47, %v4433_v28  ;;  %v639_v31 = vrot.slane %v538_v47, %v4383_v58 }
 0x330   :  { %715 = vmatprep.mubr.f32.mxu0 %v643_v29  ;;  %787 = vmatmul.mubr.f32.vlgmr.msra.gmra.mxu1 %v647_v30 }
 0x331   :  { %716 = vmatmul.mubr.f32.vlgmr.msra.gmra.mxu0 %v639_v31  ;;  %3571 = vmatpush3.msk.msra.mxu1 %vm872_vm9, %v867_v37 }
 0x332   :  { %1360 = vmatprep.mubr.f32.mxu0 %v4050_v23  ;;  %3580 = vmatprep.mubr.msk.f32.mxu1 %vm4054_vm10, %v4050_v23 }
 0x333   :  { %3572 = vmatprep.subr.mxu1 %v4050_v23 }
 0x334   :  { %3573 = vmatpush3.msra.mxu1 %v866_v38 }
 0x335   :  { %3574 = vmatprep.subr.mxu1 %v4050_v23 }
 0x336   :  { %3575 = vmatpush3.msra.mxu1 %v865_v39 }
 0x337   :  { %3576 = vmatprep.subr.mxu1 %v4050_v23 }
 0x338   :  { %3577 = vmatpush3.msra.mxu1 %v864_v40 }
 0x339   :  { %3578 = vmatprep.subr.mxu1 %v4050_v23 }
 0x33a   :  { %3579 = vmatpush3.msra.mxu1 %v863_v41 }
 0x3f0   :  { %v788_v32 = vpop.f32.mrf.mxu1 }
 0x3f1   :  { %v717_v33 = vpop.f32.mrf.mxu0 }
 0x3f2   :  { %v789_v34 = vadd.f32 %v788_v32, %v717_v33  ;;  %v790_v35 = vpop.f32.mrf.mxu1 }
 0x3f3   :  { %v719_v52 = vpop.f32.mrf.mxu0 }
 0x3f4   :  { %v791_v36 = vadd.f32 %v790_v35, %v719_v52  ;;  %795 = vrot.lane.b32.xlu1 %v789_v34, %s4051_s21 }
 0x3f6   :  { %813 = vrot.lane.b32.xlu0 %v791_v36, %s4051_s21  ;;  %s4796_s21 = sld [smem:[#allocation53_spill]] }
 0x3f8   :  { %800 = vrot.lane.b32.xlu1 %v789_v34, %s4052_s3 }
 0x3fc   :  { %804 = vrot.lane.b32.xlu1 %v789_v34, %s4053_s14  ;;  %s4798_s14 = sld [smem:[#allocation38_spill]] }
 0x400   :  { %808 = vrot.lane.b32.xlu1 %v789_v34, %s4055_s6 }
 0x404   :  { %817 = vrot.lane.b32.xlu1 %v791_v36, %s4052_s3  ;;  %s4797_s3 = sld [smem:[#allocation54_spill]] }
 0x466   :  { %v796_v43 = vpop.permute.xlu1 %795 }
 0x467   :  { %799 = vst.msk [vmem:[#allocation2] sm:$0x1] %vm798_vm11, %v796_v43 }
 0x468   :  { %v814_v44 = vpop.permute.xlu0 %813 }
 0x469   :  { %816 = vst.msk [vmem:[#allocation2 + $0x4] sm:$0x1] %vm798_vm11, %v814_v44  ;;  %v3511_v44 = vld [vmem:[%s4784_s30] ss:$0 sm:$0xff]  ;;  %s4802_s30 = sld [smem:[#allocation42_spill]] }
 0x46a   :  { %v801_v45 = vpop.permute.xlu1 %800 }
 0x46b   :  { %803 = vst.msk [vmem:[#allocation2 + $0x1] sm:$0x1] %vm798_vm11, %v801_v45 }
 0x46e   :  { %v805_v46 = vpop.permute.xlu1 %804 }
 0x46f   :  { %807 = vst.msk [vmem:[#allocation2 + $0x2] sm:$0x1] %vm798_vm11, %v805_v46  ;;  %v3512_v46 = vld [vmem:[%s4785_s27] ss:$0 sm:$0xff]  ;;  %s4064_s27 = smov 72  }
 0x472   :  { %v809_v49 = vpop.permute.xlu1 %808 }
 0x473   :  { %811 = vst.msk [vmem:[#allocation2 + $0x3] sm:$0x1] %vm798_vm11, %v809_v49 }
 0x476   :  { %v818_v50 = vpop.permute.xlu1 %817 }
 0x477   :  { %820 = vst.msk [vmem:[#allocation2 + $0x5] sm:$0x1] %vm798_vm11, %v818_v50  ;;  %vm1403_vm11 = vcmask 553984  }
 0x47e   :  { %v821_v51 = vld [vmem:[#allocation2] sm:$0x3f] }
 0x47f   :  { %v825_v53 = vsel %vm824_vm12, %v821_v51, 0.0 }
 0x480   :  { %v826_v55 = vrot.slane %v825_v53, 4 }
 0x482   :  { %v827_v56 = vadd.f32 %v826_v55, %v825_v53  ;;  %v1144_v55 = vld [vmem:[#allocation8 + $0xf8] sm:$0xff] }
 0x483   :  { %1225 = vmatprep.subr.mxu1 %v1144_v55  ;;  %v1172_v55 = vld [vmem:[#allocation8 + $0x1d8] sm:$0xff] }
 0x484   :  { %v828_v57 = vrot.slane %v827_v56, 2 }
 0x486   :  { %v829_v60 = vadd.f32 %v828_v57, %v827_v56  ;;  %v1143_v56 = vld [vmem:[#allocation8 + $0xf0] sm:$0xff]  ;;  %v1142_v57 = vld [vmem:[#allocation8 + $0xe8] sm:$0xff] }
 0x488   :  { %v830_v61 = vrot.slane %v829_v60, 1 }
 0x48a   :  { %v831_v62 = vadd.f32 %v830_v61, %v829_v60  ;;  %v1141_v60 = vld [vmem:[#allocation8 + $0xe0] sm:$0xff]  ;;  %v1140_v61 = vld [vmem:[#allocation8 + $0xd8] sm:$0xff] }
 0x48c   :  { %v832_v63 = vmul.f32 0.16666667, %v831_v62  ;;  %v1139_v62 = vld [vmem:[#allocation8 + $0xd0] sm:$0xff] }
 0x48e   :  { %v833_v0 = vsub.f32 %v821_v51, %v832_v63  ;;  %v1138_v63 = vld [vmem:[#allocation8 + $0xc8] sm:$0xff] }
 0x490   :  { %v834_v1 = vmul.f32 %v833_v0, %v833_v0 }
 0x492   :  { %v835_v2 = vsel %vm824_vm12, %v834_v1, 0.0  ;;  %v1136_v1 = vld [vmem:[#allocation8 + $0xb8] sm:$0xff] }
 0x493   :  { %v836_v3 = vrot.slane %v835_v2, 4 }
 0x495   :  { %v837_v4 = vadd.f32 %v836_v3, %v835_v2  ;;  %v1135_v2 = vld [vmem:[#allocation8 + $0xb0] sm:$0xff]  ;;  %v1134_v3 = vld [vmem:[#allocation8 + $0xa8] sm:$0xff] }
 0x497   :  { %v838_v5 = vrot.slane %v837_v4, 2 }
 0x499   :  { %v839_v6 = vadd.f32 %v838_v5, %v837_v4  ;;  %v1133_v4 = vld [vmem:[#allocation8 + $0xa0] sm:$0xff]  ;;  %v1132_v5 = vld [vmem:[#allocation8 + $0x98] sm:$0xff] }
 0x49b   :  { %v840_v7 = vrot.slane %v839_v6, 1 }
 0x49d   :  { %v841_v8 = vadd.f32 %v840_v7, %v839_v6  ;;  %v1208_v6 = vld [vmem:[#allocation8 + $0x2f8] sm:$0xff]  ;;  %v1131_v7 = vld [vmem:[#allocation8 + $0x90] sm:$0xff] }
 0x49e   :  { %1296 = vmatprep.subr.mxu0 %v1208_v6  ;;  %v1160_v6 = vld [vmem:[#allocation8 + $0x178] sm:$0xff] }
 0x49f   :  { %v842_v9 = vmul.f32 0.16666667, %v841_v8  ;;  %v1207_v8 = vld [vmem:[#allocation8 + $0x2f0] sm:$0xff] }
 0x4a0   :  { %1297 = vmatpush1.msra.mxu0 %v1207_v8 }
 0x4a1   :  { %v843_v10 = vadd.f32 1e-05, %v842_v9  ;;  %v1130_v9 = vld [vmem:[#allocation8 + $0x88] sm:$0xff] }
 0x4a3   :  { %3739 = vrsqrt.f32 %v843_v10  ;;  %v1206_v10 = vld [vmem:[#allocation8 + $0x2e8] sm:$0xff] }
 0x4a4   :  { %1298 = vmatprep.subr.mxu0 %v1206_v10 }
 0x4b0   :  { %v3740_v11 = vpop.eup %3739 }
 0x4b1   :  { %v845_v13 = vmul.f32 %v3740_v11, %v833_v0  ;;  %v1137_v0 = vld [vmem:[#allocation8 + $0xc0] sm:$0xff] }
 0x4b2   :  { %v1205_v11 = vld [vmem:[#allocation8 + $0x2e0] sm:$0xff] }
 0x4b3   :  { %v852_v15 = vmul.f32 %v3507_v12, %v845_v13  ;;  %v1129_v12 = vld [vmem:[#allocation8 + $0x80] sm:$0xff]  ;;  %v1204_v13 = vld [vmem:[#allocation8 + $0x2d8] sm:$0xff]  ;;  %1299 = vmatpush1.msra.mxu0 %v1205_v11 }
 0x4b4   :  { %1300 = vmatprep.subr.mxu0 %v1204_v13 }
 0x4b5   :  { %v859_v16 = vadd.f32 %v3508_v14, %v852_v15  ;;  %v1128_v14 = vld [vmem:[#allocation8 + $0x78] sm:$0xff]  ;;  %v1203_v15 = vld [vmem:[#allocation8 + $0x2d0] sm:$0xff] }
 0x4b6   :  { %1301 = vmatpush1.msra.mxu0 %v1203_v15 }
 0x4b7   :  { %vm860_vm13 = vcmp.ge.f32.partialorder %v859_v16, 0.0  ;;  %v861_v18 = vmul.f32 0.01, %v859_v16 }
 0x4b9   :  { %v862_v19 = vsel %vm860_vm13, %v859_v16, %v861_v18  ;;  %v1202_v16 = vld [vmem:[#allocation8 + $0x2c8] sm:$0xff]  ;;  %v1127_v18 = vld [vmem:[#allocation8 + $0x70] sm:$0xff]  ;;  %vm1451_vm13 = vcmask 556032  }
 0x4ba   :  { %3581 = vmatmul.mubr.msk.f32.vlgmr.msra.gmra.mxu1 %vm868_vm14, %v862_v19  ;;  %v1201_v19 = vld [vmem:[#allocation8 + $0x2c0] sm:$0xff]  ;;  %1302 = vmatprep.subr.mxu0 %v1202_v16 }
 0x4bb   :  { %1226 = vmatpush1.msra.mxu1 %v1143_v56  ;;  %1303 = vmatpush1.msra.mxu0 %v1201_v19  ;;  %v1171_v56 = vld [vmem:[#allocation8 + $0x1d0] sm:$0xff] }
 0x4bc   :  { %1227 = vmatprep.subr.mxu1 %v1142_v57  ;;  %v1170_v57 = vld [vmem:[#allocation8 + $0x1c8] sm:$0xff] }
 0x4bd   :  { %1228 = vmatpush1.msra.mxu1 %v1141_v60  ;;  %v1169_v60 = vld [vmem:[#allocation8 + $0x1c0] sm:$0xff] }
 0x4be   :  { %1229 = vmatprep.subr.mxu1 %v1140_v61  ;;  %v1168_v61 = vld [vmem:[#allocation8 + $0x1b8] sm:$0xff] }
 0x4bf   :  { %1230 = vmatpush1.msra.mxu1 %v1139_v62  ;;  %v1167_v62 = vld [vmem:[#allocation8 + $0x1b0] sm:$0xff] }
 0x4c0   :  { %1231 = vmatprep.subr.mxu1 %v1138_v63  ;;  %v1166_v63 = vld [vmem:[#allocation8 + $0x1a8] sm:$0xff] }
 0x4c1   :  { %1232 = vmatpush1.msra.mxu1 %v1137_v0  ;;  %v1165_v0 = vld [vmem:[#allocation8 + $0x1a0] sm:$0xff] }
 0x4c2   :  { %1233 = vmatprep.subr.mxu1 %v1136_v1  ;;  %v1164_v1 = vld [vmem:[#allocation8 + $0x198] sm:$0xff] }
 0x4c3   :  { %1234 = vmatpush1.msra.mxu1 %v1135_v2  ;;  %v1163_v2 = vld [vmem:[#allocation8 + $0x190] sm:$0xff] }
 0x4c4   :  { %1235 = vmatprep.subr.mxu1 %v1134_v3  ;;  %v1162_v3 = vld [vmem:[#allocation8 + $0x188] sm:$0xff] }
 0x4c5   :  { %1236 = vmatpush1.msra.mxu1 %v1133_v4  ;;  %v1161_v4 = vld [vmem:[#allocation8 + $0x180] sm:$0xff] }
 0x4c6   :  { %1237 = vmatprep.subr.mxu1 %v1132_v5  ;;  %v986_v5 = vld [vmem:[%s4786_s15] sm:$0x3]  ;;  %s4065_s15 = smov 104  }
 0x4c7   :  { %1238 = vmatpush1.msra.mxu1 %v1131_v7  ;;  %v1004_v7 = vrot.slane %v986_v5, %v4386_v59  ;;  %v995_v8 = vrot.slane %v986_v5, %v4383_v58  ;;  %v1151_v5 = vld [vmem:[#allocation8 + $0x130] sm:$0xff] }
 0x4c8   :  { %1239 = vmatprep.subr.mxu1 %v1130_v9 }
 0x4c9   :  { %1240 = vmatpush1.msra.mxu1 %v1129_v12 }
 0x4ca   :  { %1241 = vmatprep.subr.mxu1 %v1128_v14 }
 0x4cb   :  { %1242 = vmatpush1.msra.mxu1 %v1127_v18 }
 0x57a   :  { %v4454_v20 = vpop.f32.mrf.mxu1 }
 0x57b   :  { %v948_v21 = vsel %vm332_vm0, %v4454_v20, 0.0 }
 0x57c   :  { %v949_v22 = vrot.slane %v948_v21, 4  ;;  %v3582_v25 = vpop.f32.mrf.mxu1 }
 0x57d   :  { %v1125_v25 = vld [vmem:[#allocation8 + $0x60] sm:$0xff] }
 0x57e   :  { %v950_v26 = vadd.f32 %v949_v22, %v948_v21  ;;  %v1126_v21 = vld [vmem:[#allocation8 + $0x68] sm:$0xff]  ;;  %v1200_v22 = vld [vmem:[#allocation8 + $0x2b8] sm:$0xff] }
 0x57f   :  { %1243 = vmatprep.subr.mxu1 %v1126_v21  ;;  %1304 = vmatprep.subr.mxu0 %v1200_v22 }
 0x580   :  { %v951_v27 = vrot.slane %v950_v26, 2  ;;  %1244 = vmatpush1.msra.mxu1 %v1125_v25 }
 0x582   :  { %v952_v47 = vadd.f32 %v951_v27, %v950_v26  ;;  %v1199_v26 = vld [vmem:[#allocation8 + $0x2b0] sm:$0xff]  ;;  %v1124_v27 = vld [vmem:[#allocation8 + $0x58] sm:$0xff] }
 0x583   :  { %1305 = vmatpush1.msra.mxu0 %v1199_v26  ;;  %1245 = vmatprep.subr.mxu1 %v1124_v27 }
 0x584   :  { %v953_v29 = vrot.slane %v952_v47, 1 }
 0x586   :  { %v954_v30 = vadd.f32 %v953_v29, %v952_v47  ;;  %v1198_v47 = vld [vmem:[#allocation8 + $0x2a8] sm:$0xff]  ;;  %v1123_v29 = vld [vmem:[#allocation8 + $0x50] sm:$0xff] }
 0x587   :  { %1306 = vmatprep.subr.mxu0 %v1198_v47  ;;  %1246 = vmatpush1.msra.mxu1 %v1123_v29 }
 0x588   :  { %v955_v31 = vmul.f32 0.16666667, %v954_v30  ;;  %v1197_v30 = vld [vmem:[#allocation8 + $0x2a0] sm:$0xff] }
 0x589   :  { %1307 = vmatpush1.msra.mxu0 %v1197_v30 }
 0x58a   :  { %v956_v32 = vsub.f32 %v4454_v20, %v955_v31  ;;  %v1122_v31 = vld [vmem:[#allocation8 + $0x48] sm:$0xff] }
 0x58b   :  { %1247 = vmatprep.subr.mxu1 %v1122_v31 }
 0x58c   :  { %v957_v33 = vmul.f32 %v956_v32, %v956_v32 }
 0x58e   :  { %v958_v34 = vsel %vm332_vm0, %v957_v33, 0.0  ;;  %v1121_v33 = vld [vmem:[#allocation8 + $0x40] sm:$0xff] }
 0x58f   :  { %v959_v35 = vrot.slane %v958_v34, 4  ;;  %1248 = vmatpush1.msra.mxu1 %v1121_v33 }
 0x591   :  { %v960_v52 = vadd.f32 %v959_v35, %v958_v34  ;;  %v1195_v34 = vld [vmem:[#allocation8 + $0x290] sm:$0xff]  ;;  %v1120_v35 = vld [vmem:[#allocation8 + $0x38] sm:$0xff] }
 0x592   :  { %1249 = vmatprep.subr.mxu1 %v1120_v35 }
 0x593   :  { %v961_v36 = vrot.slane %v960_v52, 2 }
 0x595   :  { %v962_v37 = vadd.f32 %v961_v36, %v960_v52  ;;  %v1194_v52 = vld [vmem:[#allocation8 + $0x288] sm:$0xff]  ;;  %v1119_v36 = vld [vmem:[#allocation8 + $0x30] sm:$0xff] }
 0x596   :  { %1250 = vmatpush1.msra.mxu1 %v1119_v36 }
 0x597   :  { %v963_v38 = vrot.slane %v962_v37, 1 }
 0x599   :  { %v964_v39 = vadd.f32 %v963_v38, %v962_v37  ;;  %v1193_v37 = vld [vmem:[#allocation8 + $0x280] sm:$0xff]  ;;  %v1118_v38 = vld [vmem:[#allocation8 + $0x28] sm:$0xff] }
 0x59a   :  { %1251 = vmatprep.subr.mxu1 %v1118_v38 }
 0x59b   :  { %v965_v40 = vmul.f32 0.16666667, %v964_v39  ;;  %v1192_v39 = vld [vmem:[#allocation8 + $0x278] sm:$0xff] }
 0x59d   :  { %v966_v41 = vadd.f32 1e-05, %v965_v40  ;;  %v1117_v40 = vld [vmem:[#allocation8 + $0x20] sm:$0xff] }
 0x59e   :  { %1252 = vmatpush1.msra.mxu1 %v1117_v40  ;;  %v1159_v40 = vld [vmem:[#allocation8 + $0x170] sm:$0xff] }
 0x59f   :  { %3741 = vrsqrt.f32 %v966_v41  ;;  %v1191_v41 = vld [vmem:[#allocation8 + $0x270] sm:$0xff] }
 0x5ac   :  { %v3742_v43 = vpop.eup %3741 }
 0x5ad   :  { %v968_v45 = vmul.f32 %v3742_v43, %v956_v32  ;;  %v1196_v32 = vld [vmem:[#allocation8 + $0x298] sm:$0xff] }
 0x5ae   :  { %1308 = vmatprep.subr.mxu0 %v1196_v32  ;;  %v1116_v43 = vld [vmem:[#allocation8 + $0x18] sm:$0xff] }
 0x5af   :  { %v975_v49 = vmul.f32 %v3511_v44, %v968_v45  ;;  %1309 = vmatpush1.msra.mxu0 %v1195_v34  ;;  %v1115_v44 = vld [vmem:[#allocation8 + $0x10] sm:$0xff]  ;;  %v1114_v45 = vld [vmem:[#allocation8 + $0x8] sm:$0xff]  ;;  %1253 = vmatprep.subr.mxu1 %v1116_v43 }
 0x5b0   :  { %1310 = vmatprep.subr.mxu0 %v1194_v52  ;;  %1254 = vmatpush1.msra.mxu1 %v1115_v44  ;;  %v1158_v44 = vld [vmem:[#allocation8 + $0x168] sm:$0xff] }
 0x5b1   :  { %v982_v50 = vadd.f32 %v3512_v46, %v975_v49  ;;  %1311 = vmatpush1.msra.mxu0 %v1193_v37  ;;  %v1113_v46 = vld [vmem:[#allocation8] sm:$0xff]  ;;  %v1176_v49 = vld [vmem:[#allocation8 + $0x1f8] sm:$0xff]  ;;  %1255 = vmatprep.subr.mxu1 %v1114_v45  ;;  %v3513_v37 = vld [vmem:[%s4787_s16] ss:$0 sm:$0xff]  ;;  %s4066_s16 = smov 40  }
 0x5b2   :  { %1312 = vmatprep.subr.mxu0 %v1192_v39  ;;  %1256 = vmatpush1.msra.mxu1 %v1113_v46  ;;  %v3514_v39 = vld [vmem:[%s4788_s18] ss:$0 sm:$0xff]  ;;  %v1189_v45 = vld [vmem:[#allocation8 + $0x260] sm:$0xff]  ;;  %s4803_s18 = sld [smem:[#allocation55_spill]] }
 0x5b3   :  { %vm983_vm15 = vcmp.ge.f32.partialorder %v982_v50, 0.0  ;;  %v984_v51 = vmul.f32 0.01, %v982_v50  ;;  %1313 = vmatpush1.msra.mxu0 %v1191_v41  ;;  %1257 = vmatprep.subr.mxu1 %v1176_v49  ;;  %v1190_v41 = vld [vmem:[#allocation8 + $0x268] sm:$0xff]  ;;  %v1157_v46 = vld [vmem:[#allocation8 + $0x160] sm:$0xff]  ;;  %v1188_v49 = vld [vmem:[#allocation8 + $0x258] sm:$0xff] }
 0x5b4   :  { %1314 = vmatprep.subr.mxu0 %v1190_v41 }
 0x5b5   :  { %v985_v53 = vsel %vm983_vm15, %v982_v50, %v984_v51  ;;  %v1175_v50 = vld [vmem:[#allocation8 + $0x1f0] sm:$0xff]  ;;  %v1174_v51 = vld [vmem:[#allocation8 + $0x1e8] sm:$0xff]  ;;  %1315 = vmatpush1.msra.mxu0 %v1189_v45 }
 0x5b6   :  { %998 = vperm.xlu1 %3725, %v985_v53   ;;  %989 = vperm.xlu0 %3726, %v985_v53   ;;  %v1173_v53 = vld [vmem:[#allocation8 + $0x1e0] sm:$0xff] }
 0x5b7   :  { %1258 = vmatpush2.msra.mxu1 %v1175_v50  ;;  %1316 = vmatprep.subr.mxu0 %v1188_v49  ;;  %v1447_v49 = vld [vmem:[#allocation14 + $0x28] sm:$0xff] }
 0x5b8   :  { %1259 = vmatprep.subr.mxu1 %v1174_v51  ;;  %v1156_v51 = vld [vmem:[#allocation8 + $0x158] sm:$0xff] }
 0x5b9   :  { %1260 = vmatpush2.msra.mxu1 %v1173_v53  ;;  %v1187_v53 = vld [vmem:[#allocation8 + $0x250] sm:$0xff] }
 0x5ba   :  { %3727 = vset.pattern.permute.xlu1 %v4046_v17  ;;  %3728 = vset.pattern.permute.xlu0 %v4047_v54 }
 0x5bb   :  { %1261 = vmatprep.subr.mxu1 %v1172_v55  ;;  %1317 = vmatpush1.msra.mxu0 %v1187_v53  ;;  %v1155_v55 = vld [vmem:[#allocation8 + $0x150] sm:$0xff] }
 0x5bc   :  { %1262 = vmatpush2.msra.mxu1 %v1171_v56  ;;  %v1186_v56 = vld [vmem:[#allocation8 + $0x248] sm:$0xff]  ;;  %v1444_v53 = vld [vmem:[#allocation14 + $0x10] sm:$0xff] }
 0x5bd   :  { %1263 = vmatprep.subr.mxu1 %v1170_v57  ;;  %1318 = vmatprep.subr.mxu0 %v1186_v56  ;;  %v1442_v56 = vld [vmem:[#allocation14] sm:$0xff] }
 0x5be   :  { %1264 = vmatpush2.msra.mxu1 %v1169_v60  ;;  %v1154_v60 = vld [vmem:[#allocation8 + $0x148] sm:$0xff] }
 0x5bf   :  { %1265 = vmatprep.subr.mxu1 %v1168_v61  ;;  %v1185_v61 = vld [vmem:[#allocation8 + $0x240] sm:$0xff] }
 0x5c0   :  { %1266 = vmatpush2.msra.mxu1 %v1167_v62  ;;  %1319 = vmatpush1.msra.mxu0 %v1185_v61  ;;  %v1153_v62 = vld [vmem:[#allocation8 + $0x140] sm:$0xff] }
 0x5c1   :  { %1267 = vmatprep.subr.mxu1 %v1166_v63  ;;  %v1184_v63 = vld [vmem:[#allocation8 + $0x238] sm:$0xff] }
 0x5c2   :  { %1268 = vmatpush2.msra.mxu1 %v1165_v0  ;;  %1320 = vmatprep.subr.mxu0 %v1184_v63 }
 0x5c3   :  { %1269 = vmatprep.subr.mxu1 %v1164_v1  ;;  %v1152_v1 = vld [vmem:[#allocation8 + $0x138] sm:$0xff] }
 0x5c4   :  { %1270 = vmatpush2.msra.mxu1 %v1163_v2  ;;  %v1183_v2 = vld [vmem:[#allocation8 + $0x230] sm:$0xff] }
 0x5c5   :  { %1271 = vmatprep.subr.mxu1 %v1162_v3  ;;  %1321 = vmatpush1.msra.mxu0 %v1183_v2 }
 0x5c6   :  { %1272 = vmatpush2.msra.mxu1 %v1161_v4 }
 0x5c7   :  { %1273 = vmatprep.subr.mxu1 %v1160_v6  ;;  %v1182_v6 = vld [vmem:[#allocation8 + $0x228] sm:$0xff] }
 0x5c8   :  { %1274 = vmatpush2.msra.mxu1 %v1159_v40  ;;  %1322 = vmatprep.subr.mxu0 %v1182_v6  ;;  %v1450_v40 = vld [vmem:[#allocation14 + $0x40] sm:$0xf] }
 0x5c9   :  { %1275 = vmatprep.subr.mxu1 %v1158_v44  ;;  %v1449_v44 = vld [vmem:[#allocation14 + $0x38] sm:$0xff] }
 0x5ca   :  { %1276 = vmatpush2.msra.mxu1 %v1157_v46  ;;  %v1448_v46 = vld [vmem:[#allocation14 + $0x30] sm:$0xff] }
 0x5cb   :  { %1277 = vmatprep.subr.mxu1 %v1156_v51  ;;  %v1445_v51 = vld [vmem:[#allocation14 + $0x18] sm:$0xff] }
 0x5cc   :  { %1278 = vmatpush2.msra.mxu1 %v1155_v55  ;;  %v1443_v55 = vld [vmem:[#allocation14 + $0x8] sm:$0xff] }
 0x5cd   :  { %1279 = vmatprep.subr.mxu1 %v1154_v60 }
 0x5ce   :  { %1280 = vmatpush2.msra.mxu1 %v1153_v62 }
 0x5cf   :  { %1281 = vmatprep.subr.mxu1 %v1152_v1 }
 0x5d0   :  { %1282 = vmatpush2.msra.mxu1 %v1151_v5 }
 0x631   :  { %v999_v9 = vpop.permute.xlu1 %998  ;;  %v990_v10 = vpop.permute.xlu0 %989 }
 0x632   :  { %v1005_v11 = vmul.f32 %v1004_v7, %v999_v9  ;;  %v996_v12 = vmul.f32 %v995_v8, %v990_v10  ;;  %v1150_v7 = vld [vmem:[#allocation8 + $0x128] sm:$0xff]  ;;  %v1181_v8 = vld [vmem:[#allocation8 + $0x220] sm:$0xff] }
 0x633   :  { %1283 = vmatprep.subr.mxu1 %v1150_v7  ;;  %1323 = vmatpush1.msra.mxu0 %v1181_v8 }
 0x634   :  { %v1006_v13 = vadd.f32 %v1005_v11, %v996_v12  ;;  %v1149_v12 = vld [vmem:[#allocation8 + $0x120] sm:$0xff] }
 0x635   :  { %1284 = vmatpush2.msra.mxu1 %v1149_v12 }
 0x636   :  { %v1009_v14 = vsel %vm427_vm3, %v1006_v13, 0.0 }
 0x637   :  { %v1010_v15 = vrot.slane %v1009_v14, 4 }
 0x639   :  { %v1011_v16 = vadd.f32 %v1010_v15, %v1009_v14  ;;  %v1148_v14 = vld [vmem:[#allocation8 + $0x118] sm:$0xff]  ;;  %v1179_v15 = vld [vmem:[#allocation8 + $0x210] sm:$0xff] }
 0x63a   :  { %1285 = vmatprep.subr.mxu1 %v1148_v14 }
 0x63b   :  { %v1012_v18 = vrot.slane %v1011_v16, 2 }
 0x63d   :  { %v1013_v19 = vadd.f32 %v1012_v18, %v1011_v16 }
 0x63f   :  { %v1014_v21 = vrot.slane %v1013_v19, 1 }
 0x641   :  { %v1015_v22 = vadd.f32 %v1014_v21, %v1013_v19 }
 0x643   :  { %v1016_v25 = vmul.f32 0.16666667, %v1015_v22  ;;  %v1147_v22 = vld [vmem:[#allocation8 + $0x110] sm:$0xff] }
 0x644   :  { %1286 = vmatpush2.msra.mxu1 %v1147_v22 }
 0x645   :  { %v1017_v26 = vsub.f32 %v1006_v13, %v1016_v25  ;;  %v1180_v13 = vld [vmem:[#allocation8 + $0x218] sm:$0xff]  ;;  %v1178_v25 = vld [vmem:[#allocation8 + $0x208] sm:$0xff] }
 0x646   :  { %1324 = vmatprep.subr.mxu0 %v1180_v13 }
 0x647   :  { %v1018_v27 = vmul.f32 %v1017_v26, %v1017_v26  ;;  %1325 = vmatpush1.msra.mxu0 %v1179_v15 }
 0x648   :  { %1326 = vmatprep.subr.mxu0 %v1178_v25 }
 0x649   :  { %v1019_v47 = vsel %vm427_vm3, %v1018_v27, 0.0  ;;  %v1177_v27 = vld [vmem:[#allocation8 + $0x200] sm:$0xff] }
 0x64a   :  { %v1020_v29 = vrot.slane %v1019_v47, 4  ;;  %1327 = vmatpush1.msra.mxu0 %v1177_v27 }
 0x64b   :  { %3583 = vmatprep.subr.mxu0 %v4050_v23 }
 0x64c   :  { %v1021_v30 = vadd.f32 %v1020_v29, %v1019_v47  ;;  %v1145_v47 = vld [vmem:[#allocation8 + $0x100] sm:$0xff] }
 0x64e   :  { %v1022_v31 = vrot.slane %v1021_v30, 2 }
 0x650   :  { %v1023_v32 = vadd.f32 %v1022_v31, %v1021_v30 }
 0x652   :  { %v1024_v33 = vrot.slane %v1023_v32, 1 }
 0x654   :  { %v1025_v34 = vadd.f32 %v1024_v33, %v1023_v32 }
 0x656   :  { %v1026_v35 = vmul.f32 0.16666667, %v1025_v34 }
 0x658   :  { %v1027_v52 = vadd.f32 1e-05, %v1026_v35 }
 0x65a   :  { %3743 = vrsqrt.f32 %v1027_v52 }
 0x667   :  { %v3744_v36 = vpop.eup %3743 }
 0x668   :  { %v1029_v38 = vmul.f32 %v3744_v36, %v1017_v26  ;;  %v1146_v26 = vld [vmem:[#allocation8 + $0x108] sm:$0xff] }
 0x669   :  { %1287 = vmatprep.subr.mxu1 %v1146_v26  ;;  %v3515_v26 = vld [vmem:[%s4789_s28] ss:$0 sm:$0xff]  ;;  %s4808_s28 = sld [smem:[#allocation46_spill]] }
 0x66a   :  { %v1036_v43 = vmul.f32 %v3513_v37, %v1029_v38  ;;  %1288 = vmatpush2.msra.mxu1 %v1145_v47  ;;  %v3516_v47 = vld [vmem:[%s4790_s19] ss:$0 sm:$0xff]  ;;  %s4809_s19 = sld [smem:[#allocation47_spill]] }
 0x66c   :  { %v1043_v50 = vadd.f32 %v3514_v39, %v1036_v43 }
 0x66e   :  { %vm1044_vm2 = vcmp.ge.f32.partialorder %v1043_v50, 0.0  ;;  %v1045_v57 = vmul.f32 0.01, %v1043_v50 }
 0x670   :  { %v1046_v0 = vsel %vm1044_vm2, %v1043_v50, %v1045_v57  ;;  %v1446_v50 = vld [vmem:[#allocation14 + $0x20] sm:$0xff]  ;;  %vm1954_vm2 = vcmask 570912  }
 0x671   :  { %v1055_v3 = vrot.slane %v1046_v0, %v4396_v42  ;;  %1047 = vst.msk [vmem:[#allocation3] sm:$0x1] %vm4399_vm5, %v1046_v0  ;;  %v1083_v4 = vcombine.high %v1046_v0, %v1046_v0 }
 0x673   :  { %v1056_v9 = vcombine.high %v1055_v3, %v1055_v3  ;;  %v1063_v10 = vrot.slane %v1055_v3, %v4396_v42  ;;  %v1090_v11 = vrot.slane %v1083_v4, %v4396_v42 }
 0x675   :  { %v1070_v16 = vrot.slane %v1056_v9, %v4396_v42  ;;  %v1075_v18 = vcombine.high %v1063_v10, %v1063_v10  ;;  %v1097_v19 = vrot.slane %v1090_v11, %v4396_v42  ;;  %v1100_v21 = vcombine.high %v1090_v11, %v1090_v11 }
 0x677   :  { %1071 = vrot.lane.b32.xlu1 %v1070_v16, %s4049_s13  ;;  %1077 = vst.msk [vmem:[#allocation3 + $0x1] sm:$0x1] %vm4399_vm5, %v1075_v18  ;;  %v1078_v29 = vcombine.high %v1070_v16, %v1070_v16  ;;  %1099 = vst.msk [vmem:[#allocation3 + $0x2] sm:$0x1] %vm4399_vm5, %v1097_v19  ;;  %v1107_v30 = vrot.slane %v1100_v21, %v4396_v42 }
 0x679   :  { %1079 = vrot.lane.b32.xlu0 %v1078_v29, %s4049_s13 }
 0x67b   :  { %1108 = vrot.lane.b32.xlu1 %v1107_v30, %s4049_s13 }
 0x67d   :  { %1368 = vrot.lane.b32.xlu0 %v4454_v20, %s4055_s6  ;;  %s4799_s6 = sld [smem:[#allocation39_spill]] }
 0x6e9   :  { %v1072_v31 = vpop.permute.xlu1 %1071 }
 0x6ea   :  { %1074 = vst.msk [vmem:[#allocation3] sm:$0x1] %vm4422_vm8, %v1072_v31 }
 0x6eb   :  { %v1080_v32 = vpop.permute.xlu0 %1079 }
 0x6ec   :  { %1082 = vst.msk [vmem:[#allocation3 + $0x1] sm:$0x1] %vm4422_vm8, %v1080_v32 }
 0x6ed   :  { %v1109_v33 = vpop.permute.xlu1 %1108 }
 0x6ee   :  { %1111 = vst.msk [vmem:[#allocation3 + $0x2] sm:$0x1] %vm4422_vm8, %v1109_v33 }
 0x6ef   :  { %v1369_v34 = vpop.permute.xlu0 %1368 }
 0x6f0   :  { %1372 = vst.msk [vmem:[#allocation2] sm:$0x3f] %vm1371_vm4, %v1369_v34  ;;  %vm1986_vm4 = vcmask 832512  }
 0x6f5   :  { %v1112_v35 = vld [vmem:[#allocation3] sm:$0x7] }
 0x6f6   :  { %v1217_v52 = vrot.slane %v1112_v35, %v4386_v59  ;;  %v1221_v20 = vrot.slane %v1112_v35, %v4433_v28  ;;  %v1213_v36 = vrot.slane %v1112_v35, %v4383_v58 }
 0x6f8   :  { %1289 = vmatprep.mubr.f32.mxu1 %v1217_v52  ;;  %1361 = vmatmul.mubr.f32.vlgmr.msra.gmra.mxu0 %v1221_v20 }
 0x6f9   :  { %1290 = vmatmul.mubr.f32.vlgmr.msra.gmra.mxu1 %v1213_v36  ;;  %3601 = vmatprep.mubr.msk.f32.mxu0 %vm4054_vm10, %v4050_v23 }
 0x6fa   :  { %3584 = vmatpush3.msk.msra.mxu0 %vm1455_vm6, %v1450_v40 }
 0x6fb   :  { %3585 = vmatprep.subr.mxu0 %v4050_v23 }
 0x6fc   :  { %3586 = vmatpush3.msra.mxu0 %v1449_v44 }
 0x6fd   :  { %3587 = vmatprep.subr.mxu0 %v4050_v23 }
 0x6fe   :  { %3588 = vmatpush3.msra.mxu0 %v1448_v46 }
 0x6ff   :  { %3589 = vmatprep.subr.mxu0 %v4050_v23 }
 0x700   :  { %3590 = vmatpush3.msra.mxu0 %v1447_v49 }
 0x701   :  { %3591 = vmatprep.subr.mxu0 %v4050_v23 }
 0x702   :  { %3592 = vmatpush3.msra.mxu0 %v1446_v50 }
 0x703   :  { %3593 = vmatprep.subr.mxu0 %v4050_v23 }
 0x704   :  { %3594 = vmatpush3.msra.mxu0 %v1445_v51 }
 0x705   :  { %3595 = vmatprep.subr.mxu0 %v4050_v23 }
 0x706   :  { %3596 = vmatpush3.msra.mxu0 %v1444_v53 }
 0x707   :  { %3597 = vmatprep.subr.mxu0 %v4050_v23 }
 0x708   :  { %3598 = vmatpush3.msra.mxu0 %v1443_v55 }
 0x709   :  { %3599 = vmatprep.subr.mxu0 %v4050_v23 }
 0x70a   :  { %3600 = vmatpush3.msra.mxu0 %v1442_v56 }
 0x7b8   :  { %v1362_v37 = vpop.f32.mrf.mxu0 }
 0x7b9   :  { %v1291_v38 = vpop.f32.mrf.mxu1 }
 0x7ba   :  { %v1363_v39 = vadd.f32 %v1362_v37, %v1291_v38  ;;  %v1364_v41 = vpop.f32.mrf.mxu0 }
 0x7bb   :  { %v1293_v43 = vpop.f32.mrf.mxu1 }
 0x7bc   :  { %1379 = vrot.lane.b32.xlu0 %v1363_v39, %s4056_s8  ;;  %1374 = vrot.lane.b32.xlu1 %v1363_v39, %s4057_s22  ;;  %v1365_v45 = vadd.f32 %v1364_v41, %v1293_v43 }
 0x7c0   :  { %1387 = vrot.lane.b32.xlu0 %v1363_v39, %s4058_s23  ;;  %1383 = vrot.lane.b32.xlu1 %v1363_v39, %s4059_s26  ;;  %s4807_s26 = sld [smem:[#allocation45_spill]] }
 0x7c4   :  { %1396 = vrot.lane.b32.xlu0 %v1365_v45, %s4056_s8  ;;  %1392 = vrot.lane.b32.xlu1 %v1365_v45, %s4057_s22  ;;  %s4804_s8 = sld [smem:[#allocation56_spill]] }
 0x7c5   :  { %s4805_s22 = sld [smem:[#allocation43_spill]] }
 0x82e   :  { %v1380_v57 = vpop.permute.xlu0 %1379  ;;  %v1375_v60 = vpop.permute.xlu1 %1374 }
 0x82f   :  { %1382 = vst.msk [vmem:[#allocation2 + $0x1] sm:$0x1] %vm1377_vm7, %v1380_v57  ;;  %1378 = vst.msk [vmem:[#allocation2] sm:$0x1] %vm1377_vm7, %v1375_v60  ;;  %v3519_v60 = vld [vmem:[%s4791_s29] ss:$0 sm:$0xff] }
 0x830   :  { %s4069_s29 = smov 42  }
 0x832   :  { %v1388_v61 = vpop.permute.xlu0 %1387  ;;  %v1384_v62 = vpop.permute.xlu1 %1383 }
 0x833   :  { %1390 = vst.msk [vmem:[#allocation2 + $0x3] sm:$0x1] %vm1377_vm7, %v1388_v61  ;;  %1386 = vst.msk [vmem:[#allocation2 + $0x2] sm:$0x1] %vm1377_vm7, %v1384_v62  ;;  %v3520_v62 = vld [vmem:[%s4792_s1] ss:$0 sm:$0xff] }
 0x834   :  { %s4070_s1 = smov 74  }
 0x836   :  { %v1397_v63 = vpop.permute.xlu0 %1396  ;;  %v1393_v0 = vpop.permute.xlu1 %1392 }
 0x837   :  { %1399 = vst.msk [vmem:[#allocation2 + $0x5] sm:$0x1] %vm1377_vm7, %v1397_v63  ;;  %1395 = vst.msk [vmem:[#allocation2 + $0x4] sm:$0x1] %vm1377_vm7, %v1393_v0  ;;  %vm2038_vm7 = vcmask 834560  }
 0x83e   :  { %v1400_v1 = vld [vmem:[#allocation2] sm:$0x3f] }
 0x83f   :  { %v1404_v2 = vsel %vm1403_vm11, %v1400_v1, 0.0 }
 0x840   :  { %v1405_v3 = vrot.slane %v1404_v2, 4 }
 0x842   :  { %v1406_v4 = vadd.f32 %v1405_v3, %v1404_v2  ;;  %v1727_v3 = vld [vmem:[#allocation10 + $0xf8] sm:$0xff] }
 0x843   :  { %1808 = vmatprep.subr.mxu1 %v1727_v3  ;;  %v1755_v3 = vld [vmem:[#allocation10 + $0x1d8] sm:$0xff] }
 0x844   :  { %v1407_v5 = vrot.slane %v1406_v4, 2 }
 0x846   :  { %v1408_v6 = vadd.f32 %v1407_v5, %v1406_v4  ;;  %v1726_v4 = vld [vmem:[#allocation10 + $0xf0] sm:$0xff]  ;;  %v1725_v5 = vld [vmem:[#allocation10 + $0xe8] sm:$0xff] }
 0x847   :  { %1809 = vmatpush1.msra.mxu1 %v1726_v4  ;;  %v1754_v4 = vld [vmem:[#allocation10 + $0x1d0] sm:$0xff] }
 0x848   :  { %v1409_v7 = vrot.slane %v1408_v6, 1  ;;  %1810 = vmatprep.subr.mxu1 %v1725_v5  ;;  %v1753_v5 = vld [vmem:[#allocation10 + $0x1c8] sm:$0xff] }
 0x84a   :  { %v1410_v8 = vadd.f32 %v1409_v7, %v1408_v6  ;;  %v1724_v6 = vld [vmem:[#allocation10 + $0xe0] sm:$0xff]  ;;  %v1723_v7 = vld [vmem:[#allocation10 + $0xd8] sm:$0xff] }
 0x84b   :  { %1811 = vmatpush1.msra.mxu1 %v1724_v6  ;;  %v1752_v6 = vld [vmem:[#allocation10 + $0x1c0] sm:$0xff] }
 0x84c   :  { %v1411_v9 = vmul.f32 0.16666667, %v1410_v8  ;;  %v1722_v8 = vld [vmem:[#allocation10 + $0xd0] sm:$0xff]  ;;  %1812 = vmatprep.subr.mxu1 %v1723_v7  ;;  %v1751_v7 = vld [vmem:[#allocation10 + $0x1b8] sm:$0xff] }
 0x84d   :  { %1813 = vmatpush1.msra.mxu1 %v1722_v8  ;;  %v1750_v8 = vld [vmem:[#allocation10 + $0x1b0] sm:$0xff] }
 0x84e   :  { %v1412_v10 = vsub.f32 %v1400_v1, %v1411_v9  ;;  %v1721_v9 = vld [vmem:[#allocation10 + $0xc8] sm:$0xff] }
 0x84f   :  { %1814 = vmatprep.subr.mxu1 %v1721_v9  ;;  %v1749_v9 = vld [vmem:[#allocation10 + $0x1a8] sm:$0xff] }
 0x850   :  { %v1413_v11 = vmul.f32 %v1412_v10, %v1412_v10 }
 0x852   :  { %v1414_v12 = vsel %vm1403_vm11, %v1413_v11, 0.0  ;;  %v1719_v11 = vld [vmem:[#allocation10 + $0xb8] sm:$0xff] }
 0x853   :  { %v1415_v13 = vrot.slane %v1414_v12, 4 }
 0x855   :  { %v1416_v14 = vadd.f32 %v1415_v13, %v1414_v12  ;;  %v1718_v12 = vld [vmem:[#allocation10 + $0xb0] sm:$0xff]  ;;  %v1717_v13 = vld [vmem:[#allocation10 + $0xa8] sm:$0xff] }
 0x857   :  { %v1417_v15 = vrot.slane %v1416_v14, 2 }
 0x859   :  { %v1418_v16 = vadd.f32 %v1417_v15, %v1416_v14  ;;  %v1716_v14 = vld [vmem:[#allocation10 + $0xa0] sm:$0xff]  ;;  %v1715_v15 = vld [vmem:[#allocation10 + $0x98] sm:$0xff] }
 0x85b   :  { %v1419_v18 = vrot.slane %v1418_v16, 1 }
 0x85d   :  { %v1420_v19 = vadd.f32 %v1419_v18, %v1418_v16  ;;  %v1791_v16 = vld [vmem:[#allocation10 + $0x2f8] sm:$0xff]  ;;  %v1714_v18 = vld [vmem:[#allocation10 + $0x90] sm:$0xff] }
 0x85e   :  { %1879 = vmatprep.subr.mxu0 %v1791_v16  ;;  %v1743_v16 = vld [vmem:[#allocation10 + $0x178] sm:$0xff] }
 0x85f   :  { %v1421_v21 = vmul.f32 0.16666667, %v1420_v19  ;;  %v1790_v19 = vld [vmem:[#allocation10 + $0x2f0] sm:$0xff] }
 0x861   :  { %v1422_v22 = vadd.f32 1e-05, %v1421_v21  ;;  %v1713_v21 = vld [vmem:[#allocation10 + $0x88] sm:$0xff] }
 0x863   :  { %3745 = vrsqrt.f32 %v1422_v22  ;;  %v1789_v22 = vld [vmem:[#allocation10 + $0x2e8] sm:$0xff] }
 0x870   :  { %v3746_v25 = vpop.eup %3745 }
 0x871   :  { %v1424_v27 = vmul.f32 %v3746_v25, %v1412_v10  ;;  %v1720_v10 = vld [vmem:[#allocation10 + $0xc0] sm:$0xff] }
 0x872   :  { %1815 = vmatpush1.msra.mxu1 %v1720_v10  ;;  %v1788_v25 = vld [vmem:[#allocation10 + $0x2e0] sm:$0xff] }
 0x873   :  { %v1431_v29 = vmul.f32 %v3515_v26, %v1424_v27  ;;  %1816 = vmatprep.subr.mxu1 %v1719_v11  ;;  %v1712_v26 = vld [vmem:[#allocation10 + $0x80] sm:$0xff]  ;;  %v1787_v27 = vld [vmem:[#allocation10 + $0x2d8] sm:$0xff] }
 0x874   :  { %1817 = vmatpush1.msra.mxu1 %v1718_v12  ;;  %v1748_v10 = vld [vmem:[#allocation10 + $0x1a0] sm:$0xff]  ;;  %v1747_v11 = vld [vmem:[#allocation10 + $0x198] sm:$0xff]  ;;  %v1746_v12 = vld [vmem:[#allocation10 + $0x190] sm:$0xff] }
 0x875   :  { %v1438_v30 = vadd.f32 %v3516_v47, %v1431_v29  ;;  %1818 = vmatprep.subr.mxu1 %v1717_v13  ;;  %v1711_v47 = vld [vmem:[#allocation10 + $0x78] sm:$0xff]  ;;  %v1786_v29 = vld [vmem:[#allocation10 + $0x2d0] sm:$0xff]  ;;  %v1569_v13 = vld [vmem:[%s4793_s2] sm:$0x3]  ;;  %s4810_s2 = sld [smem:[#allocation57_spill]] }
 0x876   :  { %1819 = vmatpush1.msra.mxu1 %v1716_v14  ;;  %v1745_v14 = vld [vmem:[#allocation10 + $0x188] sm:$0xff] }
 0x877   :  { %vm1439_vm12 = vcmp.ge.f32.partialorder %v1438_v30, 0.0  ;;  %v1440_v31 = vmul.f32 0.01, %v1438_v30  ;;  %1820 = vmatprep.subr.mxu1 %v1715_v15  ;;  %v1744_v15 = vld [vmem:[#allocation10 + $0x180] sm:$0xff] }
 0x878   :  { %1821 = vmatpush1.msra.mxu1 %v1714_v18  ;;  %v1587_v18 = vrot.slane %v1569_v13, %v4386_v59 }
 0x879   :  { %v1441_v32 = vsel %vm1439_vm12, %v1438_v30, %v1440_v31  ;;  %v1785_v30 = vld [vmem:[#allocation10 + $0x2c8] sm:$0xff]  ;;  %1822 = vmatprep.subr.mxu1 %v1713_v21  ;;  %v1710_v31 = vld [vmem:[#allocation10 + $0x70] sm:$0xff] }
 0x87a   :  { %3602 = vmatmul.mubr.msk.f32.vlgmr.msra.gmra.mxu0 %vm1451_vm13, %v1441_v32  ;;  %v1784_v32 = vld [vmem:[#allocation10 + $0x2c0] sm:$0xff]  ;;  %1823 = vmatpush1.msra.mxu1 %v1712_v26  ;;  %vm2540_vm13 = vcmask 849712  }
 0x87b   :  { %1943 = vmatprep.mubr.f32.mxu0 %v4050_v23  ;;  %1880 = vmatpush1.msra.mxu0 %v1790_v19  ;;  %v1578_v19 = vrot.slane %v1569_v13, %v4383_v58 }
 0x87c   :  { %1881 = vmatprep.subr.mxu0 %v1789_v22  ;;  %1824 = vmatprep.subr.mxu1 %v1711_v47 }
 0x87d   :  { %1882 = vmatpush1.msra.mxu0 %v1788_v25  ;;  %1825 = vmatpush1.msra.mxu1 %v1710_v31 }
 0x87e   :  { %1883 = vmatprep.subr.mxu0 %v1787_v27 }
 0x87f   :  { %1884 = vmatpush1.msra.mxu0 %v1786_v29 }
 0x880   :  { %1885 = vmatprep.subr.mxu0 %v1785_v30 }
 0x881   :  { %1886 = vmatpush1.msra.mxu0 %v1784_v32 }
 0x93a   :  { %v4512_v33 = vpop.f32.mrf.mxu0 }
 0x93b   :  { %v1531_v34 = vsel %vm332_vm0, %v4512_v33, 0.0 }
 0x93c   :  { %v1532_v35 = vrot.slane %v1531_v34, 4  ;;  %v3603_v52 = vpop.f32.mrf.mxu0 }
 0x93d   :  { %v1708_v52 = vld [vmem:[#allocation10 + $0x60] sm:$0xff] }
 0x93e   :  { %v1533_v20 = vadd.f32 %v1532_v35, %v1531_v34  ;;  %v1709_v34 = vld [vmem:[#allocation10 + $0x68] sm:$0xff]  ;;  %v1783_v35 = vld [vmem:[#allocation10 + $0x2b8] sm:$0xff] }
 0x93f   :  { %1826 = vmatprep.subr.mxu1 %v1709_v34  ;;  %1887 = vmatprep.subr.mxu0 %v1783_v35 }
 0x940   :  { %v1534_v36 = vrot.slane %v1533_v20, 2  ;;  %1827 = vmatpush1.msra.mxu1 %v1708_v52 }
 0x942   :  { %v1535_v37 = vadd.f32 %v1534_v36, %v1533_v20  ;;  %v1782_v20 = vld [vmem:[#allocation10 + $0x2b0] sm:$0xff]  ;;  %v1707_v36 = vld [vmem:[#allocation10 + $0x58] sm:$0xff] }
 0x943   :  { %1888 = vmatpush1.msra.mxu0 %v1782_v20  ;;  %1828 = vmatprep.subr.mxu1 %v1707_v36 }
 0x944   :  { %v1536_v38 = vrot.slane %v1535_v37, 1 }
 0x946   :  { %v1537_v39 = vadd.f32 %v1536_v38, %v1535_v37  ;;  %v1781_v37 = vld [vmem:[#allocation10 + $0x2a8] sm:$0xff]  ;;  %v1706_v38 = vld [vmem:[#allocation10 + $0x50] sm:$0xff] }
 0x947   :  { %1889 = vmatprep.subr.mxu0 %v1781_v37  ;;  %1829 = vmatpush1.msra.mxu1 %v1706_v38 }
 0x948   :  { %v1538_v40 = vmul.f32 0.16666667, %v1537_v39  ;;  %v1780_v39 = vld [vmem:[#allocation10 + $0x2a0] sm:$0xff] }
 0x949   :  { %1890 = vmatpush1.msra.mxu0 %v1780_v39 }
 0x94a   :  { %v1539_v41 = vsub.f32 %v4512_v33, %v1538_v40  ;;  %v1705_v40 = vld [vmem:[#allocation10 + $0x48] sm:$0xff] }
 0x94b   :  { %1830 = vmatprep.subr.mxu1 %v1705_v40 }
 0x94c   :  { %v1540_v43 = vmul.f32 %v1539_v41, %v1539_v41 }
 0x94e   :  { %v1541_v44 = vsel %vm332_vm0, %v1540_v43, 0.0  ;;  %v1704_v43 = vld [vmem:[#allocation10 + $0x40] sm:$0xff] }
 0x94f   :  { %v1542_v45 = vrot.slane %v1541_v44, 4  ;;  %1831 = vmatpush1.msra.mxu1 %v1704_v43 }
 0x951   :  { %v1543_v46 = vadd.f32 %v1542_v45, %v1541_v44  ;;  %v1778_v44 = vld [vmem:[#allocation10 + $0x290] sm:$0xff]  ;;  %v1703_v45 = vld [vmem:[#allocation10 + $0x38] sm:$0xff] }
 0x952   :  { %1832 = vmatprep.subr.mxu1 %v1703_v45 }
 0x953   :  { %v1544_v49 = vrot.slane %v1543_v46, 2 }
 0x955   :  { %v1545_v50 = vadd.f32 %v1544_v49, %v1543_v46  ;;  %v1777_v46 = vld [vmem:[#allocation10 + $0x288] sm:$0xff]  ;;  %v1702_v49 = vld [vmem:[#allocation10 + $0x30] sm:$0xff] }
 0x956   :  { %1833 = vmatpush1.msra.mxu1 %v1702_v49 }
 0x957   :  { %v1546_v51 = vrot.slane %v1545_v50, 1 }
 0x959   :  { %v1547_v53 = vadd.f32 %v1546_v51, %v1545_v50  ;;  %v1776_v50 = vld [vmem:[#allocation10 + $0x280] sm:$0xff]  ;;  %v1701_v51 = vld [vmem:[#allocation10 + $0x28] sm:$0xff] }
 0x95a   :  { %1834 = vmatprep.subr.mxu1 %v1701_v51 }
 0x95b   :  { %v1548_v55 = vmul.f32 0.16666667, %v1547_v53  ;;  %v1775_v53 = vld [vmem:[#allocation10 + $0x278] sm:$0xff] }
 0x95d   :  { %v1549_v56 = vadd.f32 1e-05, %v1548_v55  ;;  %v1700_v55 = vld [vmem:[#allocation10 + $0x20] sm:$0xff] }
 0x95e   :  { %1835 = vmatpush1.msra.mxu1 %v1700_v55  ;;  %v1742_v55 = vld [vmem:[#allocation10 + $0x170] sm:$0xff] }
 0x95f   :  { %3747 = vrsqrt.f32 %v1549_v56  ;;  %v1774_v56 = vld [vmem:[#allocation10 + $0x270] sm:$0xff] }
 0x96c   :  { %v3748_v57 = vpop.eup %3747 }
 0x96d   :  { %v1551_v61 = vmul.f32 %v3748_v57, %v1539_v41  ;;  %v1779_v41 = vld [vmem:[#allocation10 + $0x298] sm:$0xff] }
 0x96e   :  { %1891 = vmatprep.subr.mxu0 %v1779_v41  ;;  %v1699_v57 = vld [vmem:[#allocation10 + $0x18] sm:$0xff] }
 0x96f   :  { %v1558_v63 = vmul.f32 %v3519_v60, %v1551_v61  ;;  %1892 = vmatpush1.msra.mxu0 %v1778_v44  ;;  %v1698_v60 = vld [vmem:[#allocation10 + $0x10] sm:$0xff]  ;;  %v1697_v61 = vld [vmem:[#allocation10 + $0x8] sm:$0xff]  ;;  %1836 = vmatprep.subr.mxu1 %v1699_v57 }
 0x970   :  { %1893 = vmatprep.subr.mxu0 %v1777_v46  ;;  %1837 = vmatpush1.msra.mxu1 %v1698_v60  ;;  %v1741_v60 = vld [vmem:[#allocation10 + $0x168] sm:$0xff] }
 0x971   :  { %v1565_v0 = vadd.f32 %v3520_v62, %v1558_v63  ;;  %1894 = vmatpush1.msra.mxu0 %v1776_v50  ;;  %v1696_v62 = vld [vmem:[#allocation10] sm:$0xff]  ;;  %v1759_v63 = vld [vmem:[#allocation10 + $0x1f8] sm:$0xff]  ;;  %1838 = vmatprep.subr.mxu1 %v1697_v61  ;;  %v3521_v50 = vld [vmem:[%s4794_s7] ss:$0 sm:$0xff]  ;;  %s4811_s7 = sld [smem:[#allocation58_spill]] }
 0x972   :  { %1895 = vmatprep.subr.mxu0 %v1775_v53  ;;  %1839 = vmatpush1.msra.mxu1 %v1696_v62  ;;  %v3522_v53 = vld [vmem:[%s4795_s11] ss:$0 sm:$0xff]  ;;  %v1772_v61 = vld [vmem:[#allocation10 + $0x260] sm:$0xff]  ;;  %s4812_s11 = sld [smem:[#allocation59_spill]] }
 0x973   :  { %vm1566_vm14 = vcmp.ge.f32.partialorder %v1565_v0, 0.0  ;;  %v1567_v1 = vmul.f32 0.01, %v1565_v0  ;;  %1896 = vmatpush1.msra.mxu0 %v1774_v56  ;;  %1840 = vmatprep.subr.mxu1 %v1759_v63  ;;  %v1773_v56 = vld [vmem:[#allocation10 + $0x268] sm:$0xff]  ;;  %v1740_v62 = vld [vmem:[#allocation10 + $0x160] sm:$0xff]  ;;  %v1771_v63 = vld [vmem:[#allocation10 + $0x258] sm:$0xff] }
 0x974   :  { %1897 = vmatprep.subr.mxu0 %v1773_v56 }
 0x975   :  { %v1568_v2 = vsel %vm1566_vm14, %v1565_v0, %v1567_v1  ;;  %v1758_v0 = vld [vmem:[#allocation10 + $0x1f0] sm:$0xff]  ;;  %v1757_v1 = vld [vmem:[#allocation10 + $0x1e8] sm:$0xff]  ;;  %1898 = vmatpush1.msra.mxu0 %v1772_v61  ;;  %vm2546_vm14 = vcmask 1041216  }
 0x976   :  { %1581 = vperm.xlu0 %3728, %v1568_v2   ;;  %1572 = vperm.xlu1 %3727, %v1568_v2   ;;  %v1756_v2 = vld [vmem:[#allocation10 + $0x1e0] sm:$0xff] }
 0x977   :  { %1841 = vmatpush2.msra.mxu1 %v1758_v0  ;;  %1899 = vmatprep.subr.mxu0 %v1771_v63  ;;  %v2033_v63 = vld [vmem:[#allocation16 + $0x40] sm:$0xff] }
 0x978   :  { %1842 = vmatprep.subr.mxu1 %v1757_v1  ;;  %v1739_v1 = vld [vmem:[#allocation10 + $0x158] sm:$0xff] }
 0x979   :  { %1843 = vmatpush2.msra.mxu1 %v1756_v2  ;;  %v1770_v2 = vld [vmem:[#allocation10 + $0x250] sm:$0xff] }
 0x97a   :  { %3729 = vset.pattern.permute.xlu0 %v4046_v17  ;;  %3730 = vset.pattern.permute.xlu1 %v4047_v54 }
 0x97b   :  { %1844 = vmatprep.subr.mxu1 %v1755_v3  ;;  %1900 = vmatpush1.msra.mxu0 %v1770_v2  ;;  %v1738_v3 = vld [vmem:[#allocation10 + $0x150] sm:$0xff]  ;;  %v2031_v2 = vld [vmem:[#allocation16 + $0x30] sm:$0xff] }
 0x97c   :  { %1845 = vmatpush2.msra.mxu1 %v1754_v4  ;;  %v1769_v4 = vld [vmem:[#allocation10 + $0x248] sm:$0xff] }
 0x97d   :  { %1846 = vmatprep.subr.mxu1 %v1753_v5  ;;  %1901 = vmatprep.subr.mxu0 %v1769_v4  ;;  %v2029_v4 = vld [vmem:[#allocation16 + $0x20] sm:$0xff] }
 0x97e   :  { %1847 = vmatpush2.msra.mxu1 %v1752_v6  ;;  %v1737_v6 = vld [vmem:[#allocation10 + $0x148] sm:$0xff] }
 0x97f   :  { %1848 = vmatprep.subr.mxu1 %v1751_v7  ;;  %v1768_v7 = vld [vmem:[#allocation10 + $0x240] sm:$0xff] }
 0x980   :  { %1849 = vmatpush2.msra.mxu1 %v1750_v8  ;;  %1902 = vmatpush1.msra.mxu0 %v1768_v7  ;;  %v1736_v8 = vld [vmem:[#allocation10 + $0x140] sm:$0xff]  ;;  %v2026_v7 = vld [vmem:[#allocation16 + $0x8] sm:$0xff] }
 0x981   :  { %1850 = vmatprep.subr.mxu1 %v1749_v9  ;;  %v1767_v9 = vld [vmem:[#allocation10 + $0x238] sm:$0xff] }
 0x982   :  { %1851 = vmatpush2.msra.mxu1 %v1748_v10  ;;  %1903 = vmatprep.subr.mxu0 %v1767_v9 }
 0x983   :  { %1852 = vmatprep.subr.mxu1 %v1747_v11  ;;  %v1735_v11 = vld [vmem:[#allocation10 + $0x138] sm:$0xff] }
 0x984   :  { %1853 = vmatpush2.msra.mxu1 %v1746_v12  ;;  %v1766_v12 = vld [vmem:[#allocation10 + $0x230] sm:$0xff] }
 0x985   :  { %1854 = vmatprep.subr.mxu1 %v1745_v14  ;;  %1904 = vmatpush1.msra.mxu0 %v1766_v12 }
 0x986   :  { %1855 = vmatpush2.msra.mxu1 %v1744_v15  ;;  %v1734_v15 = vld [vmem:[#allocation10 + $0x130] sm:$0xff] }
 0x987   :  { %1856 = vmatprep.subr.mxu1 %v1743_v16  ;;  %v1765_v16 = vld [vmem:[#allocation10 + $0x228] sm:$0xff] }
 0x988   :  { %1857 = vmatpush2.msra.mxu1 %v1742_v55  ;;  %1905 = vmatprep.subr.mxu0 %v1765_v16 }
 0x989   :  { %1858 = vmatprep.subr.mxu1 %v1741_v60  ;;  %v2034_v60 = vld [vmem:[#allocation16 + $0x48] sm:$0xff] }
 0x98a   :  { %1859 = vmatpush2.msra.mxu1 %v1740_v62 }
 0x98b   :  { %1860 = vmatprep.subr.mxu1 %v1739_v1  ;;  %v2032_v1 = vld [vmem:[#allocation16 + $0x38] sm:$0xff] }
 0x98c   :  { %1861 = vmatpush2.msra.mxu1 %v1738_v3  ;;  %v2030_v3 = vld [vmem:[#allocation16 + $0x28] sm:$0xff] }
 0x98d   :  { %1862 = vmatprep.subr.mxu1 %v1737_v6  ;;  %v2027_v6 = vld [vmem:[#allocation16 + $0x10] sm:$0xff] }
 0x98e   :  { %1863 = vmatpush2.msra.mxu1 %v1736_v8  ;;  %v2025_v8 = vld [vmem:[#allocation16] sm:$0xff] }
 0x98f   :  { %1864 = vmatprep.subr.mxu1 %v1735_v11 }
 0x990   :  { %1865 = vmatpush2.msra.mxu1 %v1734_v15 }
 0x9f1   :  { %v1582_v21 = vpop.permute.xlu0 %1581  ;;  %v1573_v22 = vpop.permute.xlu1 %1572 }
 0x9f2   :  { %v1588_v25 = vmul.f32 %v1587_v18, %v1582_v21  ;;  %v1579_v26 = vmul.f32 %v1578_v19, %v1573_v22  ;;  %v1733_v18 = vld [vmem:[#allocation10 + $0x128] sm:$0xff]  ;;  %v1764_v19 = vld [vmem:[#allocation10 + $0x220] sm:$0xff] }
 0x9f3   :  { %1866 = vmatprep.subr.mxu1 %v1733_v18  ;;  %1906 = vmatpush1.msra.mxu0 %v1764_v19 }
 0x9f4   :  { %v1589_v27 = vadd.f32 %v1588_v25, %v1579_v26  ;;  %v1732_v26 = vld [vmem:[#allocation10 + $0x120] sm:$0xff] }
 0x9f5   :  { %1867 = vmatpush2.msra.mxu1 %v1732_v26 }
 0x9f6   :  { %v1592_v47 = vsel %vm427_vm3, %v1589_v27, 0.0 }
 0x9f7   :  { %v1593_v29 = vrot.slane %v1592_v47, 4 }
 0x9f9   :  { %v1594_v30 = vadd.f32 %v1593_v29, %v1592_v47  ;;  %v1731_v47 = vld [vmem:[#allocation10 + $0x118] sm:$0xff]  ;;  %v1762_v29 = vld [vmem:[#allocation10 + $0x210] sm:$0xff] }
 0x9fa   :  { %1868 = vmatprep.subr.mxu1 %v1731_v47 }
 0x9fb   :  { %v1595_v31 = vrot.slane %v1594_v30, 2 }
 0x9fd   :  { %v1596_v32 = vadd.f32 %v1595_v31, %v1594_v30 }
 0x9ff   :  { %v1597_v34 = vrot.slane %v1596_v32, 1 }
 0xa01   :  { %v1598_v35 = vadd.f32 %v1597_v34, %v1596_v32 }
 0xa03   :  { %v1599_v52 = vmul.f32 0.16666667, %v1598_v35  ;;  %v1730_v35 = vld [vmem:[#allocation10 + $0x110] sm:$0xff] }
 0xa04   :  { %1869 = vmatpush2.msra.mxu1 %v1730_v35 }
 0xa05   :  { %v1600_v20 = vsub.f32 %v1589_v27, %v1599_v52  ;;  %v1763_v27 = vld [vmem:[#allocation10 + $0x218] sm:$0xff]  ;;  %v1761_v52 = vld [vmem:[#allocation10 + $0x208] sm:$0xff] }
 0xa06   :  { %1907 = vmatprep.subr.mxu0 %v1763_v27 }
 0xa07   :  { %v1601_v36 = vmul.f32 %v1600_v20, %v1600_v20  ;;  %1908 = vmatpush1.msra.mxu0 %v1762_v29 }
 0xa08   :  { %1909 = vmatprep.subr.mxu0 %v1761_v52 }
 0xa09   :  { %v1602_v37 = vsel %vm427_vm3, %v1601_v36, 0.0  ;;  %v1760_v36 = vld [vmem:[#allocation10 + $0x200] sm:$0xff] }
 0xa0a   :  { %v1603_v38 = vrot.slane %v1602_v37, 4  ;;  %1910 = vmatpush1.msra.mxu0 %v1760_v36 }
 0xa0b   :  { %3604 = vmatprep.subr.mxu0 %v4050_v23 }
 0xa0c   :  { %v1604_v39 = vadd.f32 %v1603_v38, %v1602_v37  ;;  %v1728_v37 = vld [vmem:[#allocation10 + $0x100] sm:$0xff] }
 0xa0e   :  { %v1605_v40 = vrot.slane %v1604_v39, 2 }
 0xa10   :  { %v1606_v41 = vadd.f32 %v1605_v40, %v1604_v39 }
 0xa12   :  { %v1607_v43 = vrot.slane %v1606_v41, 1 }
 0xa14   :  { %v1608_v44 = vadd.f32 %v1607_v43, %v1606_v41 }
 0xa16   :  { %v1609_v45 = vmul.f32 0.16666667, %v1608_v44 }
 0xa18   :  { %v1610_v46 = vadd.f32 1e-05, %v1609_v45 }
 0xa1a   :  { %3749 = vrsqrt.f32 %v1610_v46 }
 0xa27   :  { %v3750_v49 = vpop.eup %3749 }
 0xa28   :  { %v1612_v51 = vmul.f32 %v3750_v49, %v1600_v20  ;;  %v1729_v20 = vld [vmem:[#allocation10 + $0x108] sm:$0xff] }
 0xa29   :  { %1870 = vmatprep.subr.mxu1 %v1729_v20 }
 0xa2a   :  { %v1619_v57 = vmul.f32 %v3521_v50, %v1612_v51  ;;  %1871 = vmatpush2.msra.mxu1 %v1728_v37  ;;  %v2037_v50 = vld [vmem:[#allocation16 + $0x60] sm:$0x3f]  ;;  %v2036_v51 = vld [vmem:[#allocation16 + $0x58] sm:$0xff] }
 0xa2c   :  { %v1626_v0 = vadd.f32 %v3522_v53, %v1619_v57  ;;  %v2035_v57 = vld [vmem:[#allocation16 + $0x50] sm:$0xff] }
 0xa2e   :  { %vm1627_vm15 = vcmp.ge.f32.partialorder %v1626_v0, 0.0  ;;  %v1628_v5 = vmul.f32 0.01, %v1626_v0 }
 0xa30   :  { %v1629_v10 = vsel %vm1627_vm15, %v1626_v0, %v1628_v5  ;;  %v2028_v5 = vld [vmem:[#allocation16 + $0x18] sm:$0xff]  ;;  %vm2548_vm15 = vcmask 57344  }
 0xa31   :  { %v1638_v13 = vrot.slane %v1629_v10, %v4396_v42  ;;  %1630 = vst.msk [vmem:[#allocation3] sm:$0x1] %vm4399_vm5, %v1629_v10  ;;  %v1666_v14 = vcombine.high %v1629_v10, %v1629_v10 }
 0xa33   :  { %v1639_v21 = vcombine.high %v1638_v13, %v1638_v13  ;;  %v1646_v22 = vrot.slane %v1638_v13, %v4396_v42  ;;  %v1673_v25 = vrot.slane %v1666_v14, %v4396_v42 }
 0xa35   :  { %v1653_v30 = vrot.slane %v1639_v21, %v4396_v42  ;;  %v1658_v31 = vcombine.high %v1646_v22, %v1646_v22  ;;  %v1683_v32 = vcombine.high %v1673_v25, %v1673_v25  ;;  %v1680_v34 = vrot.slane %v1673_v25, %v4396_v42 }
 0xa37   :  { %1654 = vrot.lane.b32.xlu1 %v1653_v30, %s4049_s13  ;;  %1660 = vst.msk [vmem:[#allocation3 + $0x1] sm:$0x1] %vm4399_vm5, %v1658_v31  ;;  %v1690_v38 = vrot.slane %v1683_v32, %v4396_v42  ;;  %1682 = vst.msk [vmem:[#allocation3 + $0x2] sm:$0x1] %vm4399_vm5, %v1680_v34  ;;  %v1661_v39 = vcombine.high %v1653_v30, %v1653_v30 }
 0xa39   :  { %1691 = vrot.lane.b32.xlu0 %v1690_v38, %s4049_s13 }
 0xa3b   :  { %1662 = vrot.lane.b32.xlu1 %v1661_v39, %s4049_s13  ;;  %v3523_v39 = vld [vmem:[%s4796_s21] ss:$0 sm:$0xff] }
 0xa3f   :  { %1951 = vrot.lane.b32.xlu1 %v4512_v33, %s4058_s23  ;;  %s4806_s23 = sld [smem:[#allocation44_spill]] }
 0xaa9   :  { %v1655_v40 = vpop.permute.xlu1 %1654 }
 0xaaa   :  { %1657 = vst.msk [vmem:[#allocation3] sm:$0x1] %vm4422_vm8, %v1655_v40 }
 0xaab   :  { %v1692_v41 = vpop.permute.xlu0 %1691 }
 0xaac   :  { %1694 = vst.msk [vmem:[#allocation3 + $0x2] sm:$0x1] %vm4422_vm8, %v1692_v41  ;;  %v3524_v41 = vld [vmem:[%s4797_s3] ss:$0 sm:$0xff] }
 0xaad   :  { %v1663_v43 = vpop.permute.xlu1 %1662 }
 0xaae   :  { %1665 = vst.msk [vmem:[#allocation3 + $0x1] sm:$0x1] %vm4422_vm8, %v1663_v43 }
 0xab1   :  { %v1952_v44 = vpop.permute.xlu1 %1951 }
 0xab2   :  { %1955 = vst.msk [vmem:[#allocation2] sm:$0x3f] %vm1954_vm2, %v1952_v44  ;;  %vm2587_vm2 = vcmask 62464  }
 0xab5   :  { %v1695_v45 = vld [vmem:[#allocation3] sm:$0x7] }
 0xab6   :  { %v1800_v46 = vrot.slane %v1695_v45, %v4386_v59  ;;  %v1804_v33 = vrot.slane %v1695_v45, %v4433_v28  ;;  %v1796_v49 = vrot.slane %v1695_v45, %v4383_v58 }
 0xab8   :  { %1872 = vmatprep.mubr.f32.mxu1 %v1800_v46  ;;  %1944 = vmatmul.mubr.f32.vlgmr.msra.gmra.mxu0 %v1804_v33 }
 0xab9   :  { %1873 = vmatmul.mubr.f32.vlgmr.msra.gmra.mxu1 %v1796_v49  ;;  %3630 = vmatprep.mubr.msk.f32.mxu0 %vm4054_vm10, %v4050_v23  ;;  %vm1960_vm10 = vcmask 827952  }
 0xaba   :  { %3605 = vmatpush3.msk.msra.mxu0 %vm336_vm1, %v2037_v50 }
 0xabb   :  { %3606 = vmatprep.subr.mxu0 %v4050_v23 }
 0xabc   :  { %3607 = vmatpush3.msra.mxu0 %v2036_v51 }
 0xabd   :  { %3608 = vmatprep.subr.mxu0 %v4050_v23 }
 0xabe   :  { %3609 = vmatpush3.msra.mxu0 %v2035_v57 }
 0xabf   :  { %3610 = vmatprep.subr.mxu0 %v4050_v23 }
 0xac0   :  { %3611 = vmatpush3.msra.mxu0 %v2034_v60 }
 0xac1   :  { %3612 = vmatprep.subr.mxu0 %v4050_v23 }
 0xac2   :  { %3613 = vmatpush3.msra.mxu0 %v2033_v63 }
 0xac3   :  { %3614 = vmatprep.subr.mxu0 %v4050_v23 }
 0xac4   :  { %3615 = vmatpush3.msra.mxu0 %v2032_v1 }
 0xac5   :  { %3616 = vmatprep.subr.mxu0 %v4050_v23 }
 0xac6   :  { %3617 = vmatpush3.msra.mxu0 %v2031_v2 }
 0xac7   :  { %3618 = vmatprep.subr.mxu0 %v4050_v23 }
 0xac8   :  { %3619 = vmatpush3.msra.mxu0 %v2030_v3 }
 0xac9   :  { %3620 = vmatprep.subr.mxu0 %v4050_v23 }
 0xaca   :  { %3621 = vmatpush3.msra.mxu0 %v2029_v4 }
 0xacb   :  { %3622 = vmatprep.subr.mxu0 %v4050_v23 }
 0xacc   :  { %3623 = vmatpush3.msra.mxu0 %v2028_v5 }
 0xacd   :  { %3624 = vmatprep.subr.mxu0 %v4050_v23 }
 0xace   :  { %3625 = vmatpush3.msra.mxu0 %v2027_v6 }
 0xacf   :  { %3626 = vmatprep.subr.mxu0 %v4050_v23 }
 0xad0   :  { %3627 = vmatpush3.msra.mxu0 %v2026_v7 }
 0xad1   :  { %3628 = vmatprep.subr.mxu0 %v4050_v23 }
 0xad2   :  { %3629 = vmatpush3.msra.mxu0 %v2025_v8 }
 0xb78   :  { %v1945_v53 = vpop.f32.mrf.mxu0 }
 0xb79   :  { %v1874_v55 = vpop.f32.mrf.mxu1 }
 0xb7a   :  { %v1946_v56 = vadd.f32 %v1945_v53, %v1874_v55  ;;  %v1947_v61 = vpop.f32.mrf.mxu0 }
 0xb7b   :  { %v1876_v62 = vpop.f32.mrf.mxu1 }
 0xb7c   :  { %1962 = vrot.lane.b32.xlu1 %v1946_v56, %s4060_s12  ;;  %1957 = vrot.lane.b32.xlu0 %v1946_v56, %s4061_s5  ;;  %v1948_v0 = vadd.f32 %v1947_v61, %v1876_v62 }
 0xb80   :  { %1970 = vrot.lane.b32.xlu1 %v1946_v56, %s4062_s9  ;;  %1966 = vrot.lane.b32.xlu0 %v1946_v56, %s4063_s17 }
 0xb84   :  { %1979 = vrot.lane.b32.xlu1 %v1948_v0, %s4060_s12  ;;  %1975 = vrot.lane.b32.xlu0 %v1948_v0, %s4061_s5 }
 0xbee   :  { %v1963_v9 = vpop.permute.xlu1 %1962  ;;  %v1958_v10 = vpop.permute.xlu0 %1957 }
 0xbef   :  { %1965 = vst.msk [vmem:[#allocation2 + $0x1] sm:$0x1] %vm1960_vm10, %v1963_v9  ;;  %1961 = vst.msk [vmem:[#allocation2] sm:$0x1] %vm1960_vm10, %v1958_v10  ;;  %v3527_v10 = vld [vmem:[%s4798_s14] ss:$0 sm:$0xff] }
 0xbf2   :  { %v1971_v11 = vpop.permute.xlu1 %1970  ;;  %v1967_v12 = vpop.permute.xlu0 %1966 }
 0xbf3   :  { %1973 = vst.msk [vmem:[#allocation2 + $0x3] sm:$0x1] %vm1960_vm10, %v1971_v11  ;;  %1969 = vst.msk [vmem:[#allocation2 + $0x2] sm:$0x1] %vm1960_vm10, %v1967_v12  ;;  %v3528_v12 = vld [vmem:[%s4799_s6] ss:$0 sm:$0xff] }
 0xbf6   :  { %v1980_v13 = vpop.permute.xlu1 %1979  ;;  %v1976_v14 = vpop.permute.xlu0 %1975 }
 0xbf7   :  { %1982 = vst.msk [vmem:[#allocation2 + $0x5] sm:$0x1] %vm1960_vm10, %v1980_v13  ;;  %1978 = vst.msk [vmem:[#allocation2 + $0x4] sm:$0x1] %vm1960_vm10, %v1976_v14 }
 0xbfe   :  { %v1983_v15 = vld [vmem:[#allocation2] sm:$0x3f] }
 0xbff   :  { %v1987_v16 = vsel %vm1986_vm4, %v1983_v15, 0.0 }
 0xc00   :  { %v1988_v18 = vrot.slane %v1987_v16, 4 }
 0xc02   :  { %v1989_v19 = vadd.f32 %v1988_v18, %v1987_v16  ;;  %v2313_v18 = vld [vmem:[#allocation11 + $0xf8] sm:$0xff] }
 0xc03   :  { %2394 = vmatprep.subr.mxu1 %v2313_v18  ;;  %v2339_v18 = vld [vmem:[#allocation11 + $0x1c8] sm:$0xff] }
 0xc04   :  { %v1990_v21 = vrot.slane %v1989_v19, 2 }
 0xc06   :  { %v1991_v22 = vadd.f32 %v1990_v21, %v1989_v19  ;;  %v2312_v19 = vld [vmem:[#allocation11 + $0xf0] sm:$0xff]  ;;  %v2311_v21 = vld [vmem:[#allocation11 + $0xe8] sm:$0xff] }
 0xc07   :  { %2395 = vmatpush1.msra.mxu1 %v2312_v19  ;;  %v2338_v19 = vld [vmem:[#allocation11 + $0x1c0] sm:$0xff] }
 0xc08   :  { %v1992_v25 = vrot.slane %v1991_v22, 1  ;;  %2396 = vmatprep.subr.mxu1 %v2311_v21  ;;  %v2337_v21 = vld [vmem:[#allocation11 + $0x1b8] sm:$0xff] }
 0xc0a   :  { %v1993_v26 = vadd.f32 %v1992_v25, %v1991_v22  ;;  %v2310_v22 = vld [vmem:[#allocation11 + $0xe0] sm:$0xff]  ;;  %v2309_v25 = vld [vmem:[#allocation11 + $0xd8] sm:$0xff] }
 0xc0b   :  { %2397 = vmatpush1.msra.mxu1 %v2310_v22  ;;  %v2336_v22 = vld [vmem:[#allocation11 + $0x1b0] sm:$0xff] }
 0xc0c   :  { %v1994_v27 = vmul.f32 0.16666667, %v1993_v26  ;;  %v2308_v26 = vld [vmem:[#allocation11 + $0xd0] sm:$0xff]  ;;  %2398 = vmatprep.subr.mxu1 %v2309_v25  ;;  %v2335_v25 = vld [vmem:[#allocation11 + $0x1a8] sm:$0xff] }
 0xc0d   :  { %2399 = vmatpush1.msra.mxu1 %v2308_v26  ;;  %v2334_v26 = vld [vmem:[#allocation11 + $0x1a0] sm:$0xff] }
 0xc0e   :  { %v1995_v47 = vsub.f32 %v1983_v15, %v1994_v27  ;;  %v2307_v27 = vld [vmem:[#allocation11 + $0xc8] sm:$0xff] }
 0xc0f   :  { %2400 = vmatprep.subr.mxu1 %v2307_v27  ;;  %v2333_v27 = vld [vmem:[#allocation11 + $0x198] sm:$0xff] }
 0xc10   :  { %v1996_v29 = vmul.f32 %v1995_v47, %v1995_v47 }
 0xc12   :  { %v1997_v30 = vsel %vm1986_vm4, %v1996_v29, 0.0  ;;  %v2305_v29 = vld [vmem:[#allocation11 + $0xb8] sm:$0xff]  ;;  %vm2672_vm4 = vcmask 64512  }
 0xc13   :  { %v1998_v31 = vrot.slane %v1997_v30, 4 }
 0xc15   :  { %v1999_v32 = vadd.f32 %v1998_v31, %v1997_v30  ;;  %v2304_v30 = vld [vmem:[#allocation11 + $0xb0] sm:$0xff]  ;;  %v2301_v31 = vld [vmem:[#allocation11 + $0x98] sm:$0xff] }
 0xc17   :  { %v2000_v34 = vrot.slane %v1999_v32, 2 }
 0xc19   :  { %v2001_v35 = vadd.f32 %v2000_v34, %v1999_v32  ;;  %v2377_v32 = vld [vmem:[#allocation11 + $0x2f8] sm:$0xff]  ;;  %v2300_v34 = vld [vmem:[#allocation11 + $0x90] sm:$0xff] }
 0xc1a   :  { %2465 = vmatprep.subr.mxu0 %v2377_v32 }
 0xc1b   :  { %v2002_v52 = vrot.slane %v2001_v35, 1 }
 0xc1d   :  { %v2003_v20 = vadd.f32 %v2002_v52, %v2001_v35  ;;  %v2376_v35 = vld [vmem:[#allocation11 + $0x2f0] sm:$0xff]  ;;  %v2299_v52 = vld [vmem:[#allocation11 + $0x88] sm:$0xff] }
 0xc1f   :  { %v2004_v36 = vmul.f32 0.16666667, %v2003_v20  ;;  %v2375_v20 = vld [vmem:[#allocation11 + $0x2e8] sm:$0xff] }
 0xc21   :  { %v2005_v37 = vadd.f32 1e-05, %v2004_v36  ;;  %v2374_v36 = vld [vmem:[#allocation11 + $0x2e0] sm:$0xff] }
 0xc23   :  { %3751 = vrsqrt.f32 %v2005_v37  ;;  %v2298_v37 = vld [vmem:[#allocation11 + $0x80] sm:$0xff] }
 0xc30   :  { %v3752_v38 = vpop.eup %3751 }
 0xc31   :  { %v2007_v40 = vmul.f32 %v3752_v38, %v1995_v47  ;;  %v2306_v47 = vld [vmem:[#allocation11 + $0xc0] sm:$0xff]  ;;  %v2373_v38 = vld [vmem:[#allocation11 + $0x2d8] sm:$0xff] }
 0xc32   :  { %2401 = vmatpush1.msra.mxu1 %v2306_v47  ;;  %v2332_v47 = vld [vmem:[#allocation11 + $0x190] sm:$0xff] }
 0xc33   :  { %v2014_v43 = vmul.f32 %v3523_v39, %v2007_v40  ;;  %2402 = vmatprep.subr.mxu1 %v2305_v29  ;;  %v2297_v39 = vld [vmem:[#allocation11 + $0x78] sm:$0xff]  ;;  %v2372_v40 = vld [vmem:[#allocation11 + $0x2d0] sm:$0xff]  ;;  %v2331_v29 = vld [vmem:[#allocation11 + $0x188] sm:$0xff] }
 0xc34   :  { %2403 = vmatpush1.msra.mxu1 %v2304_v30  ;;  %v2330_v30 = vld [vmem:[#allocation11 + $0x180] sm:$0xff] }
 0xc35   :  { %v2021_v44 = vadd.f32 %v3524_v41, %v2014_v43  ;;  %v2371_v41 = vld [vmem:[#allocation11 + $0x2c8] sm:$0xff]  ;;  %v2296_v43 = vld [vmem:[#allocation11 + $0x70] sm:$0xff] }
 0xc37   :  { %vm2022_vm6 = vcmp.ge.f32.partialorder %v2021_v44, 0.0  ;;  %v2023_v45 = vmul.f32 0.01, %v2021_v44 }
 0xc39   :  { %v2024_v46 = vsel %vm2022_vm6, %v2021_v44, %v2023_v45  ;;  %v2370_v44 = vld [vmem:[#allocation11 + $0x2c0] sm:$0xff]  ;;  %v2295_v45 = vld [vmem:[#allocation11 + $0x68] sm:$0xff] }
 0xc3a   :  { %3631 = vmatmul.mubr.msk.f32.vlgmr.msra.gmra.mxu0 %vm2038_vm7, %v2024_v46  ;;  %v2369_v46 = vld [vmem:[#allocation11 + $0x2b8] sm:$0xff] }
 0xc3b   :  { %2529 = vmatprep.mubr.f32.mxu0 %v4050_v23  ;;  %2466 = vmatpush1.msra.mxu0 %v2376_v35 }
 0xc3c   :  { %2467 = vmatprep.subr.mxu0 %v2375_v20 }
 0xc3d   :  { %2468 = vmatpush1.msra.mxu0 %v2374_v36 }
 0xc3e   :  { %2469 = vmatprep.subr.mxu0 %v2373_v38 }
 0xc3f   :  { %2470 = vmatpush1.msra.mxu0 %v2372_v40 }
 0xc40   :  { %2471 = vmatprep.subr.mxu0 %v2371_v41 }
 0xc41   :  { %2472 = vmatpush1.msra.mxu0 %v2370_v44 }
 0xc42   :  { %2473 = vmatprep.subr.mxu0 %v2369_v46 }
 0xcfa   :  { %v4575_v33 = vpop.f32.mrf.mxu0 }
 0xcfb   :  { %v2117_v49 = vsel %vm332_vm0, %v4575_v33, 0.0 }
 0xcfc   :  { %v2118_v50 = vrot.slane %v2117_v49, 4  ;;  %v3632_v51 = vpop.f32.mrf.mxu0 }
 0xcfd   :  { %v2293_v51 = vld [vmem:[#allocation11 + $0x58] sm:$0xff] }
 0xcfe   :  { %v2119_v53 = vadd.f32 %v2118_v50, %v2117_v49  ;;  %v2294_v49 = vld [vmem:[#allocation11 + $0x60] sm:$0xff]  ;;  %v2368_v50 = vld [vmem:[#allocation11 + $0x2b0] sm:$0xff] }
 0xcff   :  { %2474 = vmatpush1.msra.mxu0 %v2368_v50 }
 0xd00   :  { %v2120_v55 = vrot.slane %v2119_v53, 2 }
 0xd02   :  { %v2121_v56 = vadd.f32 %v2120_v55, %v2119_v53  ;;  %v2367_v53 = vld [vmem:[#allocation11 + $0x2a8] sm:$0xff]  ;;  %v2292_v55 = vld [vmem:[#allocation11 + $0x50] sm:$0xff] }
 0xd03   :  { %2475 = vmatprep.subr.mxu0 %v2367_v53 }
 0xd04   :  { %v2122_v57 = vrot.slane %v2121_v56, 1 }
 0xd06   :  { %v2123_v60 = vadd.f32 %v2122_v57, %v2121_v56  ;;  %v2366_v56 = vld [vmem:[#allocation11 + $0x2a0] sm:$0xff]  ;;  %v2291_v57 = vld [vmem:[#allocation11 + $0x48] sm:$0xff] }
 0xd07   :  { %2476 = vmatpush1.msra.mxu0 %v2366_v56 }
 0xd08   :  { %v2124_v61 = vmul.f32 0.16666667, %v2123_v60  ;;  %v2365_v60 = vld [vmem:[#allocation11 + $0x298] sm:$0xff] }
 0xd09   :  { %2477 = vmatprep.subr.mxu0 %v2365_v60 }
 0xd0a   :  { %v2125_v62 = vsub.f32 %v4575_v33, %v2124_v61  ;;  %v2290_v61 = vld [vmem:[#allocation11 + $0x40] sm:$0xff] }
 0xd0c   :  { %v2126_v63 = vmul.f32 %v2125_v62, %v2125_v62 }
 0xd0e   :  { %v2127_v0 = vsel %vm332_vm0, %v2126_v63, 0.0  ;;  %v2289_v63 = vld [vmem:[#allocation11 + $0x38] sm:$0xff] }
 0xd0f   :  { %v2128_v1 = vrot.slane %v2127_v0, 4 }
 0xd11   :  { %v2129_v2 = vadd.f32 %v2128_v1, %v2127_v0  ;;  %v2363_v0 = vld [vmem:[#allocation11 + $0x288] sm:$0xff]  ;;  %v2288_v1 = vld [vmem:[#allocation11 + $0x30] sm:$0xff] }
 0xd13   :  { %v2130_v3 = vrot.slane %v2129_v2, 2 }
 0xd15   :  { %v2131_v4 = vadd.f32 %v2130_v3, %v2129_v2  ;;  %v2362_v2 = vld [vmem:[#allocation11 + $0x280] sm:$0xff]  ;;  %v2287_v3 = vld [vmem:[#allocation11 + $0x28] sm:$0xff] }
 0xd17   :  { %v2132_v5 = vrot.slane %v2131_v4, 1 }
 0xd19   :  { %v2133_v6 = vadd.f32 %v2132_v5, %v2131_v4  ;;  %v2361_v4 = vld [vmem:[#allocation11 + $0x278] sm:$0xff]  ;;  %v2286_v5 = vld [vmem:[#allocation11 + $0x20] sm:$0xff] }
 0xd1b   :  { %v2134_v7 = vmul.f32 0.16666667, %v2133_v6  ;;  %v2360_v6 = vld [vmem:[#allocation11 + $0x270] sm:$0xff] }
 0xd1d   :  { %v2135_v8 = vadd.f32 1e-05, %v2134_v7  ;;  %v2285_v7 = vld [vmem:[#allocation11 + $0x18] sm:$0xff] }
 0xd1f   :  { %3753 = vrsqrt.f32 %v2135_v8  ;;  %v2284_v8 = vld [vmem:[#allocation11 + $0x10] sm:$0xff] }
 0xd2c   :  { %v3754_v9 = vpop.eup %3753 }
 0xd2d   :  { %v2137_v11 = vmul.f32 %v3754_v9, %v2125_v62  ;;  %v2364_v62 = vld [vmem:[#allocation11 + $0x290] sm:$0xff]  ;;  %v2283_v9 = vld [vmem:[#allocation11 + $0x8] sm:$0xff] }
 0xd2e   :  { %2478 = vmatpush1.msra.mxu0 %v2364_v62 }
 0xd2f   :  { %v2144_v13 = vmul.f32 %v3527_v10, %v2137_v11  ;;  %2479 = vmatprep.subr.mxu0 %v2363_v0  ;;  %v2282_v10 = vld [vmem:[#allocation11] sm:$0xff]  ;;  %v2345_v11 = vld [vmem:[#allocation11 + $0x1f8] sm:$0xff]  ;;  %v3529_v0 = vld [vmem:[%s4801_s25] ss:$0 sm:$0xff] }
 0xd30   :  { %2480 = vmatpush1.msra.mxu0 %v2362_v2  ;;  %v3530_v2 = vld [vmem:[%s4802_s30] ss:$0 sm:$0xff] }
 0xd31   :  { %v2151_v14 = vadd.f32 %v3528_v12, %v2144_v13  ;;  %2481 = vmatprep.subr.mxu0 %v2361_v4  ;;  %v2344_v12 = vld [vmem:[#allocation11 + $0x1f0] sm:$0xff]  ;;  %v2343_v13 = vld [vmem:[#allocation11 + $0x1e8] sm:$0xff] }
 0xd32   :  { %2482 = vmatpush1.msra.mxu0 %v2360_v6  ;;  %v2359_v4 = vld [vmem:[#allocation11 + $0x268] sm:$0xff] }
 0xd33   :  { %vm2152_vm11 = vcmp.ge.f32.partialorder %v2151_v14, 0.0  ;;  %v2153_v15 = vmul.f32 0.01, %v2151_v14  ;;  %2483 = vmatprep.subr.mxu0 %v2359_v4  ;;  %v2327_v6 = vld [vmem:[#allocation11 + $0x168] sm:$0xff]  ;;  %v2669_v4 = vld [vmem:[#allocation17 + $0x70] sm:$0xff] }
 0xd35   :  { %v2154_v16 = vsel %vm2152_vm11, %v2151_v14, %v2153_v15  ;;  %v2342_v14 = vld [vmem:[#allocation11 + $0x1e0] sm:$0xff]  ;;  %v2341_v15 = vld [vmem:[#allocation11 + $0x1d8] sm:$0xff] }
 0xd36   :  { %2167 = vperm.xlu1 %3730, %v2154_v16   ;;  %2158 = vperm.xlu0 %3729, %v2154_v16   ;;  %v2340_v16 = vld [vmem:[#allocation11 + $0x1d0] sm:$0xff] }
 0xd3a   :  { %3731 = vset.pattern.permute.xlu1 %v4046_v17  ;;  %3732 = vset.pattern.permute.xlu0 %v4047_v54  ;;  %v2303_v17 = vld [vmem:[#allocation11 + $0xa8] sm:$0xff]  ;;  %v2302_v54 = vld [vmem:[#allocation11 + $0xa0] sm:$0xff] }
 0xd3b   :  { %2404 = vmatprep.subr.mxu1 %v2303_v17  ;;  %v2155_v17 = vld [vmem:[%s4800_s0] sm:$0x3] }
 0xd3c   :  { %2405 = vmatpush1.msra.mxu1 %v2302_v54  ;;  %v2329_v54 = vld [vmem:[#allocation11 + $0x178] sm:$0xff]  ;;  %v2164_v32 = vrot.slane %v2155_v17, %v4383_v58 }
 0xd3d   :  { %2406 = vmatprep.subr.mxu1 %v2301_v31  ;;  %v2173_v31 = vrot.slane %v2155_v17, %v4386_v59  ;;  %v2319_v17 = vld [vmem:[#allocation11 + $0x128] sm:$0xff] }
 0xd3e   :  { %2407 = vmatpush1.msra.mxu1 %v2300_v34 }
 0xd3f   :  { %2408 = vmatprep.subr.mxu1 %v2299_v52 }
 0xd40   :  { %2409 = vmatpush1.msra.mxu1 %v2298_v37 }
 0xd41   :  { %2410 = vmatprep.subr.mxu1 %v2297_v39 }
 0xd42   :  { %2411 = vmatpush1.msra.mxu1 %v2296_v43 }
 0xd43   :  { %2412 = vmatprep.subr.mxu1 %v2295_v45 }
 0xd44   :  { %2413 = vmatpush1.msra.mxu1 %v2294_v49 }
 0xd45   :  { %2414 = vmatprep.subr.mxu1 %v2293_v51 }
 0xd46   :  { %2415 = vmatpush1.msra.mxu1 %v2292_v55 }
 0xd47   :  { %2416 = vmatprep.subr.mxu1 %v2291_v57 }
 0xd48   :  { %2417 = vmatpush1.msra.mxu1 %v2290_v61 }
 0xd49   :  { %2418 = vmatprep.subr.mxu1 %v2289_v63 }
 0xd4a   :  { %2419 = vmatpush1.msra.mxu1 %v2288_v1 }
 0xd4b   :  { %2420 = vmatprep.subr.mxu1 %v2287_v3  ;;  %v2328_v3 = vld [vmem:[#allocation11 + $0x170] sm:$0xff] }
 0xd4c   :  { %2421 = vmatpush1.msra.mxu1 %v2286_v5 }
 0xd4d   :  { %2422 = vmatprep.subr.mxu1 %v2285_v7  ;;  %v2358_v7 = vld [vmem:[#allocation11 + $0x260] sm:$0xff] }
 0xd4e   :  { %2423 = vmatpush1.msra.mxu1 %v2284_v8  ;;  %2484 = vmatpush1.msra.mxu0 %v2358_v7  ;;  %v2326_v8 = vld [vmem:[#allocation11 + $0x160] sm:$0xff]  ;;  %v2667_v7 = vld [vmem:[#allocation17 + $0x60] sm:$0xff] }
 0xd4f   :  { %2424 = vmatprep.subr.mxu1 %v2283_v9  ;;  %v2357_v9 = vld [vmem:[#allocation11 + $0x258] sm:$0xff] }
 0xd50   :  { %2425 = vmatpush1.msra.mxu1 %v2282_v10  ;;  %2485 = vmatprep.subr.mxu0 %v2357_v9  ;;  %v2665_v9 = vld [vmem:[#allocation17 + $0x50] sm:$0xff] }
 0xd51   :  { %2426 = vmatprep.subr.mxu1 %v2345_v11  ;;  %v2325_v11 = vld [vmem:[#allocation11 + $0x158] sm:$0xff] }
 0xd52   :  { %2427 = vmatpush2.msra.mxu1 %v2344_v12  ;;  %v2356_v12 = vld [vmem:[#allocation11 + $0x250] sm:$0xff] }
 0xd53   :  { %2428 = vmatprep.subr.mxu1 %v2343_v13  ;;  %2486 = vmatpush1.msra.mxu0 %v2356_v12  ;;  %v2324_v13 = vld [vmem:[#allocation11 + $0x150] sm:$0xff]  ;;  %v2662_v12 = vld [vmem:[#allocation17 + $0x38] sm:$0xff] }
 0xd54   :  { %2429 = vmatpush2.msra.mxu1 %v2342_v14  ;;  %v2355_v14 = vld [vmem:[#allocation11 + $0x248] sm:$0xff] }
 0xd55   :  { %2430 = vmatprep.subr.mxu1 %v2341_v15  ;;  %2487 = vmatprep.subr.mxu0 %v2355_v14  ;;  %v2660_v14 = vld [vmem:[#allocation17 + $0x28] sm:$0xff] }
 0xd56   :  { %2431 = vmatpush2.msra.mxu1 %v2340_v16  ;;  %v2323_v16 = vld [vmem:[#allocation11 + $0x148] sm:$0xff] }
 0xd57   :  { %2432 = vmatprep.subr.mxu1 %v2339_v18  ;;  %v2354_v18 = vld [vmem:[#allocation11 + $0x240] sm:$0xff] }
 0xd58   :  { %2433 = vmatpush2.msra.mxu1 %v2338_v19  ;;  %2488 = vmatpush1.msra.mxu0 %v2354_v18  ;;  %v2322_v19 = vld [vmem:[#allocation11 + $0x140] sm:$0xff] }
 0xd59   :  { %2434 = vmatprep.subr.mxu1 %v2337_v21  ;;  %v2353_v21 = vld [vmem:[#allocation11 + $0x238] sm:$0xff]  ;;  %v2657_v18 = vld [vmem:[#allocation17 + $0x10] sm:$0xff] }
 0xd5a   :  { %2435 = vmatpush2.msra.mxu1 %v2336_v22  ;;  %v2321_v22 = vld [vmem:[#allocation11 + $0x138] sm:$0xff]  ;;  %2489 = vmatprep.subr.mxu0 %v2353_v21  ;;  %v2655_v21 = vld [vmem:[#allocation17] sm:$0xff] }
 0xd5b   :  { %2436 = vmatprep.subr.mxu1 %v2335_v25 }
 0xd5c   :  { %2437 = vmatpush2.msra.mxu1 %v2334_v26  ;;  %v2352_v26 = vld [vmem:[#allocation11 + $0x230] sm:$0xff] }
 0xd5d   :  { %2438 = vmatprep.subr.mxu1 %v2333_v27  ;;  %v2320_v27 = vld [vmem:[#allocation11 + $0x130] sm:$0xff]  ;;  %2490 = vmatpush1.msra.mxu0 %v2352_v26 }
 0xd5e   :  { %2439 = vmatpush2.msra.mxu1 %v2332_v47  ;;  %v2351_v47 = vld [vmem:[#allocation11 + $0x228] sm:$0xff] }
 0xd5f   :  { %2440 = vmatprep.subr.mxu1 %v2331_v29  ;;  %2491 = vmatprep.subr.mxu0 %v2351_v47 }
 0xd60   :  { %2441 = vmatpush2.msra.mxu1 %v2330_v30 }
 0xd61   :  { %2442 = vmatprep.subr.mxu1 %v2329_v54  ;;  %v2350_v54 = vld [vmem:[#allocation11 + $0x220] sm:$0xff] }
 0xd62   :  { %2443 = vmatpush2.msra.mxu1 %v2328_v3  ;;  %2492 = vmatpush1.msra.mxu0 %v2350_v54 }
 0xd63   :  { %2444 = vmatprep.subr.mxu1 %v2327_v6  ;;  %v2668_v6 = vld [vmem:[#allocation17 + $0x68] sm:$0xff] }
 0xd64   :  { %2445 = vmatpush2.msra.mxu1 %v2326_v8  ;;  %v2666_v8 = vld [vmem:[#allocation17 + $0x58] sm:$0xff] }
 0xd65   :  { %2446 = vmatprep.subr.mxu1 %v2325_v11  ;;  %v2663_v11 = vld [vmem:[#allocation17 + $0x40] sm:$0xff] }
 0xd66   :  { %2447 = vmatpush2.msra.mxu1 %v2324_v13  ;;  %v2661_v13 = vld [vmem:[#allocation17 + $0x30] sm:$0xff] }
 0xd67   :  { %2448 = vmatprep.subr.mxu1 %v2323_v16  ;;  %v2658_v16 = vld [vmem:[#allocation17 + $0x18] sm:$0xff] }
 0xd68   :  { %2449 = vmatpush2.msra.mxu1 %v2322_v19  ;;  %v2656_v19 = vld [vmem:[#allocation17 + $0x8] sm:$0xff] }
 0xd69   :  { %2450 = vmatprep.subr.mxu1 %v2321_v22  ;;  %v2671_v22 = vld [vmem:[#allocation17 + $0x80] sm:$0xff] }
 0xd6a   :  { %2451 = vmatpush2.msra.mxu1 %v2320_v27 }
 0xd6b   :  { %2452 = vmatprep.subr.mxu1 %v2319_v17 }
 0xdb1   :  { %v2168_v34 = vpop.permute.xlu1 %2167  ;;  %v2159_v35 = vpop.permute.xlu0 %2158 }
 0xdb2   :  { %v2174_v52 = vmul.f32 %v2173_v31, %v2168_v34  ;;  %v2165_v20 = vmul.f32 %v2164_v32, %v2159_v35  ;;  %v2318_v31 = vld [vmem:[#allocation11 + $0x120] sm:$0xff]  ;;  %v2349_v32 = vld [vmem:[#allocation11 + $0x218] sm:$0xff] }
 0xdb3   :  { %v2317_v34 = vld [vmem:[#allocation11 + $0x118] sm:$0xff]  ;;  %2453 = vmatpush2.msra.mxu1 %v2318_v31  ;;  %2493 = vmatprep.subr.mxu0 %v2349_v32 }
 0xdb4   :  { %v2175_v36 = vadd.f32 %v2174_v52, %v2165_v20  ;;  %2454 = vmatprep.subr.mxu1 %v2317_v34 }
 0xdb6   :  { %v2178_v37 = vsel %vm427_vm3, %v2175_v36, 0.0 }
 0xdb7   :  { %v2179_v38 = vrot.slane %v2178_v37, 4 }
 0xdb9   :  { %v2180_v39 = vadd.f32 %v2179_v38, %v2178_v37  ;;  %v2316_v37 = vld [vmem:[#allocation11 + $0x110] sm:$0xff]  ;;  %v2347_v38 = vld [vmem:[#allocation11 + $0x208] sm:$0xff] }
 0xdba   :  { %2455 = vmatpush2.msra.mxu1 %v2316_v37 }
 0xdbb   :  { %v2181_v40 = vrot.slane %v2180_v39, 2 }
 0xdbd   :  { %v2182_v41 = vadd.f32 %v2181_v40, %v2180_v39 }
 0xdbf   :  { %v2183_v43 = vrot.slane %v2182_v41, 1 }
 0xdc1   :  { %v2184_v44 = vadd.f32 %v2183_v43, %v2182_v41 }
 0xdc3   :  { %v2185_v45 = vmul.f32 0.16666667, %v2184_v44  ;;  %v2315_v44 = vld [vmem:[#allocation11 + $0x108] sm:$0xff] }
 0xdc4   :  { %2456 = vmatprep.subr.mxu1 %v2315_v44 }
 0xdc5   :  { %v2186_v46 = vsub.f32 %v2175_v36, %v2185_v45  ;;  %v2348_v36 = vld [vmem:[#allocation11 + $0x210] sm:$0xff]  ;;  %v2346_v45 = vld [vmem:[#allocation11 + $0x200] sm:$0xff] }
 0xdc6   :  { %2494 = vmatpush1.msra.mxu0 %v2348_v36 }
 0xdc7   :  { %v2187_v49 = vmul.f32 %v2186_v46, %v2186_v46  ;;  %2495 = vmatprep.subr.mxu0 %v2347_v38 }
 0xdc8   :  { %2496 = vmatpush1.msra.mxu0 %v2346_v45 }
 0xdc9   :  { %v2188_v50 = vsel %vm427_vm3, %v2187_v49, 0.0  ;;  %2676 = vmatprep.subr.mxu0 %v4050_v23 }
 0xdca   :  { %v2189_v51 = vrot.slane %v2188_v50, 4 }
 0xdcc   :  { %v2190_v53 = vadd.f32 %v2189_v51, %v2188_v50 }
 0xdce   :  { %v2191_v55 = vrot.slane %v2190_v53, 2 }
 0xdd0   :  { %v2192_v56 = vadd.f32 %v2191_v55, %v2190_v53 }
 0xdd2   :  { %v2193_v57 = vrot.slane %v2192_v56, 1 }
 0xdd4   :  { %v2194_v60 = vadd.f32 %v2193_v57, %v2192_v56 }
 0xdd6   :  { %v2195_v61 = vmul.f32 0.16666667, %v2194_v60 }
 0xdd8   :  { %v2196_v62 = vadd.f32 1e-05, %v2195_v61 }
 0xdda   :  { %3755 = vrsqrt.f32 %v2196_v62 }
 0xde7   :  { %v3756_v63 = vpop.eup %3755 }
 0xde8   :  { %v2198_v1 = vmul.f32 %v3756_v63, %v2186_v46  ;;  %v2314_v46 = vld [vmem:[#allocation11 + $0x100] sm:$0xff] }
 0xde9   :  { %2457 = vmatpush2.msra.mxu1 %v2314_v46 }
 0xdea   :  { %v2205_v5 = vmul.f32 %v3529_v0, %v2198_v1  ;;  %v2670_v1 = vld [vmem:[#allocation17 + $0x78] sm:$0xff] }
 0xdec   :  { %v2212_v10 = vadd.f32 %v3530_v2, %v2205_v5 }
 0xdee   :  { %vm2213_vm12 = vcmp.ge.f32.partialorder %v2212_v10, 0.0  ;;  %v2214_v15 = vmul.f32 0.01, %v2212_v10 }
 0xdf0   :  { %v2215_v25 = vsel %vm2213_vm12, %v2212_v10, %v2214_v15  ;;  %v2664_v10 = vld [vmem:[#allocation17 + $0x48] sm:$0xff]  ;;  %v2659_v15 = vld [vmem:[#allocation17 + $0x20] sm:$0xff]  ;;  %vm3301_vm12 = vcmask 343040  }
 0xdf1   :  { %v2224_v29 = vrot.slane %v2215_v25, %v4396_v42  ;;  %2216 = vst.msk [vmem:[#allocation3] sm:$0x1] %vm4399_vm5, %v2215_v25  ;;  %v2252_v30 = vcombine.high %v2215_v25, %v2215_v25 }
 0xdf3   :  { %v2225_v35 = vcombine.high %v2224_v29, %v2224_v29  ;;  %v2232_v52 = vrot.slane %v2224_v29, %v4396_v42  ;;  %v2259_v20 = vrot.slane %v2252_v30, %v4396_v42 }
 0xdf5   :  { %v2239_v39 = vrot.slane %v2225_v35, %v4396_v42  ;;  %v2244_v40 = vcombine.high %v2232_v52, %v2232_v52  ;;  %v2266_v41 = vrot.slane %v2259_v20, %v4396_v42  ;;  %v2269_v43 = vcombine.high %v2259_v20, %v2259_v20 }
 0xdf7   :  { %2240 = vrot.lane.b32.xlu1 %v2239_v39, %s4049_s13  ;;  %2246 = vst.msk [vmem:[#allocation3 + $0x1] sm:$0x1] %vm4399_vm5, %v2244_v40  ;;  %v2247_v49 = vcombine.high %v2239_v39, %v2239_v39  ;;  %2268 = vst.msk [vmem:[#allocation3 + $0x2] sm:$0x1] %vm4399_vm5, %v2266_v41  ;;  %v2276_v50 = vrot.slane %v2269_v43, %v4396_v42 }
 0xdf9   :  { %2248 = vrot.lane.b32.xlu0 %v2247_v49, %s4049_s13 }
 0xdfb   :  { %2277 = vrot.lane.b32.xlu1 %v2276_v50, %s4049_s13 }
 0xdfd   :  { %2537 = vrot.lane.b32.xlu0 %v4575_v33, %s4062_s9 }
 0xe69   :  { %v2241_v51 = vpop.permute.xlu1 %2240 }
 0xe6a   :  { %2243 = vst.msk [vmem:[#allocation3] sm:$0x1] %vm4422_vm8, %v2241_v51 }
 0xe6b   :  { %v2249_v53 = vpop.permute.xlu0 %2248 }
 0xe6c   :  { %2251 = vst.msk [vmem:[#allocation3 + $0x1] sm:$0x1] %vm4422_vm8, %v2249_v53 }
 0xe6d   :  { %v2278_v55 = vpop.permute.xlu1 %2277 }
 0xe6e   :  { %2280 = vst.msk [vmem:[#allocation3 + $0x2] sm:$0x1] %vm4422_vm8, %v2278_v55 }
 0xe6f   :  { %v2538_v56 = vpop.permute.xlu0 %2537 }
 0xe70   :  { %2541 = vst.msk [vmem:[#allocation2] sm:$0x3f] %vm2540_vm13, %v2538_v56 }
 0xe75   :  { %v2281_v57 = vld [vmem:[#allocation3] sm:$0x7] }
 0xe76   :  { %v2386_v60 = vrot.slane %v2281_v57, %v4386_v59  ;;  %v2390_v33 = vrot.slane %v2281_v57, %v4433_v28  ;;  %v2382_v61 = vrot.slane %v2281_v57, %v4383_v58 }
 0xe78   :  { %2458 = vmatprep.mubr.f32.mxu1 %v2386_v60  ;;  %2530 = vmatmul.mubr.f32.vlgmr.msra.gmra.mxu0 %v2390_v33 }
 0xe79   :  { %2459 = vmatmul.mubr.f32.vlgmr.msra.gmra.mxu1 %v2382_v61  ;;  %2677 = vmatpush1.msra.mxu0 %v2670_v1 }
 0xe7a   :  { %2678 = vmatprep.subr.mxu0 %v4050_v23 }
 0xe7b   :  { %2679 = vmatpush1.msra.mxu0 %v2669_v4 }
 0xe7c   :  { %2680 = vmatprep.subr.mxu0 %v4050_v23 }
 0xe7d   :  { %2681 = vmatpush1.msra.mxu0 %v2668_v6 }
 0xe7e   :  { %2682 = vmatprep.subr.mxu0 %v4050_v23 }
 0xe7f   :  { %2683 = vmatpush1.msra.mxu0 %v2667_v7 }
 0xe80   :  { %2684 = vmatprep.subr.mxu0 %v4050_v23 }
 0xe81   :  { %2685 = vmatpush1.msra.mxu0 %v2666_v8 }
 0xe82   :  { %2686 = vmatprep.subr.mxu0 %v4050_v23 }
 0xe83   :  { %2687 = vmatpush1.msra.mxu0 %v2665_v9 }
 0xe84   :  { %2688 = vmatprep.subr.mxu0 %v4050_v23 }
 0xe85   :  { %2689 = vmatpush1.msra.mxu0 %v2664_v10  ;;  %v2578_v10 = vld [vmem:[%s4803_s18] sm:$0x3] }
 0xe86   :  { %2690 = vmatprep.subr.mxu0 %v4050_v23 }
 0xe87   :  { %2691 = vmatpush1.msra.mxu0 %v2663_v11  ;;  %v2579_v11 = vld [vmem:[%s4804_s8] sm:$0x3] }
 0xe88   :  { %2692 = vmatprep.subr.mxu0 %v4050_v23 }
 0xe89   :  { %2693 = vmatpush1.msra.mxu0 %v2662_v12  ;;  %v2631_v12 = vrot.slane %v2578_v10, %v4386_v59 }
 0xe8a   :  { %2694 = vmatprep.subr.mxu0 %v4050_v23 }
 0xe8b   :  { %2695 = vmatpush1.msra.mxu0 %v2661_v13 }
 0xe8c   :  { %2696 = vmatprep.subr.mxu0 %v4050_v23 }
 0xe8d   :  { %2697 = vmatpush1.msra.mxu0 %v2660_v14  ;;  %v2627_v14 = vrot.slane %v2578_v10, %v4383_v58  ;;  %v2934_v10 = vld [vmem:[#allocation13 + $0xa8] sm:$0xff] }
 0xe8e   :  { %2698 = vmatprep.subr.mxu0 %v4050_v23 }
 0xe8f   :  { %2699 = vmatpush1.msra.mxu0 %v2659_v15 }
 0xe90   :  { %2700 = vmatprep.subr.mxu0 %v4050_v23 }
 0xe91   :  { %2701 = vmatpush1.msra.mxu0 %v2658_v16 }
 0xe92   :  { %2702 = vmatprep.subr.mxu0 %v4050_v23 }
 0xe93   :  { %2703 = vmatpush1.msra.mxu0 %v2657_v18  ;;  %v2644_v18 = vrot.slane %v2579_v11, %v4386_v59 }
 0xe94   :  { %2704 = vmatprep.subr.mxu0 %v4050_v23 }
 0xe95   :  { %2705 = vmatpush1.msra.mxu0 %v2656_v19 }
 0xe96   :  { %2706 = vmatprep.subr.mxu0 %v4050_v23 }
 0xe97   :  { %2707 = vmatpush1.msra.mxu0 %v2655_v21  ;;  %v2640_v21 = vrot.slane %v2579_v11, %v4383_v58  ;;  %v2933_v11 = vld [vmem:[#allocation13 + $0xa0] sm:$0xff] }
 0xe98   :  { %2738 = vmatprep.subr.mxu0 %v4050_v23 }
 0xe99   :  { %2739 = vmatpush2.msra.mxu0 %v2671_v22 }
 0xf38   :  { %v2531_v62 = vpop.f32.mrf.mxu0 }
 0xf39   :  { %v2460_v63 = vpop.f32.mrf.mxu1 }
 0xf3a   :  { %v2532_v0 = vadd.f32 %v2531_v62, %v2460_v63  ;;  %v2533_v2 = vpop.f32.mrf.mxu0 }
 0xf3b   :  { %v2462_v3 = vpop.f32.mrf.mxu1 }
 0xf3c   :  { %2550 = vrot.lane.b32.xlu0 %v2532_v0, %s4064_s27  ;;  %2543 = vrot.lane.b32.xlu1 %v2532_v0, %s4065_s15  ;;  %v2534_v5 = vadd.f32 %v2533_v2, %v2462_v3 }
 0xf40   :  { %2560 = vrot.lane.b32.xlu0 %v2532_v0, %s4039_s10  ;;  %2555 = vrot.lane.b32.xlu1 %v2532_v0, %s4066_s16 }
 0xf44   :  { %2571 = vrot.lane.b32.xlu0 %v2534_v5, %s4064_s27  ;;  %2566 = vrot.lane.b32.xlu1 %v2534_v5, %s4065_s15 }
 0xfae   :  { %v2551_v25 = vpop.permute.xlu0 %2550  ;;  %v2544_v26 = vpop.permute.xlu1 %2543 }
 0xfaf   :  { %2553 = vst.msk [vmem:[#allocation2 + $0x1] sm:$0x1] %vm2546_vm14, %v2551_v25  ;;  %2547 = vst.msk [vmem:[#allocation2] sm:$0x1] %vm2546_vm14, %v2544_v26 }
 0xfb0   :  { %2554 = vst.msk [vmem:[#allocation2 + $0x9] sm:$0x1] %vm2548_vm15, %v2551_v25  ;;  %2549 = vst.msk [vmem:[#allocation2 + $0x8] sm:$0x1] %vm2548_vm15, %v2544_v26 }
 0xfb2   :  { %v2561_v27 = vpop.permute.xlu0 %2560  ;;  %v2556_v47 = vpop.permute.xlu1 %2555 }
 0xfb3   :  { %2563 = vst.msk [vmem:[#allocation2 + $0x3] sm:$0x1] %vm2546_vm14, %v2561_v27  ;;  %2558 = vst.msk [vmem:[#allocation2 + $0x2] sm:$0x1] %vm2546_vm14, %v2556_v47 }
 0xfb4   :  { %2564 = vst.msk [vmem:[#allocation2 + $0xb] sm:$0x1] %vm2548_vm15, %v2561_v27  ;;  %2559 = vst.msk [vmem:[#allocation2 + $0xa] sm:$0x1] %vm2548_vm15, %v2556_v47 }
 0xfb6   :  { %v2572_v29 = vpop.permute.xlu0 %2571  ;;  %v2567_v30 = vpop.permute.xlu1 %2566 }
 0xfb7   :  { %2574 = vst.msk [vmem:[#allocation2 + $0x5] sm:$0x1] %vm2546_vm14, %v2572_v29  ;;  %2569 = vst.msk [vmem:[#allocation2 + $0x4] sm:$0x1] %vm2546_vm14, %v2567_v30 }
 0xfb8   :  { %2575 = vst.msk [vmem:[#allocation2 + $0xd] sm:$0x1] %vm2548_vm15, %v2572_v29  ;;  %2570 = vst.msk [vmem:[#allocation2 + $0xc] sm:$0x1] %vm2548_vm15, %v2567_v30  ;;  %vm3432_vm15 = vcmask 0  }
 0xfbe   :  { %v2576_v54 = vld [vmem:[#allocation2] sm:$0x3f] }
 0xfbf   :  { %v2577_v17 = vld [vmem:[#allocation2 + $0x8] sm:$0x3f]  ;;  %v2580_v32 = vsel %vm336_vm1, %v2576_v54, 0.0 }
 0xfc0   :  { %v2588_v31 = vsel %vm2587_vm2, %v2577_v17, 0.0  ;;  %v2581_v35 = vrot.slane %v2580_v32, 4 }
 0xfc1   :  { %v2589_v34 = vrot.slane %v2588_v31, 4 }
 0xfc2   :  { %v2582_v20 = vadd.f32 %v2581_v35, %v2580_v32 }
 0xfc3   :  { %v2590_v52 = vadd.f32 %v2589_v34, %v2588_v31 }
 0xfc4   :  { %v2583_v37 = vrot.slane %v2582_v20, 2 }
 0xfc5   :  { %v2591_v36 = vrot.slane %v2590_v52, 2 }
 0xfc6   :  { %v2584_v39 = vadd.f32 %v2583_v37, %v2582_v20 }
 0xfc7   :  { %v2592_v38 = vadd.f32 %v2591_v36, %v2590_v52 }
 0xfc8   :  { %v2585_v41 = vrot.slane %v2584_v39, 1 }
 0xfc9   :  { %v2593_v40 = vrot.slane %v2592_v38, 1 }
 0xfca   :  { %v2586_v44 = vadd.f32 %v2585_v41, %v2584_v39 }
 0xfcb   :  { %v2594_v43 = vadd.f32 %v2593_v40, %v2592_v38 }
 0xfcc   :  { %v2595_v46 = vmul.f32 0.16666667, %v2586_v44 }
 0xfcd   :  { %v2596_v45 = vmul.f32 0.16666667, %v2594_v43 }
 0xfce   :  { %v2597_v50 = vsub.f32 %v2576_v54, %v2595_v46 }
 0xfcf   :  { %v2598_v49 = vsub.f32 %v2577_v17, %v2596_v45 }
 0xfd0   :  { %v2599_v53 = vmul.f32 %v2597_v50, %v2597_v50 }
 0xfd1   :  { %v2600_v51 = vmul.f32 %v2598_v49, %v2598_v49 }
 0xfd2   :  { %v2601_v56 = vsel %vm336_vm1, %v2599_v53, 0.0 }
 0xfd3   :  { %v2608_v55 = vsel %vm2587_vm2, %v2600_v51, 0.0  ;;  %v2602_v60 = vrot.slane %v2601_v56, 4 }
 0xfd4   :  { %v2609_v57 = vrot.slane %v2608_v55, 4 }
 0xfd5   :  { %v2603_v61 = vadd.f32 %v2602_v60, %v2601_v56  ;;  %v3532_v56 = vld [vmem:[%s4805_s22] ss:$0 sm:$0xff] }
 0xfd6   :  { %v2610_v33 = vadd.f32 %v2609_v57, %v2608_v55  ;;  %v3533_v60 = vld [vmem:[%s4806_s23] ss:$0 sm:$0xff] }
 0xfd7   :  { %v2604_v63 = vrot.slane %v2603_v61, 2 }
 0xfd8   :  { %v2611_v62 = vrot.slane %v2610_v33, 2 }
 0xfd9   :  { %v2605_v1 = vadd.f32 %v2604_v63, %v2603_v61 }
 0xfda   :  { %v2612_v0 = vadd.f32 %v2611_v62, %v2610_v33 }
 0xfdb   :  { %v2606_v3 = vrot.slane %v2605_v1, 1 }
 0xfdc   :  { %v2613_v2 = vrot.slane %v2612_v0, 1 }
 0xfdd   :  { %v2607_v5 = vadd.f32 %v2606_v3, %v2605_v1  ;;  %v2943_v1 = vld [vmem:[#allocation13 + $0xf0] sm:$0xff]  ;;  %v2941_v3 = vld [vmem:[#allocation13 + $0xe0] sm:$0xff] }
 0xfde   :  { %v2614_v4 = vadd.f32 %v2613_v2, %v2612_v0  ;;  %v2944_v0 = vld [vmem:[#allocation13 + $0xf8] sm:$0xff]  ;;  %v2942_v2 = vld [vmem:[#allocation13 + $0xe8] sm:$0xff] }
 0xfdf   :  { %v2615_v7 = vmul.f32 0.16666667, %v2607_v5  ;;  %3025 = vmatprep.subr.mxu1 %v2944_v0  ;;  %v2939_v5 = vld [vmem:[#allocation13 + $0xd0] sm:$0xff]  ;;  %v2970_v0 = vld [vmem:[#allocation13 + $0x1c8] sm:$0xff] }
 0xfe0   :  { %v2616_v6 = vmul.f32 0.16666667, %v2614_v4  ;;  %3026 = vmatpush1.msra.mxu1 %v2943_v1  ;;  %v2940_v4 = vld [vmem:[#allocation13 + $0xd8] sm:$0xff]  ;;  %v2969_v1 = vld [vmem:[#allocation13 + $0x1c0] sm:$0xff] }
 0xfe1   :  { %v2617_v9 = vadd.f32 1e-05, %v2615_v7  ;;  %3027 = vmatprep.subr.mxu1 %v2942_v2  ;;  %v2937_v7 = vld [vmem:[#allocation13 + $0xc0] sm:$0xff]  ;;  %v2968_v2 = vld [vmem:[#allocation13 + $0x1b8] sm:$0xff] }
 0xfe2   :  { %v2618_v8 = vadd.f32 1e-05, %v2616_v6  ;;  %3028 = vmatpush1.msra.mxu1 %v2941_v3  ;;  %v2938_v6 = vld [vmem:[#allocation13 + $0xc8] sm:$0xff]  ;;  %v2967_v3 = vld [vmem:[#allocation13 + $0x1b0] sm:$0xff] }
 0xfe3   :  { %3029 = vmatprep.subr.mxu1 %v2940_v4  ;;  %v2966_v4 = vld [vmem:[#allocation13 + $0x1a8] sm:$0xff] }
 0xfe4   :  { %3757 = vrsqrt.f32 %v2618_v8  ;;  %3030 = vmatpush1.msra.mxu1 %v2939_v5  ;;  %v2936_v8 = vld [vmem:[#allocation13 + $0xb8] sm:$0xff]  ;;  %v2965_v5 = vld [vmem:[#allocation13 + $0x1a0] sm:$0xff] }
 0xfe5   :  { %3759 = vrsqrt.f32 %v2617_v9  ;;  %3031 = vmatprep.subr.mxu1 %v2938_v6  ;;  %v2935_v9 = vld [vmem:[#allocation13 + $0xb0] sm:$0xff]  ;;  %v2964_v6 = vld [vmem:[#allocation13 + $0x198] sm:$0xff] }
 0xfe6   :  { %3032 = vmatpush1.msra.mxu1 %v2937_v7  ;;  %v2963_v7 = vld [vmem:[#allocation13 + $0x190] sm:$0xff] }
 0xfe7   :  { %3033 = vmatprep.subr.mxu1 %v2936_v8  ;;  %v2786_v8 = vld [vmem:[%s4807_s26] sm:$0x3] }
 0xfe8   :  { %3034 = vmatpush1.msra.mxu1 %v2935_v9  ;;  %v2962_v9 = vld [vmem:[#allocation13 + $0x188] sm:$0xff] }
 0xfe9   :  { %3035 = vmatprep.subr.mxu1 %v2934_v10  ;;  %v2961_v10 = vld [vmem:[#allocation13 + $0x180] sm:$0xff] }
 0xfea   :  { %3036 = vmatpush1.msra.mxu1 %v2933_v11  ;;  %v2960_v11 = vld [vmem:[#allocation13 + $0x178] sm:$0xff] }
 0xff1   :  { %v3758_v13 = vpop.eup %3757 }
 0xff2   :  { %v3760_v15 = vpop.eup %3759  ;;  %v2622_v16 = vmul.f32 %v3758_v13, %v2598_v49  ;;  %v3008_v13 = vld [vmem:[#allocation13 + $0x2f8] sm:$0xff] }
 0xff3   :  { %v2621_v19 = vmul.f32 %v3760_v15, %v2597_v50  ;;  %3096 = vmatprep.subr.mxu0 %v3008_v13  ;;  %v3007_v15 = vld [vmem:[#allocation13 + $0x2f0] sm:$0xff]  ;;  %v2795_v13 = vrot.slane %v2786_v8, %v4383_v58 }
 0xff4   :  { %v2635_v22 = vmul.f32 %v2631_v12, %v2622_v16  ;;  %v2932_v12 = vld [vmem:[#allocation13 + $0x98] sm:$0xff]  ;;  %v2930_v16 = vld [vmem:[#allocation13 + $0x88] sm:$0xff] }
 0xff5   :  { %v2634_v25 = vmul.f32 %v2627_v14, %v2621_v19  ;;  %v2931_v14 = vld [vmem:[#allocation13 + $0x90] sm:$0xff]  ;;  %v3005_v19 = vld [vmem:[#allocation13 + $0x2e0] sm:$0xff]  ;;  %3037 = vmatprep.subr.mxu1 %v2932_v12  ;;  %v2804_v12 = vrot.slane %v2786_v8, %v4386_v59 }
 0xff6   :  { %v2648_v26 = vadd.f32 %v2644_v18, %v2635_v22  ;;  %v3006_v18 = vld [vmem:[#allocation13 + $0x2e8] sm:$0xff]  ;;  %v3004_v22 = vld [vmem:[#allocation13 + $0x2d8] sm:$0xff]  ;;  %3038 = vmatpush1.msra.mxu1 %v2931_v14  ;;  %v2951_v8 = vld [vmem:[#allocation13 + $0x130] sm:$0xff] }
 0xff7   :  { %v2647_v27 = vadd.f32 %v2640_v21, %v2634_v25  ;;  %v2929_v21 = vld [vmem:[#allocation13 + $0x80] sm:$0xff]  ;;  %v2928_v25 = vld [vmem:[#allocation13 + $0x78] sm:$0xff]  ;;  %3039 = vmatprep.subr.mxu1 %v2930_v16 }
 0xff8   :  { %vm2650_vm10 = vcmp.ge.f32.partialorder %v2648_v26, 0.0  ;;  %v2652_v47 = vmul.f32 0.01, %v2648_v26  ;;  %3040 = vmatpush1.msra.mxu1 %v2929_v21 }
 0xff9   :  { %vm2649_vm6 = vcmp.ge.f32.partialorder %v2647_v27, 0.0  ;;  %v2651_v29 = vmul.f32 0.01, %v2647_v27  ;;  %3041 = vmatprep.subr.mxu1 %v2928_v25 }
 0xffa   :  { %v2654_v30 = vsel %vm2650_vm10, %v2648_v26, %v2652_v47  ;;  %v3003_v26 = vld [vmem:[#allocation13 + $0x2d0] sm:$0xff] }
 0xffb   :  { %3531 = vmatprep.mubr.msk.f32.mxu0 %vm2672_vm4, %v2654_v30  ;;  %v2653_v17 = vsel %vm2649_vm6, %v2647_v27, %v2651_v29  ;;  %v3002_v27 = vld [vmem:[#allocation13 + $0x2c8] sm:$0xff]  ;;  %v2927_v47 = vld [vmem:[#allocation13 + $0x70] sm:$0xff]  ;;  %v3001_v29 = vld [vmem:[#allocation13 + $0x2c0] sm:$0xff] }
 0xffc   :  { %2741 = vmatmul.mubr.f32.vlgmr.msra.gmra.mxu0 %v2653_v17  ;;  %v2926_v30 = vld [vmem:[#allocation13 + $0x68] sm:$0xff]  ;;  %v3000_v17 = vld [vmem:[#allocation13 + $0x2b8] sm:$0xff]  ;;  %3042 = vmatpush1.msra.mxu1 %v2927_v47 }
 0xffd   :  { %3160 = vmatprep.mubr.f32.mxu0 %v4050_v23  ;;  %3097 = vmatpush1.msra.mxu0 %v3007_v15 }
 0xffe   :  { %3098 = vmatprep.subr.mxu0 %v3006_v18  ;;  %3043 = vmatprep.subr.mxu1 %v2926_v30 }
 0xfff   :  { %3099 = vmatpush1.msra.mxu0 %v3005_v19 }
0x1000   :  { %3100 = vmatprep.subr.mxu0 %v3004_v22 }
0x1001   :  { %3101 = vmatpush1.msra.mxu0 %v3003_v26 }
0x1002   :  { %3102 = vmatprep.subr.mxu0 %v3002_v27 }
0x1003   :  { %3103 = vmatpush1.msra.mxu0 %v3001_v29 }
0x1004   :  { %3104 = vmatprep.subr.mxu0 %v3000_v17 }
0x10bc   :  { %v4659_v54 = vpop.f32.mrf.mxu0 }
0x10bd   :  { %v2748_v31 = vsel %vm332_vm0, %v4659_v54, 0.0 }
0x10be   :  { %v2749_v32 = vrot.slane %v2748_v31, 4  ;;  %v2744_v34 = vpop.f32.mrf.mxu0 }
0x10bf   :  { %v2924_v34 = vld [vmem:[#allocation13 + $0x58] sm:$0xff] }
0x10c0   :  { %v2750_v35 = vadd.f32 %v2749_v32, %v2748_v31  ;;  %v2925_v31 = vld [vmem:[#allocation13 + $0x60] sm:$0xff]  ;;  %v2999_v32 = vld [vmem:[#allocation13 + $0x2b0] sm:$0xff] }
0x10c1   :  { %3044 = vmatpush1.msra.mxu1 %v2925_v31  ;;  %3105 = vmatpush1.msra.mxu0 %v2999_v32 }
0x10c2   :  { %v2751_v52 = vrot.slane %v2750_v35, 2  ;;  %3045 = vmatprep.subr.mxu1 %v2924_v34 }
0x10c4   :  { %v2752_v20 = vadd.f32 %v2751_v52, %v2750_v35  ;;  %v2998_v35 = vld [vmem:[#allocation13 + $0x2a8] sm:$0xff]  ;;  %v2923_v52 = vld [vmem:[#allocation13 + $0x50] sm:$0xff] }
0x10c5   :  { %3106 = vmatprep.subr.mxu0 %v2998_v35  ;;  %3046 = vmatpush1.msra.mxu1 %v2923_v52 }
0x10c6   :  { %v2753_v36 = vrot.slane %v2752_v20, 1 }
0x10c8   :  { %v2754_v37 = vadd.f32 %v2753_v36, %v2752_v20  ;;  %v2997_v20 = vld [vmem:[#allocation13 + $0x2a0] sm:$0xff]  ;;  %v2922_v36 = vld [vmem:[#allocation13 + $0x48] sm:$0xff] }
0x10c9   :  { %3107 = vmatpush1.msra.mxu0 %v2997_v20  ;;  %3047 = vmatprep.subr.mxu1 %v2922_v36 }
0x10ca   :  { %v2755_v38 = vmul.f32 0.16666667, %v2754_v37  ;;  %v2996_v37 = vld [vmem:[#allocation13 + $0x298] sm:$0xff] }
0x10cb   :  { %3108 = vmatprep.subr.mxu0 %v2996_v37 }
0x10cc   :  { %v2756_v39 = vsub.f32 %v4659_v54, %v2755_v38  ;;  %v2921_v38 = vld [vmem:[#allocation13 + $0x40] sm:$0xff] }
0x10cd   :  { %3048 = vmatpush1.msra.mxu1 %v2921_v38 }
0x10ce   :  { %v2757_v40 = vmul.f32 %v2756_v39, %v2756_v39 }
0x10d0   :  { %v2758_v41 = vsel %vm332_vm0, %v2757_v40, 0.0  ;;  %v2920_v40 = vld [vmem:[#allocation13 + $0x38] sm:$0xff] }
0x10d1   :  { %v2759_v43 = vrot.slane %v2758_v41, 4  ;;  %3049 = vmatprep.subr.mxu1 %v2920_v40 }
0x10d3   :  { %v2760_v44 = vadd.f32 %v2759_v43, %v2758_v41  ;;  %v2994_v41 = vld [vmem:[#allocation13 + $0x288] sm:$0xff]  ;;  %v2919_v43 = vld [vmem:[#allocation13 + $0x30] sm:$0xff] }
0x10d4   :  { %3050 = vmatpush1.msra.mxu1 %v2919_v43 }
0x10d5   :  { %v2761_v45 = vrot.slane %v2760_v44, 2 }
0x10d7   :  { %v2762_v46 = vadd.f32 %v2761_v45, %v2760_v44  ;;  %v2993_v44 = vld [vmem:[#allocation13 + $0x280] sm:$0xff]  ;;  %v2918_v45 = vld [vmem:[#allocation13 + $0x28] sm:$0xff] }
0x10d8   :  { %3051 = vmatprep.subr.mxu1 %v2918_v45 }
0x10d9   :  { %v2763_v49 = vrot.slane %v2762_v46, 1 }
0x10db   :  { %v2764_v50 = vadd.f32 %v2763_v49, %v2762_v46  ;;  %v2992_v46 = vld [vmem:[#allocation13 + $0x278] sm:$0xff]  ;;  %v2917_v49 = vld [vmem:[#allocation13 + $0x20] sm:$0xff] }
0x10dc   :  { %3052 = vmatpush1.msra.mxu1 %v2917_v49  ;;  %v2990_v49 = vld [vmem:[#allocation13 + $0x268] sm:$0xff] }
0x10dd   :  { %v2765_v51 = vmul.f32 0.16666667, %v2764_v50  ;;  %v2991_v50 = vld [vmem:[#allocation13 + $0x270] sm:$0xff] }
0x10df   :  { %v2766_v53 = vadd.f32 1e-05, %v2765_v51  ;;  %v2916_v51 = vld [vmem:[#allocation13 + $0x18] sm:$0xff] }
0x10e0   :  { %3053 = vmatprep.subr.mxu1 %v2916_v51  ;;  %v2989_v51 = vld [vmem:[#allocation13 + $0x260] sm:$0xff] }
0x10e1   :  { %3761 = vrsqrt.f32 %v2766_v53  ;;  %v2915_v53 = vld [vmem:[#allocation13 + $0x10] sm:$0xff] }
0x10e2   :  { %3054 = vmatpush1.msra.mxu1 %v2915_v53 }
0x10ee   :  { %v3762_v55 = vpop.eup %3761 }
0x10ef   :  { %v2768_v57 = vmul.f32 %v3762_v55, %v2756_v39  ;;  %v2995_v39 = vld [vmem:[#allocation13 + $0x290] sm:$0xff]  ;;  %v2914_v55 = vld [vmem:[#allocation13 + $0x8] sm:$0xff] }
0x10f0   :  { %3109 = vmatpush1.msra.mxu0 %v2995_v39  ;;  %3055 = vmatprep.subr.mxu1 %v2914_v55  ;;  %v2957_v55 = vld [vmem:[#allocation13 + $0x160] sm:$0xff] }
0x10f1   :  { %v2775_v33 = vmul.f32 %v3532_v56, %v2768_v57  ;;  %3110 = vmatprep.subr.mxu0 %v2994_v41  ;;  %v2913_v56 = vld [vmem:[#allocation13] sm:$0xff]  ;;  %v2976_v57 = vld [vmem:[#allocation13 + $0x1f8] sm:$0xff]  ;;  %v3534_v41 = vld [vmem:[%s4808_s28] ss:$0 sm:$0xff] }
0x10f2   :  { %3111 = vmatpush1.msra.mxu0 %v2993_v44  ;;  %3056 = vmatpush1.msra.mxu1 %v2913_v56  ;;  %v3535_v44 = vld [vmem:[%s4809_s19] ss:$0 sm:$0xff]  ;;  %v2988_v56 = vld [vmem:[#allocation13 + $0x258] sm:$0xff] }
0x10f3   :  { %v2782_v61 = vadd.f32 %v3533_v60, %v2775_v33  ;;  %3112 = vmatprep.subr.mxu0 %v2992_v46  ;;  %v2975_v60 = vld [vmem:[#allocation13 + $0x1f0] sm:$0xff]  ;;  %v2974_v33 = vld [vmem:[#allocation13 + $0x1e8] sm:$0xff]  ;;  %3057 = vmatprep.subr.mxu1 %v2976_v57  ;;  %v2956_v57 = vld [vmem:[#allocation13 + $0x158] sm:$0xff] }
0x10f4   :  { %3113 = vmatpush1.msra.mxu0 %v2991_v50  ;;  %3058 = vmatpush2.msra.mxu1 %v2975_v60  ;;  %v2959_v46 = vld [vmem:[#allocation13 + $0x170] sm:$0xff]  ;;  %v2958_v50 = vld [vmem:[#allocation13 + $0x168] sm:$0xff] }
0x10f5   :  { %vm2783_vm7 = vcmp.ge.f32.partialorder %v2782_v61, 0.0  ;;  %v2784_v62 = vmul.f32 0.01, %v2782_v61  ;;  %3059 = vmatprep.subr.mxu1 %v2974_v33  ;;  %3114 = vmatprep.subr.mxu0 %v2990_v49  ;;  %v2987_v60 = vld [vmem:[#allocation13 + $0x250] sm:$0xff]  ;;  %v3289_v49 = vld [vmem:[#allocation19 + $0x50] sm:$0xff] }
0x10f6   :  { %3115 = vmatpush1.msra.mxu0 %v2989_v51  ;;  %v3287_v51 = vld [vmem:[#allocation19 + $0x40] sm:$0xff] }
0x10f7   :  { %v2785_v63 = vsel %vm2783_vm7, %v2782_v61, %v2784_v62  ;;  %v2973_v61 = vld [vmem:[#allocation13 + $0x1e0] sm:$0xff]  ;;  %v2972_v62 = vld [vmem:[#allocation13 + $0x1d8] sm:$0xff]  ;;  %3116 = vmatprep.subr.mxu0 %v2988_v56 }
0x10f8   :  { %2798 = vperm.xlu0 %3732, %v2785_v63   ;;  %2789 = vperm.xlu1 %3731, %v2785_v63   ;;  %v2971_v63 = vld [vmem:[#allocation13 + $0x1d0] sm:$0xff]  ;;  %v3284_v56 = vld [vmem:[#allocation19 + $0x28] sm:$0xff] }
0x10f9   :  { %3060 = vmatpush2.msra.mxu1 %v2973_v61  ;;  %3117 = vmatpush1.msra.mxu0 %v2987_v60  ;;  %v2955_v61 = vld [vmem:[#allocation13 + $0x150] sm:$0xff] }
0x10fa   :  { %3061 = vmatprep.subr.mxu1 %v2972_v62  ;;  %v2986_v62 = vld [vmem:[#allocation13 + $0x248] sm:$0xff]  ;;  %v3282_v60 = vld [vmem:[#allocation19 + $0x18] sm:$0xff] }
0x10fb   :  { %3062 = vmatpush2.msra.mxu1 %v2971_v63  ;;  %v2954_v63 = vld [vmem:[#allocation13 + $0x148] sm:$0xff]  ;;  %3118 = vmatprep.subr.mxu0 %v2986_v62  ;;  %v3279_v62 = vld [vmem:[#allocation19] sm:$0xff] }
0x10fc   :  { %3063 = vmatprep.subr.mxu1 %v2970_v0  ;;  %v2985_v0 = vld [vmem:[#allocation13 + $0x240] sm:$0xff] }
0x10fd   :  { %3064 = vmatpush2.msra.mxu1 %v2969_v1  ;;  %v2953_v1 = vld [vmem:[#allocation13 + $0x140] sm:$0xff]  ;;  %3119 = vmatpush1.msra.mxu0 %v2985_v0  ;;  %v3299_v0 = vld [vmem:[#allocation19 + $0xa0] sm:$0xff] }
0x10fe   :  { %3065 = vmatprep.subr.mxu1 %v2968_v2  ;;  %v2984_v2 = vld [vmem:[#allocation13 + $0x238] sm:$0xff] }
0x10ff   :  { %3066 = vmatpush2.msra.mxu1 %v2967_v3  ;;  %3120 = vmatprep.subr.mxu0 %v2984_v2  ;;  %v3297_v2 = vld [vmem:[#allocation19 + $0x90] sm:$0xff] }
0x1100   :  { %3067 = vmatprep.subr.mxu1 %v2966_v4  ;;  %v2952_v4 = vld [vmem:[#allocation13 + $0x138] sm:$0xff] }
0x1101   :  { %3068 = vmatpush2.msra.mxu1 %v2965_v5  ;;  %v2983_v5 = vld [vmem:[#allocation13 + $0x230] sm:$0xff] }
0x1102   :  { %3069 = vmatprep.subr.mxu1 %v2964_v6  ;;  %3121 = vmatpush1.msra.mxu0 %v2983_v5  ;;  %v3200_v5 = vld [vmem:[#allocation2] sm:$0x3f] }
0x1103   :  { %3070 = vmatpush2.msra.mxu1 %v2963_v7 }
0x1104   :  { %3071 = vmatprep.subr.mxu1 %v2962_v9  ;;  %v2982_v9 = vld [vmem:[#allocation13 + $0x228] sm:$0xff] }
0x1105   :  { %3072 = vmatpush2.msra.mxu1 %v2961_v10  ;;  %v2950_v10 = vld [vmem:[#allocation13 + $0x128] sm:$0xff]  ;;  %3122 = vmatprep.subr.mxu0 %v2982_v9 }
0x1106   :  { %3073 = vmatprep.subr.mxu1 %v2960_v11  ;;  %v2981_v11 = vld [vmem:[#allocation13 + $0x220] sm:$0xff] }
0x1107   :  { %3074 = vmatpush2.msra.mxu1 %v2959_v46  ;;  %3123 = vmatpush1.msra.mxu0 %v2981_v11 }
0x1108   :  { %3075 = vmatprep.subr.mxu1 %v2958_v50  ;;  %v3288_v50 = vld [vmem:[#allocation19 + $0x48] sm:$0xff] }
0x1109   :  { %3076 = vmatpush2.msra.mxu1 %v2957_v55  ;;  %v3285_v55 = vld [vmem:[#allocation19 + $0x30] sm:$0xff] }
0x110a   :  { %3077 = vmatprep.subr.mxu1 %v2956_v57  ;;  %v3283_v57 = vld [vmem:[#allocation19 + $0x20] sm:$0xff] }
0x110b   :  { %3078 = vmatpush2.msra.mxu1 %v2955_v61  ;;  %v3280_v61 = vld [vmem:[#allocation19 + $0x8] sm:$0xff] }
0x110c   :  { %3079 = vmatprep.subr.mxu1 %v2954_v63  ;;  %v3300_v63 = vld [vmem:[#allocation19 + $0xa8] sm:$0x3] }
0x110d   :  { %3080 = vmatpush2.msra.mxu1 %v2953_v1  ;;  %v3298_v1 = vld [vmem:[#allocation19 + $0x98] sm:$0xff] }
0x110e   :  { %3081 = vmatprep.subr.mxu1 %v2952_v4  ;;  %v3295_v4 = vld [vmem:[#allocation19 + $0x80] sm:$0xff] }
0x110f   :  { %3082 = vmatpush2.msra.mxu1 %v2951_v8 }
0x1110   :  { %3083 = vmatprep.subr.mxu1 %v2950_v10 }
0x1173   :  { %v2799_v14 = vpop.permute.xlu0 %2798  ;;  %v2790_v15 = vpop.permute.xlu1 %2789 }
0x1174   :  { %v2805_v16 = vmul.f32 %v2804_v12, %v2799_v14  ;;  %v2796_v18 = vmul.f32 %v2795_v13, %v2790_v15  ;;  %v2949_v12 = vld [vmem:[#allocation13 + $0x120] sm:$0xff] }
0x1175   :  { %3084 = vmatpush2.msra.mxu1 %v2949_v12 }
0x1176   :  { %v2806_v19 = vadd.f32 %v2805_v16, %v2796_v18  ;;  %v2980_v16 = vld [vmem:[#allocation13 + $0x218] sm:$0xff] }
0x1177   :  { %v2948_v18 = vld [vmem:[#allocation13 + $0x118] sm:$0xff]  ;;  %3124 = vmatprep.subr.mxu0 %v2980_v16 }
0x1178   :  { %v2809_v21 = vsel %vm427_vm3, %v2806_v19, 0.0  ;;  %3085 = vmatprep.subr.mxu1 %v2948_v18 }
0x1179   :  { %v2810_v22 = vrot.slane %v2809_v21, 4 }
0x117b   :  { %v2811_v25 = vadd.f32 %v2810_v22, %v2809_v21 }
0x117d   :  { %v2812_v26 = vrot.slane %v2811_v25, 2 }
0x117f   :  { %v2813_v27 = vadd.f32 %v2812_v26, %v2811_v25 }
0x1181   :  { %v2814_v47 = vrot.slane %v2813_v27, 1 }
0x1183   :  { %v2815_v29 = vadd.f32 %v2814_v47, %v2813_v27  ;;  %v2947_v27 = vld [vmem:[#allocation13 + $0x110] sm:$0xff]  ;;  %v2978_v47 = vld [vmem:[#allocation13 + $0x208] sm:$0xff] }
0x1184   :  { %3086 = vmatpush2.msra.mxu1 %v2947_v27 }
0x1185   :  { %v2816_v30 = vmul.f32 0.16666667, %v2815_v29  ;;  %v2946_v29 = vld [vmem:[#allocation13 + $0x108] sm:$0xff] }
0x1186   :  { %3087 = vmatprep.subr.mxu1 %v2946_v29 }
0x1187   :  { %v2817_v17 = vsub.f32 %v2806_v19, %v2816_v30  ;;  %v2979_v19 = vld [vmem:[#allocation13 + $0x210] sm:$0xff] }
0x1188   :  { %3125 = vmatpush1.msra.mxu0 %v2979_v19 }
0x1189   :  { %v2818_v31 = vmul.f32 %v2817_v17, %v2817_v17  ;;  %3126 = vmatprep.subr.mxu0 %v2978_v47 }
0x118b   :  { %v2819_v32 = vsel %vm427_vm3, %v2818_v31, 0.0  ;;  %v2945_v31 = vld [vmem:[#allocation13 + $0x100] sm:$0xff] }
0x118c   :  { %v2820_v34 = vrot.slane %v2819_v32, 4  ;;  %3088 = vmatpush2.msra.mxu1 %v2945_v31 }
0x118e   :  { %v2821_v35 = vadd.f32 %v2820_v34, %v2819_v32 }
0x1190   :  { %v2822_v52 = vrot.slane %v2821_v35, 2 }
0x1192   :  { %v2823_v20 = vadd.f32 %v2822_v52, %v2821_v35 }
0x1194   :  { %v2824_v36 = vrot.slane %v2823_v20, 1 }
0x1196   :  { %v2825_v37 = vadd.f32 %v2824_v36, %v2823_v20 }
0x1198   :  { %v2826_v38 = vmul.f32 0.16666667, %v2825_v37  ;;  %v3294_v37 = vld [vmem:[#allocation19 + $0x78] sm:$0xff] }
0x119a   :  { %v2827_v39 = vadd.f32 1e-05, %v2826_v38  ;;  %v3293_v38 = vld [vmem:[#allocation19 + $0x70] sm:$0xff] }
0x119c   :  { %3763 = vrsqrt.f32 %v2827_v39 }
0x11a9   :  { %v3764_v40 = vpop.eup %3763 }
0x11aa   :  { %v2829_v43 = vmul.f32 %v3764_v40, %v2817_v17  ;;  %v2977_v17 = vld [vmem:[#allocation13 + $0x200] sm:$0xff] }
0x11ab   :  { %3127 = vmatpush1.msra.mxu0 %v2977_v17 }
0x11ac   :  { %v2836_v45 = vmul.f32 %v3534_v41, %v2829_v43  ;;  %3308 = vmatprep.subr.mxu0 %v4050_v23  ;;  %v3292_v41 = vld [vmem:[#allocation19 + $0x68] sm:$0xff] }
0x11ae   :  { %v2843_v53 = vadd.f32 %v3535_v44, %v2836_v45  ;;  %v3290_v45 = vld [vmem:[#allocation19 + $0x58] sm:$0xff] }
0x11b0   :  { %vm2844_vm3 = vcmp.ge.f32.partialorder %v2843_v53, 0.0  ;;  %v2845_v33 = vmul.f32 0.01, %v2843_v53 }
0x11b2   :  { %v2846_v3 = vsel %vm2844_vm3, %v2843_v53, %v2845_v33  ;;  %v3286_v53 = vld [vmem:[#allocation19 + $0x38] sm:$0xff]  ;;  %v3281_v33 = vld [vmem:[#allocation19 + $0x10] sm:$0xff] }
0x11b3   :  { %v2855_v6 = vrot.slane %v2846_v3, %v4396_v42  ;;  %2847 = vst.msk [vmem:[#allocation3] sm:$0x1] %vm4399_vm5, %v2846_v3  ;;  %v2883_v7 = vcombine.high %v2846_v3, %v2846_v3  ;;  %v3296_v3 = vld [vmem:[#allocation19 + $0x88] sm:$0xff] }
0x11b5   :  { %v2856_v13 = vcombine.high %v2855_v6, %v2855_v6  ;;  %v2863_v14 = vrot.slane %v2855_v6, %v4396_v42  ;;  %v2890_v15 = vrot.slane %v2883_v7, %v4396_v42  ;;  %v3204_v6 = vsel %vm336_vm1, %v3200_v5, 0.0 }
0x11b6   :  { %v3205_v7 = vrot.slane %v3204_v6, 4 }
0x11b7   :  { %v2870_v21 = vrot.slane %v2856_v13, %v4396_v42  ;;  %v2875_v22 = vcombine.high %v2863_v14, %v2863_v14  ;;  %v2900_v25 = vcombine.high %v2890_v15, %v2890_v15  ;;  %v2897_v26 = vrot.slane %v2890_v15, %v4396_v42 }
0x11b8   :  { %v3206_v8 = vadd.f32 %v3205_v7, %v3204_v6 }
0x11b9   :  { %2871 = vrot.lane.b32.xlu1 %v2870_v21, %s4049_s13  ;;  %2877 = vst.msk [vmem:[#allocation3 + $0x1] sm:$0x1] %vm4399_vm5, %v2875_v22  ;;  %v2907_v30 = vrot.slane %v2900_v25, %v4396_v42  ;;  %2899 = vst.msk [vmem:[#allocation3 + $0x2] sm:$0x1] %vm4399_vm5, %v2897_v26  ;;  %v2878_v32 = vcombine.high %v2870_v21, %v2870_v21  ;;  %vm3171_vm5 = vcmask 78912  }
0x11ba   :  { %v3207_v9 = vrot.slane %v3206_v8, 2 }
0x11bb   :  { %2908 = vrot.lane.b32.xlu0 %v2907_v30, %s4049_s13 }
0x11bc   :  { %v3208_v10 = vadd.f32 %v3207_v9, %v3206_v8 }
0x11bd   :  { %2879 = vrot.lane.b32.xlu1 %v2878_v32, %s4049_s13  ;;  %s4068_s13 = smov 10  }
0x11be   :  { %v3209_v11 = vrot.slane %v3208_v10, 1 }
0x11c0   :  { %v3210_v12 = vadd.f32 %v3209_v11, %v3208_v10 }
0x11c1   :  { %3168 = vrot.lane.b32.xlu1 %v4659_v54, %s4039_s10  ;;  %s4067_s10 = smov 106  }
0x11c2   :  { %v3219_v13 = vmul.f32 0.16666667, %v3210_v12 }
0x11c4   :  { %v3221_v16 = vsub.f32 %v3200_v5, %v3219_v13 }
0x122b   :  { %v2872_v42 = vpop.permute.xlu1 %2871 }
0x122c   :  { %2874 = vst.msk [vmem:[#allocation3] sm:$0x1] %vm4422_vm8, %v2872_v42 }
0x122d   :  { %v2909_v48 = vpop.permute.xlu0 %2908 }
0x122e   :  { %2911 = vst.msk [vmem:[#allocation3 + $0x2] sm:$0x1] %vm4422_vm8, %v2909_v48 }
0x122f   :  { %v2880_v34 = vpop.permute.xlu1 %2879 }
0x1230   :  { %2882 = vst.msk [vmem:[#allocation3 + $0x1] sm:$0x1] %vm4422_vm8, %v2880_v34  ;;  %vm3177_vm8 = vcmask 335952  }
0x1233   :  { %v3169_v35 = vpop.permute.xlu1 %3168 }
0x1234   :  { %3172 = vst.msk [vmem:[#allocation2 + $0x8] sm:$0x3f] %vm3171_vm5, %v3169_v35 }
0x1237   :  { %v2912_v52 = vld [vmem:[#allocation3] sm:$0x7] }
0x1238   :  { %v3017_v20 = vrot.slane %v2912_v52, %v4386_v59  ;;  %v3021_v54 = vrot.slane %v2912_v52, %v4433_v28  ;;  %v3013_v36 = vrot.slane %v2912_v52, %v4383_v58  ;;  %v3291_v28 = vld [vmem:[#allocation19 + $0x60] sm:$0xff] }
0x123a   :  { %3089 = vmatprep.mubr.f32.mxu1 %v3017_v20  ;;  %3161 = vmatmul.mubr.f32.vlgmr.msra.gmra.mxu0 %v3021_v54 }
0x123b   :  { %3090 = vmatmul.mubr.f32.vlgmr.msra.gmra.mxu1 %v3013_v36  ;;  %3309 = vmatpush1.msra.mxu0 %v3294_v37 }
0x123c   :  { %3310 = vmatprep.subr.mxu0 %v4050_v23 }
0x123d   :  { %3311 = vmatpush1.msra.mxu0 %v3293_v38 }
0x123e   :  { %3312 = vmatprep.subr.mxu0 %v4050_v23 }
0x123f   :  { %3313 = vmatpush1.msra.mxu0 %v3292_v41 }
0x1240   :  { %3314 = vmatprep.subr.mxu0 %v4050_v23 }
0x1241   :  { %3315 = vmatpush1.msra.mxu0 %v3291_v28 }
0x1242   :  { %3316 = vmatprep.subr.mxu0 %v4050_v23 }
0x1243   :  { %3317 = vmatpush1.msra.mxu0 %v3290_v45 }
0x1244   :  { %3318 = vmatprep.subr.mxu0 %v4050_v23 }
0x1245   :  { %3319 = vmatpush1.msra.mxu0 %v3289_v49 }
0x1246   :  { %3320 = vmatprep.subr.mxu0 %v4050_v23 }
0x1247   :  { %3321 = vmatpush1.msra.mxu0 %v3288_v50 }
0x1248   :  { %3322 = vmatprep.subr.mxu0 %v4050_v23 }
0x1249   :  { %3323 = vmatpush1.msra.mxu0 %v3287_v51  ;;  %v3202_v51 = vld [vmem:[%s4810_s2] sm:$0x3] }
0x124a   :  { %3324 = vmatprep.subr.mxu0 %v4050_v23 }
0x124b   :  { %3325 = vmatpush1.msra.mxu0 %v3286_v53 }
0x124c   :  { %3326 = vmatprep.subr.mxu0 %v4050_v23 }
0x124d   :  { %3327 = vmatpush1.msra.mxu0 %v3285_v55  ;;  %v3251_v55 = vrot.slane %v3202_v51, %v4383_v58 }
0x124e   :  { %3328 = vmatprep.subr.mxu0 %v4050_v23 }
0x124f   :  { %3329 = vmatpush1.msra.mxu0 %v3284_v56  ;;  %v3203_v56 = vld [vmem:[%s4811_s7] sm:$0x3] }
0x1250   :  { %3330 = vmatprep.subr.mxu0 %v4050_v23 }
0x1251   :  { %3331 = vmatpush1.msra.mxu0 %v3283_v57 }
0x1252   :  { %3332 = vmatprep.subr.mxu0 %v4050_v23 }
0x1253   :  { %3333 = vmatpush1.msra.mxu0 %v3282_v60  ;;  %v3264_v60 = vrot.slane %v3203_v56, %v4383_v58 }
0x1254   :  { %3334 = vmatprep.subr.mxu0 %v4050_v23 }
0x1255   :  { %3335 = vmatpush1.msra.mxu0 %v3281_v33  ;;  %v3255_v33 = vrot.slane %v3202_v51, %v4386_v59 }
0x1256   :  { %3336 = vmatprep.subr.mxu0 %v4050_v23 }
0x1257   :  { %3337 = vmatpush1.msra.mxu0 %v3280_v61 }
0x1258   :  { %3338 = vmatprep.subr.mxu0 %v4050_v23 }
0x1259   :  { %3339 = vmatpush1.msra.mxu0 %v3279_v62 }
0x125a   :  { %3360 = vmatprep.subr.mxu0 %v4050_v23 }
0x125b   :  { %3536 = vmatpush2.msk.msra.mxu0 %vm872_vm9, %v3300_v63  ;;  %vm3211_vm9 = vcmask 340992   ;;  %v3268_v63 = vrot.slane %v3203_v56, %v4386_v59 }
0x125c   :  { %3362 = vmatprep.subr.mxu0 %v4050_v23 }
0x125d   :  { %3363 = vmatpush2.msra.mxu0 %v3299_v0 }
0x125e   :  { %3364 = vmatprep.subr.mxu0 %v4050_v23 }
0x125f   :  { %3365 = vmatpush2.msra.mxu0 %v3298_v1 }
0x1260   :  { %3366 = vmatprep.subr.mxu0 %v4050_v23 }
0x1261   :  { %3367 = vmatpush2.msra.mxu0 %v3297_v2 }
0x1262   :  { %3368 = vmatprep.subr.mxu0 %v4050_v23 }
0x1263   :  { %3369 = vmatpush2.msra.mxu0 %v3296_v3 }
0x1264   :  { %3370 = vmatprep.subr.mxu0 %v4050_v23  ;;  %v3223_v23 = vmul.f32 %v3221_v16, %v3221_v16 }
0x1265   :  { %3371 = vmatpush2.msra.mxu0 %v3295_v4 }
0x1266   :  { %v3225_v25 = vsel %vm336_vm1, %v3223_v23, 0.0 }
0x1267   :  { %v3226_v26 = vrot.slane %v3225_v25, 4 }
0x1269   :  { %v3227_v47 = vadd.f32 %v3226_v26, %v3225_v25 }
0x126b   :  { %v3228_v31 = vrot.slane %v3227_v47, 2 }
0x126d   :  { %v3229_v48 = vadd.f32 %v3228_v31, %v3227_v47  ;;  %v3539_v31 = vld [vmem:[%s4315_s20] ss:$0 sm:$0xff]  ;;  %s4071_s20 = smov [#allocation20]  }
0x126e   :  { %s3440_s12 = sshll.u32 %s4071_s20, 4  ;;  %s3441_s12 = int_to_ptr.vmem [resolvable:$true] %s3440_s12 }
0x126f   :  { %v3230_v52 = vrot.slane %v3229_v48, 1  ;;  %s3955_s5 = scalar_lea.vmem %s3441_s12, 32  ;;  %p3956_p4 = scmp.lt.s32.totalorder %s3441_s12, %s3441_s12 }
0x1271   :  { %v3231_v36 = vadd.f32 %v3230_v52, %v3229_v48 }
0x12fa   :  { %v3162_v39 = vpop.f32.mrf.mxu0 }
0x12fb   :  { %v3091_v40 = vpop.f32.mrf.mxu1 }
0x12fc   :  { %v3163_v24 = vadd.f32 %v3162_v39, %v3091_v40  ;;  %v3164_v43 = vpop.f32.mrf.mxu0  ;;  %v3239_v39 = vmul.f32 0.16666667, %v3231_v36 }
0x12fd   :  { %v3093_v44 = vpop.f32.mrf.mxu1 }
0x12fe   :  { %3179 = vrot.lane.b32.xlu1 %v3163_v24, %s4067_s10  ;;  %3174 = vrot.lane.b32.xlu0 %v3163_v24, %s4068_s13  ;;  %v3165_v46 = vadd.f32 %v3164_v43, %v3093_v44  ;;  %v3241_v41 = vadd.f32 1e-05, %v3239_v39 }
0x1300   :  { %3765 = vrsqrt.f32 %v3241_v41  ;;  %v3430_v41 = vld [vmem:[#allocation4] sm:$0x1] }
0x1302   :  { %3187 = vrot.lane.b32.xlu1 %v3163_v24, %s4069_s29  ;;  %3183 = vrot.lane.b32.xlu0 %v3163_v24, %s4070_s1 }
0x1306   :  { %3196 = vrot.lane.b32.xlu1 %v3165_v46, %s4067_s10  ;;  %3192 = vrot.lane.b32.xlu0 %v3165_v46, %s4068_s13 }
0x130d   :  { %v3766_v50 = vpop.eup %3765 }
0x130e   :  { %v3245_v53 = vmul.f32 %v3766_v50, %v3221_v16 }
0x1310   :  { %v3258_v57 = vmul.f32 %v3251_v55, %v3245_v53 }
0x1312   :  { %v3271_v0 = vadd.f32 %v3264_v60, %v3258_v57 }
0x1314   :  { %v3275_v3 = vmul.f32 0.01, %v3271_v0  ;;  %vm3273_vm13 = vcmp.ge.f32.partialorder %v3271_v0, 0.0 }
0x1316   :  { %v3277_v6 = vsel %vm3273_vm13, %v3271_v0, %v3275_v3 }
0x1370   :  { %v3180_v14 = vpop.permute.xlu1 %3179  ;;  %v3175_v15 = vpop.permute.xlu0 %3174 }
0x1371   :  { %3182 = vst.msk [vmem:[#allocation2 + $0x9] sm:$0x1] %vm3177_vm8, %v3180_v14  ;;  %3178 = vst.msk [vmem:[#allocation2 + $0x8] sm:$0x1] %vm3177_vm8, %v3175_v15 }
0x1374   :  { %v3188_v18 = vpop.permute.xlu1 %3187  ;;  %v3184_v19 = vpop.permute.xlu0 %3183 }
0x1375   :  { %3190 = vst.msk [vmem:[#allocation2 + $0xb] sm:$0x1] %vm3177_vm8, %v3188_v18  ;;  %3186 = vst.msk [vmem:[#allocation2 + $0xa] sm:$0x1] %vm3177_vm8, %v3184_v19 }
0x1378   :  { %v3197_v21 = vpop.permute.xlu1 %3196  ;;  %v3193_v22 = vpop.permute.xlu0 %3192 }
0x1379   :  { %3199 = vst.msk [vmem:[#allocation2 + $0xd] sm:$0x1] %vm3177_vm8, %v3197_v21  ;;  %3195 = vst.msk [vmem:[#allocation2 + $0xc] sm:$0x1] %vm3177_vm8, %v3193_v22 }
0x1380   :  { %v3201_v27 = vld [vmem:[#allocation2 + $0x8] sm:$0x3f] }
0x1381   :  { %v3212_v29 = vsel %vm3211_vm9, %v3201_v27, 0.0 }
0x1382   :  { %v3213_v30 = vrot.slane %v3212_v29, 4 }
0x1384   :  { %v3214_v17 = vadd.f32 %v3213_v30, %v3212_v29  ;;  %v3538_v30 = vld [vmem:[%s4812_s11] ss:$0 sm:$0xff] }
0x1386   :  { %v3215_v32 = vrot.slane %v3214_v17, 2 }
0x1388   :  { %v3216_v42 = vadd.f32 %v3215_v32, %v3214_v17 }
0x138a   :  { %v3217_v34 = vrot.slane %v3216_v42, 1 }
0x138c   :  { %v3218_v35 = vadd.f32 %v3217_v34, %v3216_v42  ;;  %v3418_v34 = vld [vmem:[%s4320_s24] sm:$0x3f]  ;;  %s3951_s24 = scalar_lea.vmem %s3441_s12, 16 }
0x138d   :  { %p3952_p3 = scmp.ne.s32.totalorder %s3441_s12, %s3951_s24  ;;  %p3957_p5 = scmp.lt.s32.totalorder %s3955_s5, %s3951_s24 }
0x138e   :  { %v3220_v20 = vmul.f32 0.16666667, %v3218_v35 }
0x138f   :  { %p3958_p6 = por %p3957_p5, %p3956_p4 }
0x1390   :  { %v3222_v54 = vsub.f32 %v3201_v27, %v3220_v20 }
0x1391   :  { %p3959_p7 = pnand %p3958_p6, %p3952_p3 }
0x1392   :  { %v3224_v37 = vmul.f32 %v3222_v54, %v3222_v54 }
0x1394   :  { %v3232_v38 = vsel %vm3211_vm9, %v3224_v37, 0.0 }
0x1395   :  { %v3233_v40 = vrot.slane %v3232_v38, 4 }
0x1397   :  { %v3234_v24 = vadd.f32 %v3233_v40, %v3232_v38 }
0x1399   :  { %v3235_v28 = vrot.slane %v3234_v24, 2 }
0x139b   :  { %v3236_v43 = vadd.f32 %v3235_v28, %v3234_v24 }
0x139d   :  { %v3237_v44 = vrot.slane %v3236_v43, 1 }
0x139f   :  { %v3238_v45 = vadd.f32 %v3237_v44, %v3236_v43 }
0x13a1   :  { %v3240_v46 = vmul.f32 0.16666667, %v3238_v45 }
0x13a3   :  { %v3242_v49 = vadd.f32 1e-05, %v3240_v46 }
0x13a5   :  { %3767 = vrsqrt.f32 %v3242_v49 }
0x13b2   :  { %v3768_v61 = vpop.eup %3767 }
0x13b3   :  { %v3246_v62 = vmul.f32 %v3768_v61, %v3222_v54 }
0x13b5   :  { %v3259_v1 = vmul.f32 %v3255_v33, %v3246_v62 }
0x13b7   :  { %v3272_v2 = vadd.f32 %v3268_v63, %v3259_v1 }
0x13b9   :  { %vm3274_vm11 = vcmp.ge.f32.partialorder %v3272_v2, 0.0  ;;  %v3276_v4 = vmul.f32 0.01, %v3272_v2 }
0x13bb   :  { %v3278_v5 = vsel %vm3274_vm11, %v3272_v2, %v3276_v4 }
0x13bc   :  { %3537 = vmatprep.mubr.msk.f32.mxu0 %vm3301_vm12, %v3278_v5 }
0x13bd   :  { %3373 = vmatmul.mubr.f32.vlgmr.msra.gmra.mxu0 %v3277_v6 }
0x147d   :  { %v3374_v7 = vpop.f32.mrf.mxu0 }
0x147e   :  { %v3380_v58 = vsel %vm332_vm0, %v3374_v7, 0.0 }
0x147f   :  { %v3381_v8 = vrot.slane %v3380_v58, 4  ;;  %v3376_v9 = vpop.f32.mrf.mxu0 }
0x1481   :  { %v3382_v10 = vadd.f32 %v3381_v8, %v3380_v58 }
0x1483   :  { %v3383_v11 = vrot.slane %v3382_v10, 2 }
0x1485   :  { %v3384_v59 = vadd.f32 %v3383_v11, %v3382_v10 }
0x1487   :  { %v3385_v12 = vrot.slane %v3384_v59, 1 }
0x1489   :  { %v3386_v13 = vadd.f32 %v3385_v12, %v3384_v59 }
0x148b   :  { %v3387_v14 = vmul.f32 0.16666667, %v3386_v13 }
0x148d   :  { %v3388_v15 = vsub.f32 %v3374_v7, %v3387_v14 }
0x148f   :  { %v3389_v16 = vmul.f32 %v3388_v15, %v3388_v15 }
0x1491   :  { %v3390_v18 = vsel %vm332_vm0, %v3389_v16, 0.0 }
0x1492   :  { %v3391_v19 = vrot.slane %v3390_v18, 4 }
0x1494   :  { %v3392_v23 = vadd.f32 %v3391_v19, %v3390_v18 }
0x1496   :  { %v3393_v21 = vrot.slane %v3392_v23, 2 }
0x1498   :  { %v3394_v22 = vadd.f32 %v3393_v21, %v3392_v23 }
0x149a   :  { %v3395_v25 = vrot.slane %v3394_v22, 1 }
0x149c   :  { %v3396_v26 = vadd.f32 %v3395_v25, %v3394_v22 }
0x149e   :  { %v3397_v27 = vmul.f32 0.16666667, %v3396_v26 }
0x14a0   :  { %v3398_v47 = vadd.f32 1e-05, %v3397_v27 }
0x14a2   :  { %3769 = vrsqrt.f32 %v3398_v47 }
0x14af   :  { %v3770_v29 = vpop.eup %3769 }
0x14b0   :  { %v3400_v17 = vmul.f32 %v3770_v29, %v3388_v15 }
0x14b2   :  { %v3407_v32 = vmul.f32 %v3538_v30, %v3400_v17 }
0x14b4   :  { %v3414_v42 = vadd.f32 %v3539_v31, %v3407_v32 }
0x14b6   :  { %vm3415_vm14 = vcmp.ge.f32.partialorder %v3414_v42, 0.0  ;;  %v3416_v48 = vmul.f32 0.01, %v3414_v42 }
0x14b8   :  { %v3417_v35 = vsel %vm3415_vm14, %v3414_v42, %v3416_v48 }
0x14b9   :  { %v3419_v52 = vmul.f32 %v3418_v34, %v3417_v35 }
0x14bb   :  { %v3420_v20 = vsel %vm332_vm0, %v3419_v52, 0.0 }
0x14bc   :  { %3421 = vadd.xlane.f32.xlu0 %v3420_v20 }
0x1545   :  { %v3422_v54 = vpop.xlane.xlu0 %3421 }
0x1546   :  { %v3423_v36 = vsel %vm336_vm1, %v3422_v54, 0.0 }
0x1547   :  { %v3424_v37 = vrot.slane %v3423_v36, 4 }
0x1549   :  { %v3425_v38 = vadd.f32 %v3424_v37, %v3423_v36 }
0x154b   :  { %v3426_v39 = vrot.slane %v3425_v38, 2 }
0x154d   :  { %v3427_v40 = vadd.f32 %v3426_v39, %v3425_v38 }
0x154f   :  { %v3428_v24 = vrot.slane %v3427_v40, 1 }
0x1551   :  { %v3429_v28 = vadd.f32 %v3428_v24, %v3427_v40 }
0x1553   :  { %v3431_v43 = vadd.f32 %v3430_v41, %v3429_v28 }
0x1555   :  { %3433 = vst.msk [vmem:[#allocation20] sm:$0x1] %vm3432_vm15, %v3431_v43 }
0x1556   :  { %3962 = shalt.err (!%p3959_p7)
}
0x1557   :  { %3443 = dma.vmem_to_hbm [thread:$0]  %s3441_s12, 16, %s4328_s4, [#allocation7]  }
0x1558   :  { %3981 = dma.done.wait [#allocation7], 16  }
0x1559   :  { %3982 = vsyncadd [#allocation7], 4294967280 }
0x155a   :  { %3447 = vsyncpa [#allocation6], 1 }
0x155b   :  { %3448 = vsyncpa [#allocation9], 1 }
0x155c   :  { %3449 = vsyncpa [#allocation12], 1 }
0x155d   :  { %3450 = vsyncpa [#allocation15], 1 }
0x155e   :  { %3451 = vsyncpa [#allocation18], 1 }
0x155f   :  { %3452 = vsyncpa [#allocation7], 1 }

</bundles_post_ra>
